<compile_context>
chip_gen: v7x
topology: tpu7x:2x2x1
jax: 0.10.0
libtpu: 0.0.40
codegen_flags: <defaults>
</compile_context>

<pallas_src>
import functools

import jax
import jax.numpy as jnp
from jax.experimental import pallas as pl
from jax.experimental.pallas import tpu as pltpu


def _round_up(n: int, m: int) -> int:
    return ((n + m - 1) // m) * m


def _mlp_kernel(*refs, bias_offsets, bias_widths, activation, compute_dtype):
    """refs = (x_ref, w0, ..., w_{L-1}, bias_slab_ref, out_ref).

    x_ref:   [bm, in_dim]            f32 (natural width)
    w_l:     [k_pad_l, n_pad_l]      bf16, zero-padded (hidden dims padded to 128)
    bias:    [1, sum(n_pad_l)]       f32, zero-padded
    out_ref: [bm, out_dim]           f32 (natural width)
    """
    x_ref = refs[0]
    out_ref = refs[-1]
    bias_ref = refs[-2]
    w_refs = refs[1:-2]
    num_layers = len(w_refs)

    # Hoisted single cast of the narrow input tile (one pack per grid step; helps v5e most).
    h = x_ref[...].astype(compute_dtype)
    for layer in range(num_layers):
        w = w_refs[layer][...]                               # resident bf16 weight block
        off, width = bias_offsets[layer], bias_widths[layer]
        b = bias_ref[:, off:off + width]                     # f32, static 128-aligned slice
        # MXU: bf16 x bf16 -> f32 accumulate; bias add / activation in f32.
        z = jnp.dot(h, w, preferred_element_type=jnp.float32) + b
        if layer < num_layers - 1:
            z = jnp.maximum(z, 0.0) if activation == "relu" else jnp.tanh(z)
            h = z.astype(compute_dtype)
        else:
            out_ref[...] = z.astype(out_ref.dtype)           # natural-width store


def prepare_params(weights, biases, *, compute_dtype=jnp.bfloat16):
    """One-time pad + cast of parameters (keeps per-call wrapper HLO out of the hot path).

    weights: list of [in_i, out_i] float32 arrays (transpose of nn.Linear weight)
    biases:  list of [out_i]        float32 arrays
    """
    in_dim = weights[0].shape[0]
    out_dim = weights[-1].shape[1]
    dims = [in_dim] + [w.shape[1] for w in weights]
    # Input/output feature dims stay natural (they touch HBM every call); intermediate
    # hidden dims are padded to 128 (VMEM/vreg only -> free, keeps matmuls lane-dense).
    pdims = [dims[0]] + [_round_up(d, 128) for d in dims[1:-1]] + [dims[-1]]

    w_blocks = []
    for l, w in enumerate(weights):
        wp = jnp.zeros((pdims[l], pdims[l + 1]), jnp.float32)
        wp = wp.at[:w.shape[0], :w.shape[1]].set(w)
        w_blocks.append(wp.astype(compute_dtype))            # bf16 -> half the weight bytes

    # Single concatenated bias slab [1, sum(n_pad_l)]; every slice offset is 128-aligned.
    bias_offsets, bias_widths, cols = [], [], []
    off = 0
    for l, b in enumerate(biases):
        width = pdims[l + 1]
        bias_offsets.append(off)
        bias_widths.append(width)
        cols.append(jnp.zeros((width,), jnp.float32).at[:b.shape[0]].set(b))
        off += width
    bias_slab = jnp.concatenate(cols).reshape(1, off)

    return dict(
        w_blocks=tuple(jax.block_until_ready(w) for w in w_blocks),
        bias_slab=jax.block_until_ready(bias_slab),
        bias_offsets=tuple(bias_offsets),
        bias_widths=tuple(bias_widths),
        in_dim=in_dim,
        out_dim=out_dim,
        pdims=tuple(pdims),
        compute_dtype=compute_dtype,
    )


def mlp_forward(x, params, activation: str = "relu", *, batch_tile: int = 512):
    """Pallas forward for the NeuralNetwork module. x: [batch, input_dim] float32."""
    if activation not in ("relu", "tanh"):
        raise ValueError(f"unsupported activation: {activation!r} (expected 'relu' or 'tanh')")

    w_blocks = params["w_blocks"]
    bias_slab = params["bias_slab"]
    in_dim, out_dim = params["in_dim"], params["out_dim"]
    pdims = params["pdims"]
    compute_dtype = params["compute_dtype"]
    num_layers = len(w_blocks)

    batch = x.shape[0]
    assert x.shape[1] == in_dim, "input feature dim mismatch"

    bm = min(batch_tile, _round_up(batch, 8))      # sublane-aligned batch tile
    batch_pad = _round_up(batch, bm)
    if batch_pad != batch:                          # only pad rows when actually needed
        x_in = jnp.zeros((batch_pad, in_dim), x.dtype).at[:batch].set(x)
    else:
        x_in = x
    grid = (batch_pad // bm,)

    # ---- VMEM accounting, generation-aware limit ----
    param_bytes = (sum(int(w.size) * w.dtype.itemsize for w in w_blocks)
                   + int(bias_slab.size) * bias_slab.dtype.itemsize)
    stream_bytes = 2 * bm * (in_dim * x.dtype.itemsize + out_dim * 4)  # dbl-buffered x/out tiles
    vmem_need = param_bytes + stream_bytes
    try:
        vmem_cap = int(pltpu.get_tpu_info().vmem_capacity_bytes)
    except Exception:
        vmem_cap = 64 * 2 ** 20                     # most restrictive generation (v7x per-core)
    vmem_budget = int(vmem_cap * 0.85)
    if vmem_need > vmem_budget:
        # TODO(synk): implement K/N weight tiling (extra "arbitrary" grid axes over the hidden
        # dim) so hidden sizes whose resident weights exceed per-core VMEM still run on v7x.
        raise ValueError(
            f"resident params + tiles ({vmem_need / 2**20:.1f} MiB) exceed the VMEM budget "
            f"({vmem_budget / 2**20:.1f} MiB); K/N weight tiling not implemented")

    cp_kwargs = dict(dimension_semantics=("parallel",))
    if vmem_need * 5 // 4 > 16 * 2 ** 20:           # above the smallest default scoped limit (v5e)
        cp_kwargs["vmem_limit_bytes"] = int(min(vmem_need * 5 // 4 + (1 << 20), vmem_budget))

    # Advisory cost estimate so XLA can schedule around the call.
    flops = 2 * batch_pad * sum(pdims[l] * pdims[l + 1] for l in range(num_layers))
    transcendentals = (0 if activation == "relu"
                       else batch_pad * sum(pdims[l + 1] for l in range(num_layers - 1)))
    bytes_accessed = (batch_pad * in_dim * x.dtype.itemsize + param_bytes
                      + batch_pad * out_dim * 4)

    kernel = functools.partial(
        _mlp_kernel,
        bias_offsets=params["bias_offsets"],
        bias_widths=params["bias_widths"],
        activation=activation,
        compute_dtype=compute_dtype,
    )

    def build_call(single_buffer_params: bool):
        resident_kwargs = {"pipeline_mode": pl.Buffered(1)} if single_buffer_params else {}
        in_specs = [pl.BlockSpec((bm, in_dim), lambda i: (i, 0))]                 # streamed
        in_specs += [pl.BlockSpec(w.shape, lambda i: (0, 0), **resident_kwargs)   # resident
                     for w in w_blocks]
        in_specs += [pl.BlockSpec(bias_slab.shape, lambda i: (0, 0), **resident_kwargs)]
        out_specs = pl.BlockSpec((bm, out_dim), lambda i: (i, 0))
        return pl.pallas_call(
            kernel,
            out_shape=jax.ShapeDtypeStruct((batch_pad, out_dim), jnp.float32),
            grid=grid,
            in_specs=in_specs,
            out_specs=out_specs,
            compiler_params=pltpu.CompilerParams(**cp_kwargs),
            cost_estimate=pl.CostEstimate(flops=flops, transcendentals=transcendentals,
                                          bytes_accessed=bytes_accessed),
        )

    try:
        out = build_call(True)(x_in, *w_blocks, bias_slab)
    except Exception:
        # Fallback: jax builds where Buffered(1) is not accepted by the top-level grid
        # pipeliner -> default double-buffering (correct, just a bit more VMEM).
        out = build_call(False)(x_in, *w_blocks, bias_slab)

    return out if batch_pad == batch else out[:batch]


def init_params(key, input_dim, output_dim, hidden_size, hidden_layers):
    """Deterministic nn.Linear-style init (uniform +/- 1/sqrt(fan_in))."""
    dims = [input_dim] + [hidden_size] * hidden_layers + [output_dim]
    weights, biases = [], []
    for i in range(len(dims) - 1):
        fan_in, fan_out = dims[i], dims[i + 1]
        key, kw, kb = jax.random.split(key, 3)
        bound = 1.0 / jnp.sqrt(fan_in)
        weights.append(jax.random.uniform(kw, (fan_in, fan_out), jnp.float32, -bound, bound))
        biases.append(jax.random.uniform(kb, (fan_out,), jnp.float32, -bound, bound))
    return weights, biases


def reference_forward(x, weights, biases, activation="relu", compute_dtype=jnp.bfloat16):
    """Pure-JAX reference with the same bf16-matmul / f32-accumulate policy."""
    h = x
    for i, (w, b) in enumerate(zip(weights, biases)):
        h = jnp.dot(h.astype(compute_dtype), w.astype(compute_dtype),
                    preferred_element_type=jnp.float32) + b
        if i < len(weights) - 1:
            h = jnp.maximum(h, 0.0) if activation == "relu" else jnp.tanh(h)
    return h


if __name__ == "__main__":
    # Shapes consistent with the module's forward (s is [batch, input_dim]).
    input_dim, hidden_size, hidden_layers, output_dim = 16, 32, 3, 8

    key = jax.random.PRNGKey(0)
    key, kx = jax.random.split(key)
    weights, biases = init_params(key, input_dim, output_dim, hidden_size, hidden_layers)
    params = prepare_params(weights, biases)            # one-time pad / bf16-cast / slab build

    # Case 1: relu, batch tiles evenly -> 2 fat grid steps of 512 rows, no wrapper padding.
    batch = 1024
    x = jax.random.normal(kx, (batch, input_dim), jnp.float32)
    out = jax.block_until_ready(mlp_forward(x, params, "relu", batch_tile=512))
    ref = reference_forward(x, weights, biases, "relu")
    assert out.shape == (batch, output_dim)
    assert jnp.allclose(out, ref, atol=1e-3, rtol=1e-3), "mismatch vs bf16 JAX reference (relu)"
    ref_f32 = reference_forward(x, weights, biases, "relu", compute_dtype=jnp.float32)
    assert jnp.allclose(out, ref_f32, atol=2e-2, rtol=2e-2), "drifted too far from f32 reference"

    # Case 2: tanh, ragged batch -> exercises row padding + final row slice.
    batch2 = 100
    x2 = jax.random.normal(jax.random.PRNGKey(1), (batch2, input_dim), jnp.float32)
    out2 = jax.block_until_ready(mlp_forward(x2, params, "tanh"))
    ref2 = reference_forward(x2, weights, biases, "tanh")
    assert out2.shape == (batch2, output_dim)
    assert jnp.allclose(out2, ref2, atol=1e-3, rtol=1e-3), "mismatch vs bf16 JAX reference (tanh)"

    print("KERNEL_OK")
</pallas_src>

<mosaic_0001>
module attributes {stable_mosaic.version = 11 : i64} {
  func.func @_mlp_kernel(%arg0: i32, %arg1: memref<512x16xf32, #tpu.memory_space<vmem>>, %arg2: memref<16x128xbf16, #tpu.memory_space<vmem>>, %arg3: memref<128x128xbf16, #tpu.memory_space<vmem>>, %arg4: memref<128x128xbf16, #tpu.memory_space<vmem>>, %arg5: memref<128x8xbf16, #tpu.memory_space<vmem>>, %arg6: memref<1x392xf32, #tpu.memory_space<vmem>>, %arg7: memref<512x8xf32, #tpu.memory_space<vmem>>) attributes {dimension_semantics = [#tpu.dimension_semantics<parallel>], iteration_bounds = array<i64: 2>, scalar_prefetch = 0 : i64, scratch_operands = 0 : i64, tpu.core_type = #tpu.core_type<tc>, window_params = [{transform_indices = @transform_0, window_bounds = array<i64: 512, 16>}, {pipeline_mode = #tpu.pipeline_mode<synchronous>, transform_indices = @transform_1, window_bounds = array<i64: 16, 128>}, {pipeline_mode = #tpu.pipeline_mode<synchronous>, transform_indices = @transform_2, window_bounds = array<i64: 128, 128>}, {pipeline_mode = #tpu.pipeline_mode<synchronous>, transform_indices = @transform_3, window_bounds = array<i64: 128, 128>}, {pipeline_mode = #tpu.pipeline_mode<synchronous>, transform_indices = @transform_4, window_bounds = array<i64: 128, 8>}, {pipeline_mode = #tpu.pipeline_mode<synchronous>, transform_indices = @transform_5, window_bounds = array<i64: 1, 392>}, {transform_indices = @transform_6, window_bounds = array<i64: 512, 8>}]} {
    %c0 = arith.constant 0 : index
    %c0_0 = arith.constant 0 : index
    %0 = vector.load %arg1[%c0, %c0_0] : memref<512x16xf32, #tpu.memory_space<vmem>>, vector<512x16xf32>
    %1 = arith.truncf %0 : vector<512x16xf32> to vector<512x16xbf16>
    %c0_1 = arith.constant 0 : index
    %c0_2 = arith.constant 0 : index
    %2 = vector.load %arg2[%c0_1, %c0_2] : memref<16x128xbf16, #tpu.memory_space<vmem>>, vector<16x128xbf16>
    %c0_3 = arith.constant 0 : index
    %c0_4 = arith.constant 0 : index
    %3 = vector.load %arg6[%c0_3, %c0_4] : memref<1x392xf32, #tpu.memory_space<vmem>>, vector<1x128xf32>
    %cst = arith.constant dense<0.000000e+00> : vector<512x128xf32>
    %4 = tpu.matmul %1, %2, %cst {dimension_numbers = #tpu.dot_dimension_numbers<[1], [0], [0], [1], [0, 0, 1, 1], [], []>} : vector<512x16xbf16>, vector<16x128xbf16>, vector<512x128xf32> -> vector<512x128xf32>
    %5 = vector.broadcast %3 : vector<1x128xf32> to vector<512x128xf32>
    %6 = arith.addf %4, %5 : vector<512x128xf32>
    %cst_5 = arith.constant 0.000000e+00 : f32
    %7 = vector.broadcast %cst_5 : f32 to vector<512x128xf32>
    %8 = arith.maximumf %6, %7 : vector<512x128xf32>
    %9 = arith.truncf %8 : vector<512x128xf32> to vector<512x128xbf16>
    %c0_6 = arith.constant 0 : index
    %c0_7 = arith.constant 0 : index
    %10 = vector.load %arg3[%c0_6, %c0_7] : memref<128x128xbf16, #tpu.memory_space<vmem>>, vector<128x128xbf16>
    %c0_8 = arith.constant 0 : index
    %c128 = arith.constant 128 : index
    %11 = vector.load %arg6[%c0_8, %c128] : memref<1x392xf32, #tpu.memory_space<vmem>>, vector<1x128xf32>
    %cst_9 = arith.constant dense<0.000000e+00> : vector<512x128xf32>
    %12 = tpu.matmul %9, %10, %cst_9 {dimension_numbers = #tpu.dot_dimension_numbers<[1], [0], [0], [1], [0, 0, 1, 1], [], []>} : vector<512x128xbf16>, vector<128x128xbf16>, vector<512x128xf32> -> vector<512x128xf32>
    %13 = vector.broadcast %11 : vector<1x128xf32> to vector<512x128xf32>
    %14 = arith.addf %12, %13 : vector<512x128xf32>
    %cst_10 = arith.constant 0.000000e+00 : f32
    %15 = vector.broadcast %cst_10 : f32 to vector<512x128xf32>
    %16 = arith.maximumf %14, %15 : vector<512x128xf32>
    %17 = arith.truncf %16 : vector<512x128xf32> to vector<512x128xbf16>
    %c0_11 = arith.constant 0 : index
    %c0_12 = arith.constant 0 : index
    %18 = vector.load %arg4[%c0_11, %c0_12] : memref<128x128xbf16, #tpu.memory_space<vmem>>, vector<128x128xbf16>
    %c0_13 = arith.constant 0 : index
    %c256 = arith.constant 256 : index
    %19 = vector.load %arg6[%c0_13, %c256] : memref<1x392xf32, #tpu.memory_space<vmem>>, vector<1x128xf32>
    %cst_14 = arith.constant dense<0.000000e+00> : vector<512x128xf32>
    %20 = tpu.matmul %17, %18, %cst_14 {dimension_numbers = #tpu.dot_dimension_numbers<[1], [0], [0], [1], [0, 0, 1, 1], [], []>} : vector<512x128xbf16>, vector<128x128xbf16>, vector<512x128xf32> -> vector<512x128xf32>
    %21 = vector.broadcast %19 : vector<1x128xf32> to vector<512x128xf32>
    %22 = arith.addf %20, %21 : vector<512x128xf32>
    %cst_15 = arith.constant 0.000000e+00 : f32
    %23 = vector.broadcast %cst_15 : f32 to vector<512x128xf32>
    %24 = arith.maximumf %22, %23 : vector<512x128xf32>
    %25 = arith.truncf %24 : vector<512x128xf32> to vector<512x128xbf16>
    %c0_16 = arith.constant 0 : index
    %c0_17 = arith.constant 0 : index
    %26 = vector.load %arg5[%c0_16, %c0_17] : memref<128x8xbf16, #tpu.memory_space<vmem>>, vector<128x8xbf16>
    %c0_18 = arith.constant 0 : index
    %c384 = arith.constant 384 : index
    %27 = vector.load %arg6[%c0_18, %c384] : memref<1x392xf32, #tpu.memory_space<vmem>>, vector<1x8xf32>
    %cst_19 = arith.constant dense<0.000000e+00> : vector<512x8xf32>
    %28 = tpu.matmul %25, %26, %cst_19 {dimension_numbers = #tpu.dot_dimension_numbers<[1], [0], [0], [1], [0, 0, 1, 1], [], []>} : vector<512x128xbf16>, vector<128x8xbf16>, vector<512x8xf32> -> vector<512x8xf32>
    %29 = vector.broadcast %27 : vector<1x8xf32> to vector<512x8xf32>
    %30 = arith.addf %28, %29 : vector<512x8xf32>
    %c0_20 = arith.constant 0 : index
    %c0_21 = arith.constant 0 : index
    %31 = vector.load %arg7[%c0_20, %c0_21] : memref<512x8xf32, #tpu.memory_space<vmem>>, vector<512x8xf32>
    tpu.vector_store %arg7[%c0_20, %c0_21], %30 {strides = array<i32>} : memref<512x8xf32, #tpu.memory_space<vmem>>, vector<512x8xf32>,
    return
  }
  func.func @transform_0(%arg0: i32) -> (i32, i32) {
    %c0_i32 = arith.constant 0 : i32
    %c0_i32_0 = arith.constant 0 : i32
    return %arg0, %c0_i32 : i32, i32
  }
  func.func @transform_1(%arg0: i32) -> (i32, i32) {
    %c0_i32 = arith.constant 0 : i32
    %c0_i32_0 = arith.constant 0 : i32
    %c0_i32_1 = arith.constant 0 : i32
    return %c0_i32, %c0_i32_0 : i32, i32
  }
  func.func @transform_2(%arg0: i32) -> (i32, i32) {
    %c0_i32 = arith.constant 0 : i32
    %c0_i32_0 = arith.constant 0 : i32
    %c0_i32_1 = arith.constant 0 : i32
    return %c0_i32, %c0_i32_0 : i32, i32
  }
  func.func @transform_3(%arg0: i32) -> (i32, i32) {
    %c0_i32 = arith.constant 0 : i32
    %c0_i32_0 = arith.constant 0 : i32
    %c0_i32_1 = arith.constant 0 : i32
    return %c0_i32, %c0_i32_0 : i32, i32
  }
  func.func @transform_4(%arg0: i32) -> (i32, i32) {
    %c0_i32 = arith.constant 0 : i32
    %c0_i32_0 = arith.constant 0 : i32
    %c0_i32_1 = arith.constant 0 : i32
    return %c0_i32, %c0_i32_0 : i32, i32
  }
  func.func @transform_5(%arg0: i32) -> (i32, i32) {
    %c0_i32 = arith.constant 0 : i32
    %c0_i32_0 = arith.constant 0 : i32
    %c0_i32_1 = arith.constant 0 : i32
    return %c0_i32, %c0_i32_0 : i32, i32
  }
  func.func @transform_6(%arg0: i32) -> (i32, i32) {
    %c0_i32 = arith.constant 0 : i32
    %c0_i32_0 = arith.constant 0 : i32
    return %arg0, %c0_i32 : i32, i32
  }
}

module attributes {stable_mosaic.version = 11 : i64} {
  func.func @_mlp_kernel(%arg0: i32, %arg1: memref<512x16xf32, #tpu.memory_space<vmem>>, %arg2: memref<16x128xbf16, #tpu.memory_space<vmem>>, %arg3: memref<128x128xbf16, #tpu.memory_space<vmem>>, %arg4: memref<128x128xbf16, #tpu.memory_space<vmem>>, %arg5: memref<128x8xbf16, #tpu.memory_space<vmem>>, %arg6: memref<1x392xf32, #tpu.memory_space<vmem>>, %arg7: memref<512x8xf32, #tpu.memory_space<vmem>>) attributes {dimension_semantics = [#tpu.dimension_semantics<parallel>], iteration_bounds = array<i64: 2>, scalar_prefetch = 0 : i64, scratch_operands = 0 : i64, tpu.core_type = #tpu.core_type<tc>, window_params = [{transform_indices = @transform_0, window_bounds = array<i64: 512, 16>}, {pipeline_mode = #tpu.pipeline_mode<synchronous>, transform_indices = @transform_1, window_bounds = array<i64: 16, 128>}, {pipeline_mode = #tpu.pipeline_mode<synchronous>, transform_indices = @transform_2, window_bounds = array<i64: 128, 128>}, {pipeline_mode = #tpu.pipeline_mode<synchronous>, transform_indices = @transform_3, window_bounds = array<i64: 128, 128>}, {pipeline_mode = #tpu.pipeline_mode<synchronous>, transform_indices = @transform_4, window_bounds = array<i64: 128, 8>}, {pipeline_mode = #tpu.pipeline_mode<synchronous>, transform_indices = @transform_5, window_bounds = array<i64: 1, 392>}, {transform_indices = @transform_6, window_bounds = array<i64: 512, 8>}]} {
    %c0 = arith.constant 0 : index
    %c0_0 = arith.constant 0 : index
    %0 = vector.load %arg1[%c0, %c0_0] : memref<512x16xf32, #tpu.memory_space<vmem>>, vector<512x16xf32>
    %1 = arith.truncf %0 : vector<512x16xf32> to vector<512x16xbf16>
    %c0_1 = arith.constant 0 : index
    %c0_2 = arith.constant 0 : index
    %2 = vector.load %arg2[%c0_1, %c0_2] : memref<16x128xbf16, #tpu.memory_space<vmem>>, vector<16x128xbf16>
    %c0_3 = arith.constant 0 : index
    %c0_4 = arith.constant 0 : index
    %3 = vector.load %arg6[%c0_3, %c0_4] : memref<1x392xf32, #tpu.memory_space<vmem>>, vector<1x128xf32>
    %cst = arith.constant dense<0.000000e+00> : vector<512x128xf32>
    %4 = tpu.matmul %1, %2, %cst {dimension_numbers = #tpu.dot_dimension_numbers<[1], [0], [0], [1], [0, 0, 1, 1], [], []>} : vector<512x16xbf16>, vector<16x128xbf16>, vector<512x128xf32> -> vector<512x128xf32>
    %5 = vector.broadcast %3 : vector<1x128xf32> to vector<512x128xf32>
    %6 = arith.addf %4, %5 : vector<512x128xf32>
    %cst_5 = arith.constant 0.000000e+00 : f32
    %7 = vector.broadcast %cst_5 : f32 to vector<512x128xf32>
    %8 = arith.maximumf %6, %7 : vector<512x128xf32>
    %9 = arith.truncf %8 : vector<512x128xf32> to vector<512x128xbf16>
    %c0_6 = arith.constant 0 : index
    %c0_7 = arith.constant 0 : index
    %10 = vector.load %arg3[%c0_6, %c0_7] : memref<128x128xbf16, #tpu.memory_space<vmem>>, vector<128x128xbf16>
    %c0_8 = arith.constant 0 : index
    %c128 = arith.constant 128 : index
    %11 = vector.load %arg6[%c0_8, %c128] : memref<1x392xf32, #tpu.memory_space<vmem>>, vector<1x128xf32>
    %cst_9 = arith.constant dense<0.000000e+00> : vector<512x128xf32>
    %12 = tpu.matmul %9, %10, %cst_9 {dimension_numbers = #tpu.dot_dimension_numbers<[1], [0], [0], [1], [0, 0, 1, 1], [], []>} : vector<512x128xbf16>, vector<128x128xbf16>, vector<512x128xf32> -> vector<512x128xf32>
    %13 = vector.broadcast %11 : vector<1x128xf32> to vector<512x128xf32>
    %14 = arith.addf %12, %13 : vector<512x128xf32>
    %cst_10 = arith.constant 0.000000e+00 : f32
    %15 = vector.broadcast %cst_10 : f32 to vector<512x128xf32>
    %16 = arith.maximumf %14, %15 : vector<512x128xf32>
    %17 = arith.truncf %16 : vector<512x128xf32> to vector<512x128xbf16>
    %c0_11 = arith.constant 0 : index
    %c0_12 = arith.constant 0 : index
    %18 = vector.load %arg4[%c0_11, %c0_12] : memref<128x128xbf16, #tpu.memory_space<vmem>>, vector<128x128xbf16>
    %c0_13 = arith.constant 0 : index
    %c256 = arith.constant 256 : index
    %19 = vector.load %arg6[%c0_13, %c256] : memref<1x392xf32, #tpu.memory_space<vmem>>, vector<1x128xf32>
    %cst_14 = arith.constant dense<0.000000e+00> : vector<512x128xf32>
    %20 = tpu.matmul %17, %18, %cst_14 {dimension_numbers = #tpu.dot_dimension_numbers<[1], [0], [0], [1], [0, 0, 1, 1], [], []>} : vector<512x128xbf16>, vector<128x128xbf16>, vector<512x128xf32> -> vector<512x128xf32>
    %21 = vector.broadcast %19 : vector<1x128xf32> to vector<512x128xf32>
    %22 = arith.addf %20, %21 : vector<512x128xf32>
    %cst_15 = arith.constant 0.000000e+00 : f32
    %23 = vector.broadcast %cst_15 : f32 to vector<512x128xf32>
    %24 = arith.maximumf %22, %23 : vector<512x128xf32>
    %25 = arith.truncf %24 : vector<512x128xf32> to vector<512x128xbf16>
    %c0_16 = arith.constant 0 : index
    %c0_17 = arith.constant 0 : index
    %26 = vector.load %arg5[%c0_16, %c0_17] : memref<128x8xbf16, #tpu.memory_space<vmem>>, vector<128x8xbf16>
    %c0_18 = arith.constant 0 : index
    %c384 = arith.constant 384 : index
    %27 = vector.load %arg6[%c0_18, %c384] : memref<1x392xf32, #tpu.memory_space<vmem>>, vector<1x8xf32>
    %cst_19 = arith.constant dense<0.000000e+00> : vector<512x8xf32>
    %28 = tpu.matmul %25, %26, %cst_19 {dimension_numbers = #tpu.dot_dimension_numbers<[1], [0], [0], [1], [0, 0, 1, 1], [], []>} : vector<512x128xbf16>, vector<128x8xbf16>, vector<512x8xf32> -> vector<512x8xf32>
    %29 = vector.broadcast %27 : vector<1x8xf32> to vector<512x8xf32>
    %30 = arith.addf %28, %29 : vector<512x8xf32>
    %c0_20 = arith.constant 0 : index
    %c0_21 = arith.constant 0 : index
    %31 = vector.load %arg7[%c0_20, %c0_21] : memref<512x8xf32, #tpu.memory_space<vmem>>, vector<512x8xf32>
    tpu.vector_store %arg7[%c0_20, %c0_21], %30 {strides = array<i32>} : memref<512x8xf32, #tpu.memory_space<vmem>>, vector<512x8xf32>,
    return
  }
  func.func @transform_0(%arg0: i32) -> (i32, i32) {
    %c0_i32 = arith.constant 0 : i32
    %c0_i32_0 = arith.constant 0 : i32
    return %arg0, %c0_i32 : i32, i32
  }
  func.func @transform_1(%arg0: i32) -> (i32, i32) {
    %c0_i32 = arith.constant 0 : i32
    %c0_i32_0 = arith.constant 0 : i32
    %c0_i32_1 = arith.constant 0 : i32
    return %c0_i32, %c0_i32_0 : i32, i32
  }
  func.func @transform_2(%arg0: i32) -> (i32, i32) {
    %c0_i32 = arith.constant 0 : i32
    %c0_i32_0 = arith.constant 0 : i32
    %c0_i32_1 = arith.constant 0 : i32
    return %c0_i32, %c0_i32_0 : i32, i32
  }
  func.func @transform_3(%arg0: i32) -> (i32, i32) {
    %c0_i32 = arith.constant 0 : i32
    %c0_i32_0 = arith.constant 0 : i32
    %c0_i32_1 = arith.constant 0 : i32
    return %c0_i32, %c0_i32_0 : i32, i32
  }
  func.func @transform_4(%arg0: i32) -> (i32, i32) {
    %c0_i32 = arith.constant 0 : i32
    %c0_i32_0 = arith.constant 0 : i32
    %c0_i32_1 = arith.constant 0 : i32
    return %c0_i32, %c0_i32_0 : i32, i32
  }
  func.func @transform_5(%arg0: i32) -> (i32, i32) {
    %c0_i32 = arith.constant 0 : i32
    %c0_i32_0 = arith.constant 0 : i32
    %c0_i32_1 = arith.constant 0 : i32
    return %c0_i32, %c0_i32_0 : i32, i32
  }
  func.func @transform_6(%arg0: i32) -> (i32, i32) {
    %c0_i32 = arith.constant 0 : i32
    %c0_i32_0 = arith.constant 0 : i32
    return %arg0, %c0_i32 : i32, i32
  }
}

</mosaic_0001>

<bundles_post_ra>
// kernel: tpu_custom_call.1
= control target key start
LH: loop header
LB: loop body
LE: loop exit
PB: predicated region body
PF: predicated region fallthrough
CT: control target
= control target key end

     0   :  { %s2865_s21 = smov 0   ;;  %s3468_s0 = inlined_call_operand.vmem [shape: f32[1024,16], index: 0, kind: input, shape index: {}]   ;;  %s3469_s1 = inlined_call_operand.vmem [shape: bf16[16,128], index: 1, kind: input, shape index: {}]   ;;  %s3470_s2 = inlined_call_operand.vmem [shape: bf16[128,128], index: 2, kind: input, shape index: {}]   ;;  %s3471_s3 = inlined_call_operand.vmem [shape: bf16[128,128], index: 3, kind: input, shape index: {}]   ;;  %s3472_s4 = inlined_call_operand.vmem [shape: bf16[128,8], index: 4, kind: input, shape index: {}]   ;;  %s3473_s5 = inlined_call_operand.vmem [shape: f32[1,392], index: 5, kind: input, shape index: {}]   ;;  %s3474_s6 = inlined_call_operand.vmem [shape: f32[1024,8], index: 6, kind: output, shape index: {}]  }
   0x1 LB: > { %s2242_s22 = sadd.s32 4294967295, %s2828_s21   ;;  %p2246_p0 = scmp.ge.s32.totalorder %s2828_s21, 1  ;;  %s2828_s21 = sphi %s2865_s21, %s16_s21  }
   0x2   : > { %p213_p1 = scmp.lt.s32.totalorder %s2828_s21, 3 }
   0x4   : > { %p214_p2 = pnand %p2246_p0, %p213_p1 }
   0x5   : > { %v2797_v0 = vld [vmem:[%s3469_s1] sm:$0xff] (!%p214_p2)   ;;  %s2247_s25 = sshll.u32 (!%p214_p2), %s2242_s22, 6  ;;  %v2799_v2 = vld [vmem:[%s3470_s2 + $0x8] sm:$0xff] (!%p214_p2)   ;;  %v2800_v3 = vld [vmem:[%s3470_s2 + $0x10] sm:$0xff] (!%p214_p2)   ;;  %vm367_vm0 = vcmask (!%p214_p2), 130048   ;;  %vm2121_vm1 = vcmask (!%p214_p2), 64512  }
   0x6   : > { %217 = sbr.rel (%p214_p2) target bundleno = 1024 (0x400), region = 44  ;;  %p244_p3 = scmp.lt.s32.totalorder (!%p214_p2), %s2247_s25, 127  ;;  %2467 = vmatprep.subr.bf16.mxu0 (!%p214_p2), %v2797_v0  ;;  %v2798_v1 = vld [vmem:[%s3470_s2] sm:$0xff] (!%p214_p2)   ;;  %v2801_v13 = vld [vmem:[%s3470_s2 + $0x18] sm:$0xff] (!%p214_p2)   ;;  %v2803_v31 = vld [vmem:[%s3470_s2 + $0x28] sm:$0xff] (!%p214_p2)  }
   0x7   : > { %2468 = vmatpush3.bf16.msra.mxu0 (!%p214_p2), %v2797_v0  ;;  %2533 = vmatprep.subr.bf16.mxu1 (!%p214_p2), %v2798_v1  ;;  %v2802_v19 = vld [vmem:[%s3470_s2 + $0x20] sm:$0xff] (!%p214_p2)  }
   0x8   : > { %2534 = vmatpush3.bf16.msra.mxu1 (!%p214_p2), %v2798_v1 }
   0x9   : > { %2535 = vmatprep.subr.bf16.mxu1 (!%p214_p2), %v2799_v2 }
   0xc   : > { %2536 = vmatpush3.bf16.msra.mxu1 (!%p214_p2), %v2799_v2 }
   0xd   : > { %s3476_s25 = smov (!%p244_p3, %s2247_s25), 127  ;;  %2537 = vmatprep.subr.bf16.mxu1 %v2800_v3 }
   0xe   : > { %s2248_s30 = sshll.u32 %s3476_s25, 3 }
   0xf   : > { %s2890_s9 = scalar_lea.vmem %s3468_s0, %s2248_s30  ;;  %s3271_s23 = scalar_lea.vmem %s3474_s6, %s2248_s30 }
  0x10   : > { %v256_v4 = vld [vmem:[%s2890_s9] sm:$0xff]  ;;  %v257_v5 = vld [vmem:[%s2890_s9 + $0x8] sm:$0xff]  ;;  %v258_v6 = vld [vmem:[%s2890_s9 + $0x10] sm:$0xff]  ;;  %2538 = vmatpush3.bf16.msra.mxu1 %v2800_v3 }
  0x11   : > { %v320_v7 = vpack.c.bf16 %v257_v5, %v256_v4  ;;  %v259_v8 = vld [vmem:[%s2890_s9 + $0x18] sm:$0xff]  ;;  %v260_v9 = vld [vmem:[%s2890_s9 + $0x20] sm:$0xff]  ;;  %v261_v10 = vld [vmem:[%s2890_s9 + $0x28] sm:$0xff]  ;;  %2539 = vmatprep.subr.bf16.mxu1 %v2801_v13 }
  0x12   : > { %v321_v11 = vpack.c.bf16 %v259_v8, %v258_v6  ;;  %v322_v12 = vpack.c.bf16 %v261_v10, %v260_v9  ;;  %v262_v14 = vld [vmem:[%s2890_s9 + $0x30] sm:$0xff]  ;;  %v263_v15 = vld [vmem:[%s2890_s9 + $0x38] sm:$0xff]  ;;  %v264_v16 = vld [vmem:[%s2890_s9 + $0x40] sm:$0xff] }
  0x13   : > { %2469 = vmatprep.mubr.msk.bf16.mxu0 %vm367_vm0, %v320_v7  ;;  %v265_v17 = vld [vmem:[%s2890_s9 + $0x48] sm:$0xff]  ;;  %v323_v18 = vpack.c.bf16 %v263_v15, %v262_v14  ;;  %v266_v21 = vld [vmem:[%s2890_s9 + $0x50] sm:$0xff]  ;;  %v267_v22 = vld [vmem:[%s2890_s9 + $0x58] sm:$0xff] }
  0x14   : > { %2470 = vmatmul.mubr.msk.bf16.vlgmr.msra.gmra.mrb[0].mxu0 %vm367_vm0, %v321_v11  ;;  %v324_v20 = vpack.c.bf16 %v265_v17, %v264_v16  ;;  %2540 = vmatpush3.bf16.msra.mxu1 %v2801_v13  ;;  %v268_v23 = vld [vmem:[%s2890_s9 + $0x60] sm:$0xff]  ;;  %v269_v24 = vld [vmem:[%s2890_s9 + $0x68] sm:$0xff]  ;;  %v325_v25 = vpack.c.bf16 %v267_v22, %v266_v21  ;;  %v270_v27 = vld [vmem:[%s2890_s9 + $0x70] sm:$0xff] }
  0x15   : > { %2473 = vmatprep.mubr.msk.bf16.mxu0 %vm367_vm0, %v322_v12  ;;  %2541 = vmatprep.subr.bf16.mxu1 %v2802_v19  ;;  %v326_v26 = vpack.c.bf16 %v269_v24, %v268_v23  ;;  %v271_v28 = vld [vmem:[%s2890_s9 + $0x78] sm:$0xff]  ;;  %v272_v29 = vld [vmem:[%s2890_s9 + $0x80] sm:$0xff]  ;;  %v273_v30 = vld [vmem:[%s2890_s9 + $0x88] sm:$0xff] }
  0x16   : > { %v327_v32 = vpack.c.bf16 %v271_v28, %v270_v27  ;;  %v328_v33 = vpack.c.bf16 %v273_v30, %v272_v29  ;;  %v274_v34 = vld [vmem:[%s2890_s9 + $0x90] sm:$0xff]  ;;  %v275_v35 = vld [vmem:[%s2890_s9 + $0x98] sm:$0xff]  ;;  %v276_v36 = vld [vmem:[%s2890_s9 + $0xa0] sm:$0xff] }
  0x17   : > { %v277_v37 = vld [vmem:[%s2890_s9 + $0xa8] sm:$0xff]  ;;  %v329_v38 = vpack.c.bf16 %v275_v35, %v274_v34  ;;  %v278_v40 = vld [vmem:[%s2890_s9 + $0xb0] sm:$0xff]  ;;  %v279_v41 = vld [vmem:[%s2890_s9 + $0xb8] sm:$0xff] }
  0x18   : > { %2542 = vmatpush3.bf16.msra.mxu1 %v2802_v19  ;;  %v330_v39 = vpack.c.bf16 %v277_v37, %v276_v36  ;;  %v280_v42 = vld [vmem:[%s2890_s9 + $0xc0] sm:$0xff]  ;;  %v281_v43 = vld [vmem:[%s2890_s9 + $0xc8] sm:$0xff]  ;;  %v331_v44 = vpack.c.bf16 %v279_v41, %v278_v40  ;;  %v282_v46 = vld [vmem:[%s2890_s9 + $0xd0] sm:$0xff] }
  0x19   : > { %2543 = vmatprep.subr.bf16.mxu1 %v2803_v31  ;;  %v332_v45 = vpack.c.bf16 %v281_v43, %v280_v42  ;;  %v283_v47 = vld [vmem:[%s2890_s9 + $0xd8] sm:$0xff]  ;;  %v284_v48 = vld [vmem:[%s2890_s9 + $0xe0] sm:$0xff]  ;;  %v285_v49 = vld [vmem:[%s2890_s9 + $0xe8] sm:$0xff] }
  0x1a   : > { %v333_v50 = vpack.c.bf16 %v283_v47, %v282_v46  ;;  %v334_v51 = vpack.c.bf16 %v285_v49, %v284_v48  ;;  %v286_v52 = vld [vmem:[%s2890_s9 + $0xf0] sm:$0xff]  ;;  %v287_v53 = vld [vmem:[%s2890_s9 + $0xf8] sm:$0xff]  ;;  %v288_v54 = vld [vmem:[%s2890_s9 + $0x100] sm:$0xff] }
  0x1b   : > { %v289_v55 = vld [vmem:[%s2890_s9 + $0x108] sm:$0xff]  ;;  %v335_v56 = vpack.c.bf16 %v287_v53, %v286_v52  ;;  %v290_v58 = vld [vmem:[%s2890_s9 + $0x110] sm:$0xff]  ;;  %v291_v59 = vld [vmem:[%s2890_s9 + $0x118] sm:$0xff] }
  0x1c   : > { %2474 = vmatmul.mubr.msk.bf16.gmra.mrb[4].mxu0 %vm367_vm0, %v323_v18  ;;  %2544 = vmatpush3.bf16.msra.mxu1 %v2803_v31  ;;  %v336_v57 = vpack.c.bf16 %v289_v55, %v288_v54  ;;  %v292_v60 = vld [vmem:[%s2890_s9 + $0x120] sm:$0xff]  ;;  %v293_v61 = vld [vmem:[%s2890_s9 + $0x128] sm:$0xff]  ;;  %v337_v62 = vpack.c.bf16 %v291_v59, %v290_v58  ;;  %v294_v0 = vld [vmem:[%s2890_s9 + $0x130] sm:$0xff] }
  0x1d   : > { %2477 = vmatprep.mubr.msk.bf16.mxu0 %vm367_vm0, %v324_v20  ;;  %v338_v63 = vpack.c.bf16 %v293_v61, %v292_v60  ;;  %v295_v1 = vld [vmem:[%s2890_s9 + $0x138] sm:$0xff]  ;;  %v296_v2 = vld [vmem:[%s2890_s9 + $0x140] sm:$0xff]  ;;  %v297_v3 = vld [vmem:[%s2890_s9 + $0x148] sm:$0xff] }
  0x1e   : > { %v339_v4 = vpack.c.bf16 %v295_v1, %v294_v0  ;;  %v340_v5 = vpack.c.bf16 %v297_v3, %v296_v2  ;;  %v298_v6 = vld [vmem:[%s2890_s9 + $0x150] sm:$0xff]  ;;  %v299_v7 = vld [vmem:[%s2890_s9 + $0x158] sm:$0xff]  ;;  %v300_v8 = vld [vmem:[%s2890_s9 + $0x160] sm:$0xff] }
  0x1f   : > { %v301_v9 = vld [vmem:[%s2890_s9 + $0x168] sm:$0xff]  ;;  %v341_v10 = vpack.c.bf16 %v299_v7, %v298_v6  ;;  %v302_v12 = vld [vmem:[%s2890_s9 + $0x170] sm:$0xff]  ;;  %v303_v13 = vld [vmem:[%s2890_s9 + $0x178] sm:$0xff] }
  0x20   : > { %v342_v11 = vpack.c.bf16 %v301_v9, %v300_v8  ;;  %v304_v14 = vld [vmem:[%s2890_s9 + $0x180] sm:$0xff]  ;;  %v305_v15 = vld [vmem:[%s2890_s9 + $0x188] sm:$0xff]  ;;  %v343_v16 = vpack.c.bf16 %v303_v13, %v302_v12  ;;  %v2804_v17 = vld [vmem:[%s3470_s2 + $0x30] sm:$0xff]  }
  0x21   : > { %v344_v18 = vpack.c.bf16 %v305_v15, %v304_v14  ;;  %2545 = vmatprep.subr.bf16.mxu1 %v2804_v17  ;;  %v2805_v19 = vld [vmem:[%s3470_s2 + $0x38] sm:$0xff]   ;;  %v306_v20 = vld [vmem:[%s2890_s9 + $0x190] sm:$0xff]  ;;  %v308_v22 = vld [vmem:[%s2890_s9 + $0x1a0] sm:$0xff] }
  0x22   : > { %2546 = vmatpush3.bf16.msra.mxu1 %v2804_v17  ;;  %v307_v21 = vld [vmem:[%s2890_s9 + $0x198] sm:$0xff]  ;;  %v309_v23 = vld [vmem:[%s2890_s9 + $0x1a8] sm:$0xff]  ;;  %v312_v28 = vld [vmem:[%s2890_s9 + $0x1c0] sm:$0xff] }
  0x23   : > { %2547 = vmatprep.subr.bf16.mxu1 %v2805_v19  ;;  %v345_v24 = vpack.c.bf16 %v307_v21, %v306_v20  ;;  %v311_v27 = vld [vmem:[%s2890_s9 + $0x1b8] sm:$0xff]  ;;  %v313_v29 = vld [vmem:[%s2890_s9 + $0x1c8] sm:$0xff]  ;;  %v316_v34 = vld [vmem:[%s2890_s9 + $0x1e0] sm:$0xff] }
  0x24   : > { %2478 = vmatmul.mubr.msk.bf16.gmra.mrb[8].mxu0 %vm367_vm0, %v325_v25  ;;  %v346_v25 = vpack.c.bf16 %v309_v23, %v308_v22  ;;  %v348_v31 = vpack.c.bf16 %v313_v29, %v312_v28  ;;  %v317_v35 = vld [vmem:[%s2890_s9 + $0x1e8] sm:$0xff]  ;;  %v2806_v41 = vld [vmem:[%s3471_s3] sm:$0xff]   ;;  %v2809_v52 = vld [vmem:[%s3471_s3 + $0x18] sm:$0xff]  }
  0x25   : > { %2481 = vmatprep.mubr.msk.bf16.mxu0 %vm367_vm0, %v326_v26  ;;  %v310_v26 = vld [vmem:[%s2890_s9 + $0x1b0] sm:$0xff]  ;;  %v350_v37 = vpack.c.bf16 %v317_v35, %v316_v34  ;;  %2613 = vmatprep.subr.bf16.mxu0 %v2806_v41  ;;  %v2807_v42 = vld [vmem:[%s3471_s3 + $0x8] sm:$0xff]   ;;  %v3015_v43 = vld [vmem:[%s3473_s5] ss:$0 sm:$0xff] }
  0x26   : > { %2548 = vmatpush3.bf16.msra.mxu1 %v2805_v19  ;;  %v347_v30 = vpack.c.bf16 %v311_v27, %v310_v26  ;;  %2614 = vmatpush3.bf16.msra.mxu0 %v2806_v41  ;;  %v2810_v59 = vld [vmem:[%s3471_s3 + $0x20] sm:$0xff]   ;;  %v2813_v20 = vld [vmem:[%s3471_s3 + $0x38] sm:$0xff]  }
  0x27   : > { %2615 = vmatprep.subr.bf16.mxu0 %v2807_v42 }
  0x2a   : > { %2616 = vmatpush3.bf16.msra.mxu0 %v2807_v42 }
  0x2c   : > { %2482 = vmatmul.mubr.msk.bf16.gmra.mrb[12].mxu0 %vm367_vm0, %v327_v32  ;;  %v314_v32 = vld [vmem:[%s2890_s9 + $0x1d0] sm:$0xff] }
  0x2d   : > { %2485 = vmatprep.mubr.msk.bf16.mxu0 %vm367_vm0, %v328_v33  ;;  %v315_v33 = vld [vmem:[%s2890_s9 + $0x1d8] sm:$0xff] }
  0x2e   : > { %v349_v36 = vpack.c.bf16 %v315_v33, %v314_v32 }
  0x34   : > { %2486 = vmatmul.mubr.msk.bf16.gmra.mrb[16].mxu0 %vm367_vm0, %v329_v38  ;;  %v318_v38 = vld [vmem:[%s2890_s9 + $0x1f0] sm:$0xff] }
  0x35   : > { %2489 = vmatprep.mubr.msk.bf16.mxu0 %vm367_vm0, %v330_v39  ;;  %v319_v39 = vld [vmem:[%s2890_s9 + $0x1f8] sm:$0xff] }
  0x36   : > { %v351_v40 = vpack.c.bf16 %v319_v39, %v318_v38 }
  0x3c   : > { %2490 = vmatmul.mubr.msk.bf16.gmra.mrb[20].mxu0 %vm367_vm0, %v331_v44 }
  0x3d   : > { %2493 = vmatprep.mubr.msk.bf16.mxu0 %vm367_vm0, %v332_v45 }
  0x44   : > { %2494 = vmatmul.mubr.msk.bf16.gmra.mrb[24].mxu0 %vm367_vm0, %v333_v50 }
  0x45   : > { %2497 = vmatprep.mubr.msk.bf16.mxu0 %vm367_vm0, %v334_v51  ;;  %v2808_v51 = vld [vmem:[%s3471_s3 + $0x10] sm:$0xff]  }
  0x46   : > { %2617 = vmatprep.subr.bf16.mxu0 %v2808_v51 }
  0x47   : > { %2618 = vmatpush3.bf16.msra.mxu0 %v2808_v51 }
  0x48   : > { %2619 = vmatprep.subr.bf16.mxu0 %v2809_v52 }
  0x4b   : > { %2620 = vmatpush3.bf16.msra.mxu0 %v2809_v52 }
  0x4c   : > { %2498 = vmatmul.mubr.msk.bf16.gmra.mrb[28].mxu0 %vm367_vm0, %v335_v56  ;;  %2621 = vmatprep.subr.bf16.mxu0 %v2810_v59 }
  0x4d   : > { %2501 = vmatprep.mubr.msk.bf16.mxu0 %vm367_vm0, %v336_v57 }
  0x4f   : > { %2622 = vmatpush3.bf16.msra.mxu0 %v2810_v59 }
  0x54   : > { %2502 = vmatmul.mubr.msk.bf16.gmra.mrb[32].mxu0 %vm367_vm0, %v337_v62 }
  0x55   : > { %2505 = vmatprep.mubr.msk.bf16.mxu0 %vm367_vm0, %v338_v63 }
  0x5c   : > { %2506 = vmatmul.mubr.msk.bf16.gmra.mrb[36].mxu0 %vm367_vm0, %v339_v4  ;;  %v2811_v4 = vld [vmem:[%s3471_s3 + $0x28] sm:$0xff]  }
  0x5d   : > { %2509 = vmatprep.mubr.msk.bf16.mxu0 %vm367_vm0, %v340_v5  ;;  %2623 = vmatprep.subr.bf16.mxu0 %v2811_v4 }
  0x5e   : > { %2624 = vmatpush3.bf16.msra.mxu0 %v2811_v4 }
  0x64   : > { %2510 = vmatmul.mubr.msk.bf16.gmra.mrb[40].mxu0 %vm367_vm0, %v341_v10 }
  0x65   : > { %2513 = vmatprep.mubr.msk.bf16.mxu0 %vm367_vm0, %v342_v11  ;;  %v2812_v11 = vld [vmem:[%s3471_s3 + $0x30] sm:$0xff]  }
  0x66   : > { %2625 = vmatprep.subr.bf16.mxu0 %v2812_v11 }
  0x67   : > { %2626 = vmatpush3.bf16.msra.mxu0 %v2812_v11 }
  0x68   : > { %2627 = vmatprep.subr.bf16.mxu0 %v2813_v20 }
  0x6b   : > { %2628 = vmatpush3.bf16.msra.mxu0 %v2813_v20 }
  0x6c   : > { %2514 = vmatmul.mubr.msk.bf16.gmra.mrb[44].mxu0 %vm367_vm0, %v343_v16 }
  0x6d   : > { %2517 = vmatprep.mubr.msk.bf16.mxu0 %vm367_vm0, %v344_v18 }
  0x74   : > { %2518 = vmatmul.mubr.msk.bf16.gmra.mrb[48].mxu0 %vm367_vm0, %v345_v24 }
  0x75   : > { %2521 = vmatprep.mubr.msk.bf16.mxu0 %vm367_vm0, %v346_v25 }
  0x7c   : > { %2522 = vmatmul.mubr.msk.bf16.gmra.mrb[52].mxu0 %vm367_vm0, %v347_v30 }
  0x7d   : > { %2525 = vmatprep.mubr.msk.bf16.mxu0 %vm367_vm0, %v348_v31 }
  0x84   : > { %2526 = vmatmul.mubr.msk.bf16.gmra.mrb[56].mxu0 %vm367_vm0, %v349_v36 }
  0x85   : > { %2529 = vmatprep.mubr.msk.bf16.mxu0 %vm367_vm0, %v350_v37 }
  0x8c   : > { %2530 = vmatmul.mubr.msk.bf16.gmra.mrb[60].mxu0 %vm367_vm0, %v351_v40 }
  0xe7   : > { %v2471_v44 = vpop.f32.mrb[0].mxu0 }
  0xe8   : > { %v507_v45 = vadd.f32 %v2471_v44, %v3015_v43  ;;  %v498_v46 = vpop.f32.mrb[1].mxu0 }
  0xe9   : > { %v499_v47 = vadd.f32 %v3015_v43, %v498_v46  ;;  %v2472_v48 = vpop.f32.mrb[2].mxu0 }
  0xea   : > { %v510_v49 = vadd.f32 %v2472_v48, %v3015_v43  ;;  %v501_v50 = vpop.f32.mrb[3].mxu0  ;;  %v755_v54 = vmax.f32 %v507_v45, 0.0 }
  0xeb   : > { %v502_v53 = vadd.f32 %v3015_v43, %v501_v50  ;;  %v753_v56 = vmax.f32 %v499_v47, 0.0 }
  0xec   : > { %v756_v55 = vmax.f32 %v510_v49, 0.0 }
  0xed   : > { %v754_v57 = vmax.f32 %v502_v53, 0.0 }
  0xee   : > { %v818_v58 = vpack.c.bf16 %v756_v55, %v755_v54 }
  0xef   : > { %v2475_v60 = vpop.f32.mrb[4].mxu0  ;;  %v817_v61 = vpack.c.bf16 %v754_v57, %v753_v56 }
  0xf0   : > { %v523_v62 = vadd.f32 %v2475_v60, %v3015_v43  ;;  %v514_v63 = vpop.f32.mrb[5].mxu0 }
  0xf1   : > { %v515_v0 = vadd.f32 %v3015_v43, %v514_v63  ;;  %v2476_v1 = vpop.f32.mrb[6].mxu0  ;;  %2549 = vmatprep.mubr.bf16.mxu1 %v817_v61 }
  0xf2   : > { %v526_v2 = vadd.f32 %v2476_v1, %v3015_v43  ;;  %v517_v3 = vpop.f32.mrb[7].mxu0  ;;  %2550 = vmatmul.mubr.bf16.vlgmr.msra.gmra.mrb[0].mxu1 %v818_v58  ;;  %v759_v6 = vmax.f32 %v523_v62, 0.0 }
  0xf3   : > { %v518_v5 = vadd.f32 %v3015_v43, %v517_v3  ;;  %v757_v8 = vmax.f32 %v515_v0, 0.0 }
  0xf4   : > { %v760_v7 = vmax.f32 %v526_v2, 0.0 }
  0xf5   : > { %v758_v9 = vmax.f32 %v518_v5, 0.0 }
  0xf6   : > { %v820_v10 = vpack.c.bf16 %v760_v7, %v759_v6 }
  0xf7   : > { %v819_v12 = vpack.c.bf16 %v758_v9, %v757_v8  ;;  %v2479_v13 = vpop.f32.mrb[8].mxu0 }
  0xf8   : > { %v539_v14 = vadd.f32 %v2479_v13, %v3015_v43  ;;  %v530_v15 = vpop.f32.mrb[9].mxu0 }
  0xf9   : > { %v531_v16 = vadd.f32 %v3015_v43, %v530_v15  ;;  %v2480_v17 = vpop.f32.mrb[10].mxu0  ;;  %2553 = vmatprep.mubr.bf16.mxu1 %v819_v12 }
  0xfa   : > { %v542_v18 = vadd.f32 %v2480_v17, %v3015_v43  ;;  %v533_v19 = vpop.f32.mrb[11].mxu0  ;;  %2554 = vmatmul.mubr.bf16.gmra.mrb[4].mxu1 %v820_v10  ;;  %v763_v22 = vmax.f32 %v539_v14, 0.0 }
  0xfb   : > { %v534_v21 = vadd.f32 %v3015_v43, %v533_v19  ;;  %v761_v24 = vmax.f32 %v531_v16, 0.0 }
  0xfc   : > { %v764_v23 = vmax.f32 %v542_v18, 0.0 }
  0xfd   : > { %v762_v25 = vmax.f32 %v534_v21, 0.0 }
  0xfe   : > { %v822_v26 = vpack.c.bf16 %v764_v23, %v763_v22 }
  0xff   : > { %v821_v27 = vpack.c.bf16 %v762_v25, %v761_v24  ;;  %v2483_v28 = vpop.f32.mrb[12].mxu0 }
 0x100   : > { %v555_v29 = vadd.f32 %v2483_v28, %v3015_v43  ;;  %v546_v30 = vpop.f32.mrb[13].mxu0 }
 0x101   : > { %v547_v31 = vadd.f32 %v3015_v43, %v546_v30  ;;  %v2484_v32 = vpop.f32.mrb[14].mxu0  ;;  %2557 = vmatprep.mubr.bf16.mxu1 %v821_v27 }
 0x102   : > { %v558_v33 = vadd.f32 %v2484_v32, %v3015_v43  ;;  %v549_v34 = vpop.f32.mrb[15].mxu0  ;;  %2558 = vmatmul.mubr.bf16.gmra.mrb[8].mxu1 %v822_v26  ;;  %v767_v36 = vmax.f32 %v555_v29, 0.0 }
 0x103   : > { %v550_v35 = vadd.f32 %v3015_v43, %v549_v34  ;;  %v765_v38 = vmax.f32 %v547_v31, 0.0 }
 0x104   : > { %v768_v37 = vmax.f32 %v558_v33, 0.0 }
 0x105   : > { %v766_v39 = vmax.f32 %v550_v35, 0.0 }
 0x106   : > { %v824_v40 = vpack.c.bf16 %v768_v37, %v767_v36 }
 0x107   : > { %v823_v41 = vpack.c.bf16 %v766_v39, %v765_v38  ;;  %v2487_v42 = vpop.f32.mrb[16].mxu0 }
 0x108   : > { %v571_v44 = vadd.f32 %v2487_v42, %v3015_v43  ;;  %v562_v45 = vpop.f32.mrb[17].mxu0 }
 0x109   : > { %v563_v46 = vadd.f32 %v3015_v43, %v562_v45  ;;  %v2488_v47 = vpop.f32.mrb[18].mxu0  ;;  %2561 = vmatprep.mubr.bf16.mxu1 %v823_v41 }
 0x10a   : > { %v574_v48 = vadd.f32 %v2488_v47, %v3015_v43  ;;  %v565_v49 = vpop.f32.mrb[19].mxu0  ;;  %2562 = vmatmul.mubr.bf16.gmra.mrb[12].mxu1 %v824_v40  ;;  %v771_v51 = vmax.f32 %v571_v44, 0.0 }
 0x10b   : > { %v566_v50 = vadd.f32 %v3015_v43, %v565_v49  ;;  %v769_v53 = vmax.f32 %v563_v46, 0.0 }
 0x10c   : > { %v772_v52 = vmax.f32 %v574_v48, 0.0 }
 0x10d   : > { %v770_v54 = vmax.f32 %v566_v50, 0.0 }
 0x10e   : > { %v826_v55 = vpack.c.bf16 %v772_v52, %v771_v51 }
 0x10f   : > { %v825_v56 = vpack.c.bf16 %v770_v54, %v769_v53  ;;  %v2491_v57 = vpop.f32.mrb[20].mxu0 }
 0x110   : > { %v587_v58 = vadd.f32 %v2491_v57, %v3015_v43  ;;  %v578_v59 = vpop.f32.mrb[21].mxu0 }
 0x111   : > { %v579_v60 = vadd.f32 %v3015_v43, %v578_v59  ;;  %v2492_v61 = vpop.f32.mrb[22].mxu0  ;;  %2565 = vmatprep.mubr.bf16.mxu1 %v825_v56 }
 0x112   : > { %v590_v62 = vadd.f32 %v2492_v61, %v3015_v43  ;;  %v581_v63 = vpop.f32.mrb[23].mxu0  ;;  %2566 = vmatmul.mubr.bf16.gmra.mrb[16].mxu1 %v826_v55  ;;  %v775_v1 = vmax.f32 %v587_v58, 0.0 }
 0x113   : > { %v582_v0 = vadd.f32 %v3015_v43, %v581_v63  ;;  %v773_v3 = vmax.f32 %v579_v60, 0.0 }
 0x114   : > { %v776_v2 = vmax.f32 %v590_v62, 0.0 }
 0x115   : > { %v774_v4 = vmax.f32 %v582_v0, 0.0 }
 0x116   : > { %v828_v5 = vpack.c.bf16 %v776_v2, %v775_v1 }
 0x117   : > { %v827_v6 = vpack.c.bf16 %v774_v4, %v773_v3  ;;  %v2495_v7 = vpop.f32.mrb[24].mxu0 }
 0x118   : > { %v603_v8 = vadd.f32 %v2495_v7, %v3015_v43  ;;  %v594_v9 = vpop.f32.mrb[25].mxu0 }
 0x119   : > { %v595_v10 = vadd.f32 %v3015_v43, %v594_v9  ;;  %v2496_v11 = vpop.f32.mrb[26].mxu0  ;;  %2569 = vmatprep.mubr.bf16.mxu1 %v827_v6 }
 0x11a   : > { %v606_v12 = vadd.f32 %v2496_v11, %v3015_v43  ;;  %v597_v13 = vpop.f32.mrb[27].mxu0  ;;  %2570 = vmatmul.mubr.bf16.gmra.mrb[20].mxu1 %v828_v5  ;;  %v779_v15 = vmax.f32 %v603_v8, 0.0 }
 0x11b   : > { %v598_v14 = vadd.f32 %v3015_v43, %v597_v13  ;;  %v777_v17 = vmax.f32 %v595_v10, 0.0 }
 0x11c   : > { %v780_v16 = vmax.f32 %v606_v12, 0.0 }
 0x11d   : > { %v778_v18 = vmax.f32 %v598_v14, 0.0 }
 0x11e   : > { %v830_v19 = vpack.c.bf16 %v780_v16, %v779_v15 }
 0x11f   : > { %v829_v20 = vpack.c.bf16 %v778_v18, %v777_v17  ;;  %v2499_v21 = vpop.f32.mrb[28].mxu0 }
 0x120   : > { %v619_v22 = vadd.f32 %v2499_v21, %v3015_v43  ;;  %v610_v23 = vpop.f32.mrb[29].mxu0 }
 0x121   : > { %v611_v24 = vadd.f32 %v3015_v43, %v610_v23  ;;  %v2500_v25 = vpop.f32.mrb[30].mxu0  ;;  %2573 = vmatprep.mubr.bf16.mxu1 %v829_v20 }
 0x122   : > { %v622_v26 = vadd.f32 %v2500_v25, %v3015_v43  ;;  %v613_v27 = vpop.f32.mrb[31].mxu0  ;;  %2574 = vmatmul.mubr.bf16.gmra.mrb[24].mxu1 %v830_v19  ;;  %v783_v29 = vmax.f32 %v619_v22, 0.0 }
 0x123   : > { %v614_v28 = vadd.f32 %v3015_v43, %v613_v27  ;;  %v781_v31 = vmax.f32 %v611_v24, 0.0 }
 0x124   : > { %v784_v30 = vmax.f32 %v622_v26, 0.0 }
 0x125   : > { %v782_v32 = vmax.f32 %v614_v28, 0.0 }
 0x126   : > { %v832_v33 = vpack.c.bf16 %v784_v30, %v783_v29 }
 0x127   : > { %v831_v34 = vpack.c.bf16 %v782_v32, %v781_v31  ;;  %v2503_v35 = vpop.f32.mrb[32].mxu0 }
 0x128   : > { %v635_v36 = vadd.f32 %v2503_v35, %v3015_v43  ;;  %v626_v37 = vpop.f32.mrb[33].mxu0 }
 0x129   : > { %v627_v38 = vadd.f32 %v3015_v43, %v626_v37  ;;  %v2504_v39 = vpop.f32.mrb[34].mxu0  ;;  %2577 = vmatprep.mubr.bf16.mxu1 %v831_v34 }
 0x12a   : > { %v638_v40 = vadd.f32 %v2504_v39, %v3015_v43  ;;  %v629_v41 = vpop.f32.mrb[35].mxu0  ;;  %2578 = vmatmul.mubr.bf16.gmra.mrb[28].mxu1 %v832_v33  ;;  %v787_v44 = vmax.f32 %v635_v36, 0.0 }
 0x12b   : > { %v630_v42 = vadd.f32 %v3015_v43, %v629_v41  ;;  %v785_v46 = vmax.f32 %v627_v38, 0.0 }
 0x12c   : > { %v788_v45 = vmax.f32 %v638_v40, 0.0 }
 0x12d   : > { %v786_v47 = vmax.f32 %v630_v42, 0.0 }
 0x12e   : > { %v834_v48 = vpack.c.bf16 %v788_v45, %v787_v44 }
 0x12f   : > { %v833_v49 = vpack.c.bf16 %v786_v47, %v785_v46  ;;  %v2507_v50 = vpop.f32.mrb[36].mxu0 }
 0x130   : > { %v651_v51 = vadd.f32 %v2507_v50, %v3015_v43  ;;  %v642_v52 = vpop.f32.mrb[37].mxu0 }
 0x131   : > { %v643_v53 = vadd.f32 %v3015_v43, %v642_v52  ;;  %v2508_v54 = vpop.f32.mrb[38].mxu0  ;;  %2581 = vmatprep.mubr.bf16.mxu1 %v833_v49 }
 0x132   : > { %v654_v55 = vadd.f32 %v2508_v54, %v3015_v43  ;;  %v645_v56 = vpop.f32.mrb[39].mxu0  ;;  %2582 = vmatmul.mubr.bf16.gmra.mrb[32].mxu1 %v834_v48  ;;  %v791_v58 = vmax.f32 %v651_v51, 0.0 }
 0x133   : > { %v646_v57 = vadd.f32 %v3015_v43, %v645_v56  ;;  %v789_v60 = vmax.f32 %v643_v53, 0.0 }
 0x134   : > { %v792_v59 = vmax.f32 %v654_v55, 0.0 }
 0x135   : > { %v790_v61 = vmax.f32 %v646_v57, 0.0 }
 0x136   : > { %v836_v62 = vpack.c.bf16 %v792_v59, %v791_v58 }
 0x137   : > { %v835_v63 = vpack.c.bf16 %v790_v61, %v789_v60  ;;  %v2511_v0 = vpop.f32.mrb[40].mxu0 }
 0x138   : > { %v667_v1 = vadd.f32 %v2511_v0, %v3015_v43  ;;  %v658_v2 = vpop.f32.mrb[41].mxu0 }
 0x139   : > { %v659_v3 = vadd.f32 %v3015_v43, %v658_v2  ;;  %v2512_v4 = vpop.f32.mrb[42].mxu0  ;;  %2585 = vmatprep.mubr.bf16.mxu1 %v835_v63 }
 0x13a   : > { %v670_v5 = vadd.f32 %v2512_v4, %v3015_v43  ;;  %v661_v6 = vpop.f32.mrb[43].mxu0  ;;  %2586 = vmatmul.mubr.bf16.gmra.mrb[36].mxu1 %v836_v62  ;;  %v795_v8 = vmax.f32 %v667_v1, 0.0 }
 0x13b   : > { %v662_v7 = vadd.f32 %v3015_v43, %v661_v6  ;;  %v793_v10 = vmax.f32 %v659_v3, 0.0 }
 0x13c   : > { %v796_v9 = vmax.f32 %v670_v5, 0.0 }
 0x13d   : > { %v794_v11 = vmax.f32 %v662_v7, 0.0 }
 0x13e   : > { %v838_v12 = vpack.c.bf16 %v796_v9, %v795_v8 }
 0x13f   : > { %v837_v13 = vpack.c.bf16 %v794_v11, %v793_v10  ;;  %v2515_v14 = vpop.f32.mrb[44].mxu0 }
 0x140   : > { %v683_v15 = vadd.f32 %v2515_v14, %v3015_v43  ;;  %v674_v16 = vpop.f32.mrb[45].mxu0 }
 0x141   : > { %v675_v17 = vadd.f32 %v3015_v43, %v674_v16  ;;  %v2516_v18 = vpop.f32.mrb[46].mxu0  ;;  %2589 = vmatprep.mubr.bf16.mxu1 %v837_v13 }
 0x142   : > { %v686_v19 = vadd.f32 %v2516_v18, %v3015_v43  ;;  %v677_v20 = vpop.f32.mrb[47].mxu0  ;;  %2590 = vmatmul.mubr.bf16.gmra.mrb[40].mxu1 %v838_v12  ;;  %v799_v22 = vmax.f32 %v683_v15, 0.0 }
 0x143   : > { %v678_v21 = vadd.f32 %v3015_v43, %v677_v20  ;;  %v797_v24 = vmax.f32 %v675_v17, 0.0 }
 0x144   : > { %v800_v23 = vmax.f32 %v686_v19, 0.0 }
 0x145   : > { %v798_v25 = vmax.f32 %v678_v21, 0.0  ;;  %v2814_v21 = vld [vmem:[%s3472_s4] sm:$0xff]  }
 0x146   : > { %v840_v26 = vpack.c.bf16 %v800_v23, %v799_v22  ;;  %2773 = vmatprep.subr.bf16.mxu1 %v2814_v21  ;;  %2693 = vmatprep.subr.bf16.mxu0 %v2814_v21  ;;  %v3105_v22 = vld [vmem:[%s3473_s5 + $0x1] ss:$0 sm:$0xff]  ;;  %v2815_v23 = vld [vmem:[%s3472_s4 + $0x8] sm:$0xff]  }
 0x147   : > { %v839_v27 = vpack.c.bf16 %v798_v25, %v797_v24  ;;  %v2519_v28 = vpop.f32.mrb[48].mxu0  ;;  %2781 = vmatpush3.bf16.msra.mxu1 %v2814_v21 }
 0x148   : > { %v699_v29 = vadd.f32 %v2519_v28, %v3015_v43  ;;  %v690_v30 = vpop.f32.mrb[49].mxu0  ;;  %2774 = vmatprep.subr.bf16.mxu1 %v2815_v23 }
 0x149   : > { %v691_v31 = vadd.f32 %v3015_v43, %v690_v30  ;;  %v2520_v32 = vpop.f32.mrb[50].mxu0  ;;  %2593 = vmatprep.mubr.bf16.mxu1 %v839_v27  ;;  %v2816_v30 = vld [vmem:[%s3472_s4 + $0x10] sm:$0xff]  }
 0x14a   : > { %v702_v33 = vadd.f32 %v2520_v32, %v3015_v43  ;;  %v693_v34 = vpop.f32.mrb[51].mxu0  ;;  %2594 = vmatmul.mubr.bf16.gmra.mrb[44].mxu1 %v840_v26  ;;  %v803_v36 = vmax.f32 %v699_v29, 0.0 }
 0x14b   : > { %v694_v35 = vadd.f32 %v3015_v43, %v693_v34  ;;  %v801_v38 = vmax.f32 %v691_v31, 0.0  ;;  %2782 = vmatpush3.bf16.msra.mxu1 %v2815_v23 }
 0x14c   : > { %v804_v37 = vmax.f32 %v702_v33, 0.0  ;;  %2775 = vmatprep.subr.bf16.mxu1 %v2816_v30 }
 0x14d   : > { %v802_v39 = vmax.f32 %v694_v35, 0.0 }
 0x14e   : > { %v842_v40 = vpack.c.bf16 %v804_v37, %v803_v36  ;;  %v2817_v36 = vld [vmem:[%s3472_s4 + $0x18] sm:$0xff]  }
 0x14f   : > { %v841_v41 = vpack.c.bf16 %v802_v39, %v801_v38  ;;  %v2523_v42 = vpop.f32.mrb[52].mxu0  ;;  %2783 = vmatpush3.bf16.msra.mxu1 %v2816_v30 }
 0x150   : > { %v715_v44 = vadd.f32 %v2523_v42, %v3015_v43  ;;  %v706_v45 = vpop.f32.mrb[53].mxu0  ;;  %2776 = vmatprep.subr.bf16.mxu1 %v2817_v36 }
 0x151   : > { %v707_v46 = vadd.f32 %v3015_v43, %v706_v45  ;;  %v2524_v47 = vpop.f32.mrb[54].mxu0  ;;  %2597 = vmatprep.mubr.bf16.mxu1 %v841_v41  ;;  %v2818_v45 = vld [vmem:[%s3472_s4 + $0x20] sm:$0xff]  }
 0x152   : > { %v718_v48 = vadd.f32 %v2524_v47, %v3015_v43  ;;  %v709_v49 = vpop.f32.mrb[55].mxu0  ;;  %2598 = vmatmul.mubr.bf16.gmra.mrb[48].mxu1 %v842_v40  ;;  %v807_v51 = vmax.f32 %v715_v44, 0.0 }
 0x153   : > { %v710_v50 = vadd.f32 %v3015_v43, %v709_v49  ;;  %v805_v53 = vmax.f32 %v707_v46, 0.0  ;;  %2784 = vmatpush3.bf16.msra.mxu1 %v2817_v36 }
 0x154   : > { %v808_v52 = vmax.f32 %v718_v48, 0.0  ;;  %2777 = vmatprep.subr.bf16.mxu1 %v2818_v45 }
 0x155   : > { %v806_v54 = vmax.f32 %v710_v50, 0.0 }
 0x156   : > { %v844_v55 = vpack.c.bf16 %v808_v52, %v807_v51 }
 0x157   : > { %v843_v56 = vpack.c.bf16 %v806_v54, %v805_v53  ;;  %v2527_v57 = vpop.f32.mrb[56].mxu0  ;;  %v2819_v53 = vld [vmem:[%s3472_s4 + $0x28] sm:$0xff]   ;;  %2785 = vmatpush3.bf16.msra.mxu1 %v2818_v45 }
 0x158   : > { %v731_v58 = vadd.f32 %v2527_v57, %v3015_v43  ;;  %v722_v59 = vpop.f32.mrb[57].mxu0  ;;  %2778 = vmatprep.subr.bf16.mxu1 %v2819_v53 }
 0x159   : > { %v723_v60 = vadd.f32 %v3015_v43, %v722_v59  ;;  %v2528_v61 = vpop.f32.mrb[58].mxu0  ;;  %2601 = vmatprep.mubr.bf16.mxu1 %v843_v56 }
 0x15a   : > { %v734_v62 = vadd.f32 %v2528_v61, %v3015_v43  ;;  %v725_v63 = vpop.f32.mrb[59].mxu0  ;;  %2602 = vmatmul.mubr.bf16.gmra.mrb[52].mxu1 %v844_v55  ;;  %v811_v1 = vmax.f32 %v731_v58, 0.0  ;;  %v2820_v61 = vld [vmem:[%s3472_s4 + $0x30] sm:$0xff]  }
 0x15b   : > { %v726_v0 = vadd.f32 %v3015_v43, %v725_v63  ;;  %v809_v3 = vmax.f32 %v723_v60, 0.0  ;;  %2786 = vmatpush3.bf16.msra.mxu1 %v2819_v53 }
 0x15c   : > { %v812_v2 = vmax.f32 %v734_v62, 0.0  ;;  %2779 = vmatprep.subr.bf16.mxu1 %v2820_v61 }
 0x15d   : > { %v810_v4 = vmax.f32 %v726_v0, 0.0 }
 0x15e   : > { %v846_v5 = vpack.c.bf16 %v812_v2, %v811_v1 }
 0x15f   : > { %v845_v6 = vpack.c.bf16 %v810_v4, %v809_v3  ;;  %v2531_v7 = vpop.f32.mrb[60].mxu0  ;;  %2787 = vmatpush3.bf16.msra.mxu1 %v2820_v61 }
 0x160   : > { %v747_v8 = vadd.f32 %v2531_v7, %v3015_v43  ;;  %v738_v9 = vpop.f32.mrb[61].mxu0 }
 0x161   : > { %v739_v10 = vadd.f32 %v3015_v43, %v738_v9  ;;  %v2532_v11 = vpop.f32.mrb[62].mxu0  ;;  %2605 = vmatprep.mubr.bf16.mxu1 %v845_v6 }
 0x162   : > { %v750_v12 = vadd.f32 %v2532_v11, %v3015_v43  ;;  %v741_v13 = vpop.f32.mrb[63].mxu0  ;;  %2606 = vmatmul.mubr.bf16.gmra.mrb[56].mxu1 %v846_v5  ;;  %v815_v15 = vmax.f32 %v747_v8, 0.0 }
 0x163   : > { %v742_v14 = vadd.f32 %v3015_v43, %v741_v13  ;;  %v813_v17 = vmax.f32 %v739_v10, 0.0 }
 0x164   : > { %v816_v16 = vmax.f32 %v750_v12, 0.0 }
 0x165   : > { %v814_v18 = vmax.f32 %v742_v14, 0.0 }
 0x166   : > { %v848_v19 = vpack.c.bf16 %v816_v16, %v815_v15 }
 0x167   : > { %v847_v20 = vpack.c.bf16 %v814_v18, %v813_v17 }
 0x169   : > { %2609 = vmatprep.mubr.bf16.mxu1 %v847_v20 }
 0x16a   : > { %2610 = vmatmul.mubr.bf16.gmra.mrb[60].mxu1 %v848_v19 }
 0x1c5   : > { %v2551_v43 = vpop.f32.mrb[0].mxu1 }
 0x1c6   : > { %v963_v24 = vadd.f32 %v2551_v43, %v3105_v22  ;;  %v954_v25 = vpop.f32.mrb[1].mxu1 }
 0x1c7   : > { %v955_v26 = vadd.f32 %v3105_v22, %v954_v25  ;;  %v2552_v27 = vpop.f32.mrb[2].mxu1 }
 0x1c8   : > { %v966_v28 = vadd.f32 %v2552_v27, %v3105_v22  ;;  %v957_v29 = vpop.f32.mrb[3].mxu1  ;;  %v1211_v32 = vmax.f32 %v963_v24, 0.0 }
 0x1c9   : > { %v958_v31 = vadd.f32 %v3105_v22, %v957_v29  ;;  %v1209_v34 = vmax.f32 %v955_v26, 0.0 }
 0x1ca   : > { %v1212_v33 = vmax.f32 %v966_v28, 0.0 }
 0x1cb   : > { %v1210_v35 = vmax.f32 %v958_v31, 0.0 }
 0x1cc   : > { %v1274_v37 = vpack.c.bf16 %v1212_v33, %v1211_v32 }
 0x1cd   : > { %v1273_v38 = vpack.c.bf16 %v1210_v35, %v1209_v34  ;;  %v2555_v39 = vpop.f32.mrb[4].mxu1 }
 0x1ce   : > { %v979_v40 = vadd.f32 %v2555_v39, %v3105_v22  ;;  %v970_v41 = vpop.f32.mrb[5].mxu1 }
 0x1cf   : > { %v971_v42 = vadd.f32 %v3105_v22, %v970_v41  ;;  %v2556_v44 = vpop.f32.mrb[6].mxu1  ;;  %2629 = vmatprep.mubr.bf16.mxu0 %v1273_v38 }
 0x1d0   : > { %v982_v46 = vadd.f32 %v2556_v44, %v3105_v22  ;;  %v973_v47 = vpop.f32.mrb[7].mxu1  ;;  %2630 = vmatmul.mubr.bf16.vlgmr.msra.gmra.mrb[64].mxu0 %v1274_v37  ;;  %v1215_v49 = vmax.f32 %v979_v40, 0.0 }
 0x1d1   : > { %v974_v48 = vadd.f32 %v3105_v22, %v973_v47  ;;  %2694 = vmatpush3.bf16.msra.mxu0 %v2814_v21  ;;  %v1213_v51 = vmax.f32 %v971_v42, 0.0 }
 0x1d2   : > { %v1216_v50 = vmax.f32 %v982_v46, 0.0  ;;  %2695 = vmatprep.subr.bf16.mxu0 %v2815_v23 }
 0x1d3   : > { %v1214_v52 = vmax.f32 %v974_v48, 0.0 }
 0x1d4   : > { %v1276_v54 = vpack.c.bf16 %v1216_v50, %v1215_v49 }
 0x1d5   : > { %v1275_v55 = vpack.c.bf16 %v1214_v52, %v1213_v51  ;;  %v2559_v56 = vpop.f32.mrb[8].mxu1  ;;  %2696 = vmatpush3.bf16.msra.mxu0 %v2815_v23 }
 0x1d6   : > { %v995_v57 = vadd.f32 %v2559_v56, %v3105_v22  ;;  %v986_v58 = vpop.f32.mrb[9].mxu1  ;;  %2697 = vmatprep.subr.bf16.mxu0 %v2816_v30 }
 0x1d7   : > { %v987_v59 = vadd.f32 %v3105_v22, %v986_v58  ;;  %v2560_v60 = vpop.f32.mrb[10].mxu1  ;;  %2633 = vmatprep.mubr.bf16.mxu0 %v1275_v55 }
 0x1d8   : > { %v998_v62 = vadd.f32 %v2560_v60, %v3105_v22  ;;  %v989_v63 = vpop.f32.mrb[11].mxu1  ;;  %2634 = vmatmul.mubr.bf16.gmra.mrb[68].mxu0 %v1276_v54  ;;  %v1219_v1 = vmax.f32 %v995_v57, 0.0 }
 0x1d9   : > { %v990_v0 = vadd.f32 %v3105_v22, %v989_v63  ;;  %2698 = vmatpush3.bf16.msra.mxu0 %v2816_v30  ;;  %v1217_v3 = vmax.f32 %v987_v59, 0.0 }
 0x1da   : > { %v1220_v2 = vmax.f32 %v998_v62, 0.0  ;;  %2699 = vmatprep.subr.bf16.mxu0 %v2817_v36 }
 0x1db   : > { %v1218_v4 = vmax.f32 %v990_v0, 0.0 }
 0x1dc   : > { %v1278_v5 = vpack.c.bf16 %v1220_v2, %v1219_v1 }
 0x1dd   : > { %v1277_v6 = vpack.c.bf16 %v1218_v4, %v1217_v3  ;;  %v2563_v7 = vpop.f32.mrb[12].mxu1  ;;  %2700 = vmatpush3.bf16.msra.mxu0 %v2817_v36 }
 0x1de   : > { %v1011_v8 = vadd.f32 %v2563_v7, %v3105_v22  ;;  %v1002_v9 = vpop.f32.mrb[13].mxu1  ;;  %2701 = vmatprep.subr.bf16.mxu0 %v2818_v45 }
 0x1df   : > { %v1003_v10 = vadd.f32 %v3105_v22, %v1002_v9  ;;  %v2564_v11 = vpop.f32.mrb[14].mxu1  ;;  %2637 = vmatprep.mubr.bf16.mxu0 %v1277_v6 }
 0x1e0   : > { %v1014_v12 = vadd.f32 %v2564_v11, %v3105_v22  ;;  %v1005_v13 = vpop.f32.mrb[15].mxu1  ;;  %2638 = vmatmul.mubr.bf16.gmra.mrb[72].mxu0 %v1278_v5  ;;  %v1223_v15 = vmax.f32 %v1011_v8, 0.0 }
 0x1e1   : > { %v1006_v14 = vadd.f32 %v3105_v22, %v1005_v13  ;;  %2702 = vmatpush3.bf16.msra.mxu0 %v2818_v45  ;;  %v1221_v17 = vmax.f32 %v1003_v10, 0.0 }
 0x1e2   : > { %v1224_v16 = vmax.f32 %v1014_v12, 0.0  ;;  %2703 = vmatprep.subr.bf16.mxu0 %v2819_v53 }
 0x1e3   : > { %v1222_v18 = vmax.f32 %v1006_v14, 0.0 }
 0x1e4   : > { %v1280_v19 = vpack.c.bf16 %v1224_v16, %v1223_v15 }
 0x1e5   : > { %v1279_v20 = vpack.c.bf16 %v1222_v18, %v1221_v17  ;;  %v2567_v21 = vpop.f32.mrb[16].mxu1  ;;  %2704 = vmatpush3.bf16.msra.mxu0 %v2819_v53 }
 0x1e6   : > { %v1027_v43 = vadd.f32 %v2567_v21, %v3105_v22  ;;  %v1018_v23 = vpop.f32.mrb[17].mxu1  ;;  %2705 = vmatprep.subr.bf16.mxu0 %v2820_v61 }
 0x1e7   : > { %v1019_v24 = vadd.f32 %v3105_v22, %v1018_v23  ;;  %v2568_v25 = vpop.f32.mrb[18].mxu1  ;;  %2641 = vmatprep.mubr.bf16.mxu0 %v1279_v20 }
 0x1e8   : > { %v1030_v26 = vadd.f32 %v2568_v25, %v3105_v22  ;;  %v1021_v27 = vpop.f32.mrb[19].mxu1  ;;  %2642 = vmatmul.mubr.bf16.gmra.mrb[76].mxu0 %v1280_v19  ;;  %v1227_v29 = vmax.f32 %v1027_v43, 0.0 }
 0x1e9   : > { %v1022_v28 = vadd.f32 %v3105_v22, %v1021_v27  ;;  %2706 = vmatpush3.bf16.msra.mxu0 %v2820_v61  ;;  %v1225_v31 = vmax.f32 %v1019_v24, 0.0 }
 0x1ea   : > { %v1228_v30 = vmax.f32 %v1030_v26, 0.0 }
 0x1eb   : > { %v1226_v32 = vmax.f32 %v1022_v28, 0.0 }
 0x1ec   : > { %v1282_v33 = vpack.c.bf16 %v1228_v30, %v1227_v29 }
 0x1ed   : > { %v1281_v34 = vpack.c.bf16 %v1226_v32, %v1225_v31  ;;  %v2571_v35 = vpop.f32.mrb[20].mxu1 }
 0x1ee   : > { %v1043_v36 = vadd.f32 %v2571_v35, %v3105_v22  ;;  %v1034_v37 = vpop.f32.mrb[21].mxu1 }
 0x1ef   : > { %v1035_v38 = vadd.f32 %v3105_v22, %v1034_v37  ;;  %v2572_v39 = vpop.f32.mrb[22].mxu1  ;;  %2645 = vmatprep.mubr.bf16.mxu0 %v1281_v34 }
 0x1f0   : > { %v1046_v40 = vadd.f32 %v2572_v39, %v3105_v22  ;;  %v1037_v41 = vpop.f32.mrb[23].mxu1  ;;  %2646 = vmatmul.mubr.bf16.gmra.mrb[80].mxu0 %v1282_v33  ;;  %v1231_v44 = vmax.f32 %v1043_v36, 0.0 }
 0x1f1   : > { %v1038_v42 = vadd.f32 %v3105_v22, %v1037_v41  ;;  %v1229_v46 = vmax.f32 %v1035_v38, 0.0 }
 0x1f2   : > { %v1232_v45 = vmax.f32 %v1046_v40, 0.0 }
 0x1f3   : > { %v1230_v47 = vmax.f32 %v1038_v42, 0.0 }
 0x1f4   : > { %v1284_v48 = vpack.c.bf16 %v1232_v45, %v1231_v44 }
 0x1f5   : > { %v1283_v49 = vpack.c.bf16 %v1230_v47, %v1229_v46  ;;  %v2575_v50 = vpop.f32.mrb[24].mxu1 }
 0x1f6   : > { %v1059_v51 = vadd.f32 %v2575_v50, %v3105_v22  ;;  %v1050_v52 = vpop.f32.mrb[25].mxu1 }
 0x1f7   : > { %v1051_v53 = vadd.f32 %v3105_v22, %v1050_v52  ;;  %v2576_v54 = vpop.f32.mrb[26].mxu1  ;;  %2649 = vmatprep.mubr.bf16.mxu0 %v1283_v49 }
 0x1f8   : > { %v1062_v55 = vadd.f32 %v2576_v54, %v3105_v22  ;;  %v1053_v56 = vpop.f32.mrb[27].mxu1  ;;  %2650 = vmatmul.mubr.bf16.gmra.mrb[84].mxu0 %v1284_v48  ;;  %v1235_v58 = vmax.f32 %v1059_v51, 0.0 }
 0x1f9   : > { %v1054_v57 = vadd.f32 %v3105_v22, %v1053_v56  ;;  %v1233_v60 = vmax.f32 %v1051_v53, 0.0 }
 0x1fa   : > { %v1236_v59 = vmax.f32 %v1062_v55, 0.0 }
 0x1fb   : > { %v1234_v61 = vmax.f32 %v1054_v57, 0.0 }
 0x1fc   : > { %v1286_v62 = vpack.c.bf16 %v1236_v59, %v1235_v58 }
 0x1fd   : > { %v1285_v63 = vpack.c.bf16 %v1234_v61, %v1233_v60  ;;  %v2579_v0 = vpop.f32.mrb[28].mxu1 }
 0x1fe   : > { %v1075_v1 = vadd.f32 %v2579_v0, %v3105_v22  ;;  %v1066_v2 = vpop.f32.mrb[29].mxu1 }
 0x1ff   : > { %v1067_v3 = vadd.f32 %v3105_v22, %v1066_v2  ;;  %v2580_v4 = vpop.f32.mrb[30].mxu1  ;;  %2653 = vmatprep.mubr.bf16.mxu0 %v1285_v63 }
 0x200   : > { %v1078_v5 = vadd.f32 %v2580_v4, %v3105_v22  ;;  %v1069_v6 = vpop.f32.mrb[31].mxu1  ;;  %2654 = vmatmul.mubr.bf16.gmra.mrb[88].mxu0 %v1286_v62  ;;  %v1239_v8 = vmax.f32 %v1075_v1, 0.0 }
 0x201   : > { %v1070_v7 = vadd.f32 %v3105_v22, %v1069_v6  ;;  %v1237_v10 = vmax.f32 %v1067_v3, 0.0 }
 0x202   : > { %v1240_v9 = vmax.f32 %v1078_v5, 0.0 }
 0x203   : > { %v1238_v11 = vmax.f32 %v1070_v7, 0.0 }
 0x204   : > { %v1288_v12 = vpack.c.bf16 %v1240_v9, %v1239_v8 }
 0x205   : > { %v1287_v13 = vpack.c.bf16 %v1238_v11, %v1237_v10  ;;  %v2583_v14 = vpop.f32.mrb[32].mxu1 }
 0x206   : > { %v1091_v15 = vadd.f32 %v2583_v14, %v3105_v22  ;;  %v1082_v16 = vpop.f32.mrb[33].mxu1  ;;  %v2821_v14 = vld [vmem:[%s3472_s4 + $0x38] sm:$0xff]  }
 0x207   : > { %v1083_v17 = vadd.f32 %v3105_v22, %v1082_v16  ;;  %v2584_v18 = vpop.f32.mrb[34].mxu1  ;;  %2657 = vmatprep.mubr.bf16.mxu0 %v1287_v13  ;;  %2780 = vmatprep.subr.bf16.mxu1 %v2821_v14 }
 0x208   : > { %v1094_v19 = vadd.f32 %v2584_v18, %v3105_v22  ;;  %v1085_v20 = vpop.f32.mrb[35].mxu1  ;;  %2658 = vmatmul.mubr.bf16.gmra.mrb[92].mxu0 %v1288_v12  ;;  %v1243_v43 = vmax.f32 %v1091_v15, 0.0  ;;  %2707 = vmatprep.subr.bf16.mxu0 %v2821_v14 }
 0x209   : > { %v1086_v21 = vadd.f32 %v3105_v22, %v1085_v20  ;;  %v1241_v24 = vmax.f32 %v1083_v17, 0.0  ;;  %2788 = vmatpush3.bf16.msra.mxu1 %v2821_v14  ;;  %2708 = vmatpush3.bf16.msra.mxu0 %v2821_v14 }
 0x20a   : > { %v1244_v23 = vmax.f32 %v1094_v19, 0.0 }
 0x20b   : > { %v1242_v25 = vmax.f32 %v1086_v21, 0.0 }
 0x20c   : > { %v1290_v26 = vpack.c.bf16 %v1244_v23, %v1243_v43 }
 0x20d   : > { %v1289_v27 = vpack.c.bf16 %v1242_v25, %v1241_v24  ;;  %v2587_v28 = vpop.f32.mrb[36].mxu1 }
 0x20e   : > { %v1107_v29 = vadd.f32 %v2587_v28, %v3105_v22  ;;  %v1098_v30 = vpop.f32.mrb[37].mxu1 }
 0x20f   : > { %v1099_v31 = vadd.f32 %v3105_v22, %v1098_v30  ;;  %v2588_v32 = vpop.f32.mrb[38].mxu1  ;;  %2661 = vmatprep.mubr.bf16.mxu0 %v1289_v27 }
 0x210   : > { %v1110_v33 = vadd.f32 %v2588_v32, %v3105_v22  ;;  %v1101_v34 = vpop.f32.mrb[39].mxu1  ;;  %2662 = vmatmul.mubr.bf16.gmra.mrb[96].mxu0 %v1290_v26  ;;  %v1247_v36 = vmax.f32 %v1107_v29, 0.0 }
 0x211   : > { %v1102_v35 = vadd.f32 %v3105_v22, %v1101_v34  ;;  %v1245_v38 = vmax.f32 %v1099_v31, 0.0 }
 0x212   : > { %v1248_v37 = vmax.f32 %v1110_v33, 0.0 }
 0x213   : > { %v1246_v39 = vmax.f32 %v1102_v35, 0.0 }
 0x214   : > { %v1292_v40 = vpack.c.bf16 %v1248_v37, %v1247_v36 }
 0x215   : > { %v1291_v41 = vpack.c.bf16 %v1246_v39, %v1245_v38  ;;  %v2591_v42 = vpop.f32.mrb[40].mxu1 }
 0x216   : > { %v1123_v44 = vadd.f32 %v2591_v42, %v3105_v22  ;;  %v1114_v45 = vpop.f32.mrb[41].mxu1 }
 0x217   : > { %v1115_v46 = vadd.f32 %v3105_v22, %v1114_v45  ;;  %v2592_v47 = vpop.f32.mrb[42].mxu1  ;;  %2665 = vmatprep.mubr.bf16.mxu0 %v1291_v41 }
 0x218   : > { %v1126_v48 = vadd.f32 %v2592_v47, %v3105_v22  ;;  %v1117_v49 = vpop.f32.mrb[43].mxu1  ;;  %2666 = vmatmul.mubr.bf16.gmra.mrb[100].mxu0 %v1292_v40  ;;  %v1251_v51 = vmax.f32 %v1123_v44, 0.0 }
 0x219   : > { %v1118_v50 = vadd.f32 %v3105_v22, %v1117_v49  ;;  %v1249_v53 = vmax.f32 %v1115_v46, 0.0 }
 0x21a   : > { %v1252_v52 = vmax.f32 %v1126_v48, 0.0 }
 0x21b   : > { %v1250_v54 = vmax.f32 %v1118_v50, 0.0 }
 0x21c   : > { %v1294_v55 = vpack.c.bf16 %v1252_v52, %v1251_v51 }
 0x21d   : > { %v1293_v56 = vpack.c.bf16 %v1250_v54, %v1249_v53  ;;  %v2595_v57 = vpop.f32.mrb[44].mxu1 }
 0x21e   : > { %v1139_v58 = vadd.f32 %v2595_v57, %v3105_v22  ;;  %v1130_v59 = vpop.f32.mrb[45].mxu1 }
 0x21f   : > { %v1131_v60 = vadd.f32 %v3105_v22, %v1130_v59  ;;  %v2596_v61 = vpop.f32.mrb[46].mxu1  ;;  %2669 = vmatprep.mubr.bf16.mxu0 %v1293_v56 }
 0x220   : > { %v1142_v62 = vadd.f32 %v2596_v61, %v3105_v22  ;;  %v1133_v63 = vpop.f32.mrb[47].mxu1  ;;  %2670 = vmatmul.mubr.bf16.gmra.mrb[104].mxu0 %v1294_v55  ;;  %v1255_v1 = vmax.f32 %v1139_v58, 0.0 }
 0x221   : > { %v1134_v0 = vadd.f32 %v3105_v22, %v1133_v63  ;;  %v1253_v3 = vmax.f32 %v1131_v60, 0.0 }
 0x222   : > { %v1256_v2 = vmax.f32 %v1142_v62, 0.0 }
 0x223   : > { %v1254_v4 = vmax.f32 %v1134_v0, 0.0 }
 0x224   : > { %v1296_v5 = vpack.c.bf16 %v1256_v2, %v1255_v1  ;;  %v3195_v1 = vld [vmem:[%s3473_s5 + $0x2] ss:$0 sm:$0xff] }
 0x225   : > { %v1295_v6 = vpack.c.bf16 %v1254_v4, %v1253_v3  ;;  %v2599_v7 = vpop.f32.mrb[48].mxu1 }
 0x226   : > { %v1155_v8 = vadd.f32 %v2599_v7, %v3105_v22  ;;  %v1146_v9 = vpop.f32.mrb[49].mxu1 }
 0x227   : > { %v1147_v10 = vadd.f32 %v3105_v22, %v1146_v9  ;;  %v2600_v11 = vpop.f32.mrb[50].mxu1  ;;  %2673 = vmatprep.mubr.bf16.mxu0 %v1295_v6 }
 0x228   : > { %v1158_v12 = vadd.f32 %v2600_v11, %v3105_v22  ;;  %v1149_v13 = vpop.f32.mrb[51].mxu1  ;;  %2674 = vmatmul.mubr.bf16.gmra.mrb[108].mxu0 %v1296_v5  ;;  %v1259_v16 = vmax.f32 %v1155_v8, 0.0 }
 0x229   : > { %v1150_v15 = vadd.f32 %v3105_v22, %v1149_v13  ;;  %v1257_v18 = vmax.f32 %v1147_v10, 0.0 }
 0x22a   : > { %v1260_v17 = vmax.f32 %v1158_v12, 0.0 }
 0x22b   : > { %v1258_v19 = vmax.f32 %v1150_v15, 0.0 }
 0x22c   : > { %v1298_v20 = vpack.c.bf16 %v1260_v17, %v1259_v16 }
 0x22d   : > { %v1297_v21 = vpack.c.bf16 %v1258_v19, %v1257_v18  ;;  %v2603_v43 = vpop.f32.mrb[52].mxu1 }
 0x22e   : > { %v1171_v23 = vadd.f32 %v2603_v43, %v3105_v22  ;;  %v1162_v24 = vpop.f32.mrb[53].mxu1 }
 0x22f   : > { %v1163_v25 = vadd.f32 %v3105_v22, %v1162_v24  ;;  %v2604_v26 = vpop.f32.mrb[54].mxu1  ;;  %2677 = vmatprep.mubr.bf16.mxu0 %v1297_v21 }
 0x230   : > { %v1174_v27 = vadd.f32 %v2604_v26, %v3105_v22  ;;  %v1165_v28 = vpop.f32.mrb[55].mxu1  ;;  %2678 = vmatmul.mubr.bf16.gmra.mrb[112].mxu0 %v1298_v20  ;;  %v1263_v30 = vmax.f32 %v1171_v23, 0.0 }
 0x231   : > { %v1166_v29 = vadd.f32 %v3105_v22, %v1165_v28  ;;  %v1261_v32 = vmax.f32 %v1163_v25, 0.0 }
 0x232   : > { %v1264_v31 = vmax.f32 %v1174_v27, 0.0 }
 0x233   : > { %v1262_v33 = vmax.f32 %v1166_v29, 0.0 }
 0x234   : > { %v1300_v34 = vpack.c.bf16 %v1264_v31, %v1263_v30 }
 0x235   : > { %v1299_v35 = vpack.c.bf16 %v1262_v33, %v1261_v32  ;;  %v2607_v36 = vpop.f32.mrb[56].mxu1 }
 0x236   : > { %v1187_v37 = vadd.f32 %v2607_v36, %v3105_v22  ;;  %v1178_v38 = vpop.f32.mrb[57].mxu1 }
 0x237   : > { %v1179_v39 = vadd.f32 %v3105_v22, %v1178_v38  ;;  %v2608_v40 = vpop.f32.mrb[58].mxu1  ;;  %2681 = vmatprep.mubr.bf16.mxu0 %v1299_v35 }
 0x238   : > { %v1190_v41 = vadd.f32 %v2608_v40, %v3105_v22  ;;  %v1181_v42 = vpop.f32.mrb[59].mxu1  ;;  %2682 = vmatmul.mubr.bf16.gmra.mrb[116].mxu0 %v1300_v34  ;;  %v1267_v45 = vmax.f32 %v1187_v37, 0.0 }
 0x239   : > { %v1182_v44 = vadd.f32 %v3105_v22, %v1181_v42  ;;  %v1265_v47 = vmax.f32 %v1179_v39, 0.0 }
 0x23a   : > { %v1268_v46 = vmax.f32 %v1190_v41, 0.0 }
 0x23b   : > { %v1266_v48 = vmax.f32 %v1182_v44, 0.0 }
 0x23c   : > { %v1302_v49 = vpack.c.bf16 %v1268_v46, %v1267_v45 }
 0x23d   : > { %v1301_v50 = vpack.c.bf16 %v1266_v48, %v1265_v47  ;;  %v2611_v51 = vpop.f32.mrb[60].mxu1 }
 0x23e   : > { %v1203_v52 = vadd.f32 %v2611_v51, %v3105_v22  ;;  %v1194_v53 = vpop.f32.mrb[61].mxu1 }
 0x23f   : > { %v1195_v54 = vadd.f32 %v3105_v22, %v1194_v53  ;;  %v2612_v55 = vpop.f32.mrb[62].mxu1  ;;  %2685 = vmatprep.mubr.bf16.mxu0 %v1301_v50 }
 0x240   : > { %v1206_v56 = vadd.f32 %v2612_v55, %v3105_v22  ;;  %v1197_v57 = vpop.f32.mrb[63].mxu1  ;;  %2686 = vmatmul.mubr.bf16.gmra.mrb[120].mxu0 %v1302_v49  ;;  %v1271_v59 = vmax.f32 %v1203_v52, 0.0 }
 0x241   : > { %v1198_v58 = vadd.f32 %v3105_v22, %v1197_v57  ;;  %v1269_v61 = vmax.f32 %v1195_v54, 0.0 }
 0x242   : > { %v1272_v60 = vmax.f32 %v1206_v56, 0.0 }
 0x243   : > { %v1270_v62 = vmax.f32 %v1198_v58, 0.0 }
 0x244   : > { %v1304_v63 = vpack.c.bf16 %v1272_v60, %v1271_v59 }
 0x245   : > { %v1303_v0 = vpack.c.bf16 %v1270_v62, %v1269_v61 }
 0x247   : > { %2689 = vmatprep.mubr.bf16.mxu0 %v1303_v0 }
 0x248   : > { %2690 = vmatmul.mubr.bf16.gmra.mrb[124].mxu0 %v1304_v63 }
 0x2a3   : > { %v2631_v2 = vpop.f32.mrb[64].mxu0 }
 0x2a4   : > { %v1419_v3 = vadd.f32 %v2631_v2, %v3195_v1  ;;  %v1410_v4 = vpop.f32.mrb[65].mxu0 }
 0x2a5   : > { %v1411_v5 = vadd.f32 %v3195_v1, %v1410_v4  ;;  %v2632_v22 = vpop.f32.mrb[66].mxu0 }
 0x2a6   : > { %v1422_v6 = vadd.f32 %v2632_v22, %v3195_v1  ;;  %v1413_v7 = vpop.f32.mrb[67].mxu0  ;;  %v1667_v9 = vmax.f32 %v1419_v3, 0.0 }
 0x2a7   : > { %v1414_v8 = vadd.f32 %v3195_v1, %v1413_v7  ;;  %v1665_v11 = vmax.f32 %v1411_v5, 0.0 }
 0x2a8   : > { %v1668_v10 = vmax.f32 %v1422_v6, 0.0 }
 0x2a9   : > { %v1666_v12 = vmax.f32 %v1414_v8, 0.0 }
 0x2aa   : > { %v1730_v13 = vpack.c.bf16 %v1668_v10, %v1667_v9 }
 0x2ab   : > { %v1729_v14 = vpack.c.bf16 %v1666_v12, %v1665_v11  ;;  %v2635_v15 = vpop.f32.mrb[68].mxu0 }
 0x2ac   : > { %v1435_v16 = vadd.f32 %v2635_v15, %v3195_v1  ;;  %v1426_v17 = vpop.f32.mrb[69].mxu0 }
 0x2ad   : > { %v1427_v18 = vadd.f32 %v3195_v1, %v1426_v17  ;;  %v2636_v19 = vpop.f32.mrb[70].mxu0  ;;  %2709 = vmatprep.mubr.bf16.mxu0 %v1729_v14 }
 0x2ae   : > { %v1438_v20 = vadd.f32 %v2636_v19, %v3195_v1  ;;  %v1429_v21 = vpop.f32.mrb[71].mxu0  ;;  %2710 = vmatmul.mubr.bf16.vlgmr.msra.gmra.mrb[128].mxu0 %v1730_v13  ;;  %v1671_v23 = vmax.f32 %v1435_v16, 0.0 }
 0x2af   : > { %v1430_v43 = vadd.f32 %v3195_v1, %v1429_v21  ;;  %v1669_v25 = vmax.f32 %v1427_v18, 0.0 }
 0x2b0   : > { %v1672_v24 = vmax.f32 %v1438_v20, 0.0 }
 0x2b1   : > { %v1670_v26 = vmax.f32 %v1430_v43, 0.0 }
 0x2b2   : > { %v1732_v27 = vpack.c.bf16 %v1672_v24, %v1671_v23 }
 0x2b3   : > { %v1731_v28 = vpack.c.bf16 %v1670_v26, %v1669_v25  ;;  %v2639_v29 = vpop.f32.mrb[72].mxu0 }
 0x2b4   : > { %v1451_v30 = vadd.f32 %v2639_v29, %v3195_v1  ;;  %v1442_v31 = vpop.f32.mrb[73].mxu0 }
 0x2b5   : > { %v1443_v32 = vadd.f32 %v3195_v1, %v1442_v31  ;;  %v2640_v33 = vpop.f32.mrb[74].mxu0  ;;  %2713 = vmatprep.mubr.bf16.mxu1 %v1731_v28 }
 0x2b6   : > { %v1454_v34 = vadd.f32 %v2640_v33, %v3195_v1  ;;  %v1445_v35 = vpop.f32.mrb[75].mxu0  ;;  %2714 = vmatmul.mubr.bf16.vlgmr.msra.gmra.mrb[64].mxu1 %v1732_v27  ;;  %v1675_v37 = vmax.f32 %v1451_v30, 0.0 }
 0x2b7   : > { %v1446_v36 = vadd.f32 %v3195_v1, %v1445_v35  ;;  %v1673_v39 = vmax.f32 %v1443_v32, 0.0 }
 0x2b8   : > { %v1676_v38 = vmax.f32 %v1454_v34, 0.0 }
 0x2b9   : > { %v1674_v40 = vmax.f32 %v1446_v36, 0.0 }
 0x2ba   : > { %v1734_v41 = vpack.c.bf16 %v1676_v38, %v1675_v37 }
 0x2bb   : > { %v1733_v42 = vpack.c.bf16 %v1674_v40, %v1673_v39  ;;  %v2643_v44 = vpop.f32.mrb[76].mxu0 }
 0x2bc   : > { %v1467_v45 = vadd.f32 %v2643_v44, %v3195_v1  ;;  %v1458_v46 = vpop.f32.mrb[77].mxu0 }
 0x2bd   : > { %v1459_v47 = vadd.f32 %v3195_v1, %v1458_v46  ;;  %v2644_v48 = vpop.f32.mrb[78].mxu0  ;;  %2717 = vmatprep.mubr.bf16.mxu1 %v1733_v42 }
 0x2be   : > { %v1470_v49 = vadd.f32 %v2644_v48, %v3195_v1  ;;  %v1461_v50 = vpop.f32.mrb[79].mxu0  ;;  %2718 = vmatmul.mubr.bf16.gmra.mrb[68].mxu1 %v1734_v41  ;;  %v1679_v52 = vmax.f32 %v1467_v45, 0.0 }
 0x2bf   : > { %v1462_v51 = vadd.f32 %v3195_v1, %v1461_v50  ;;  %v1677_v54 = vmax.f32 %v1459_v47, 0.0 }
 0x2c0   : > { %v1680_v53 = vmax.f32 %v1470_v49, 0.0 }
 0x2c1   : > { %v1678_v55 = vmax.f32 %v1462_v51, 0.0 }
 0x2c2   : > { %v1736_v56 = vpack.c.bf16 %v1680_v53, %v1679_v52 }
 0x2c3   : > { %v1735_v57 = vpack.c.bf16 %v1678_v55, %v1677_v54  ;;  %v2647_v58 = vpop.f32.mrb[80].mxu0 }
 0x2c4   : > { %v1483_v59 = vadd.f32 %v2647_v58, %v3195_v1  ;;  %v1474_v60 = vpop.f32.mrb[81].mxu0 }
 0x2c5   : > { %v1475_v61 = vadd.f32 %v3195_v1, %v1474_v60  ;;  %v2648_v62 = vpop.f32.mrb[82].mxu0  ;;  %2721 = vmatprep.mubr.bf16.mxu1 %v1735_v57 }
 0x2c6   : > { %v1486_v63 = vadd.f32 %v2648_v62, %v3195_v1  ;;  %v1477_v0 = vpop.f32.mrb[83].mxu0  ;;  %2722 = vmatmul.mubr.bf16.gmra.mrb[72].mxu1 %v1736_v56  ;;  %v1683_v3 = vmax.f32 %v1483_v59, 0.0 }
 0x2c7   : > { %v1478_v2 = vadd.f32 %v3195_v1, %v1477_v0  ;;  %v1681_v5 = vmax.f32 %v1475_v61, 0.0 }
 0x2c8   : > { %v1684_v4 = vmax.f32 %v1486_v63, 0.0 }
 0x2c9   : > { %v1682_v22 = vmax.f32 %v1478_v2, 0.0 }
 0x2ca   : > { %v1738_v6 = vpack.c.bf16 %v1684_v4, %v1683_v3 }
 0x2cb   : > { %v1737_v7 = vpack.c.bf16 %v1682_v22, %v1681_v5  ;;  %v2651_v8 = vpop.f32.mrb[84].mxu0 }
 0x2cc   : > { %v1499_v9 = vadd.f32 %v2651_v8, %v3195_v1  ;;  %v1490_v10 = vpop.f32.mrb[85].mxu0 }
 0x2cd   : > { %v1491_v11 = vadd.f32 %v3195_v1, %v1490_v10  ;;  %v2652_v12 = vpop.f32.mrb[86].mxu0  ;;  %2725 = vmatprep.mubr.bf16.mxu1 %v1737_v7 }
 0x2ce   : > { %v1502_v13 = vadd.f32 %v2652_v12, %v3195_v1  ;;  %v1493_v14 = vpop.f32.mrb[87].mxu0  ;;  %2726 = vmatmul.mubr.bf16.gmra.mrb[76].mxu1 %v1738_v6  ;;  %v1687_v16 = vmax.f32 %v1499_v9, 0.0 }
 0x2cf   : > { %v1494_v15 = vadd.f32 %v3195_v1, %v1493_v14  ;;  %v1685_v18 = vmax.f32 %v1491_v11, 0.0 }
 0x2d0   : > { %v1688_v17 = vmax.f32 %v1502_v13, 0.0 }
 0x2d1   : > { %v1686_v19 = vmax.f32 %v1494_v15, 0.0 }
 0x2d2   : > { %v1740_v20 = vpack.c.bf16 %v1688_v17, %v1687_v16 }
 0x2d3   : > { %v1739_v21 = vpack.c.bf16 %v1686_v19, %v1685_v18  ;;  %v2655_v43 = vpop.f32.mrb[88].mxu0 }
 0x2d4   : > { %v1515_v23 = vadd.f32 %v2655_v43, %v3195_v1  ;;  %v1506_v24 = vpop.f32.mrb[89].mxu0 }
 0x2d5   : > { %v1507_v25 = vadd.f32 %v3195_v1, %v1506_v24  ;;  %v2656_v26 = vpop.f32.mrb[90].mxu0  ;;  %2729 = vmatprep.mubr.bf16.mxu1 %v1739_v21 }
 0x2d6   : > { %v1518_v27 = vadd.f32 %v2656_v26, %v3195_v1  ;;  %v1509_v28 = vpop.f32.mrb[91].mxu0  ;;  %2730 = vmatmul.mubr.bf16.gmra.mrb[80].mxu1 %v1740_v20  ;;  %v1691_v30 = vmax.f32 %v1515_v23, 0.0 }
 0x2d7   : > { %v1510_v29 = vadd.f32 %v3195_v1, %v1509_v28  ;;  %v1689_v32 = vmax.f32 %v1507_v25, 0.0 }
 0x2d8   : > { %v1692_v31 = vmax.f32 %v1518_v27, 0.0 }
 0x2d9   : > { %v1690_v33 = vmax.f32 %v1510_v29, 0.0 }
 0x2da   : > { %v1742_v34 = vpack.c.bf16 %v1692_v31, %v1691_v30 }
 0x2db   : > { %v1741_v35 = vpack.c.bf16 %v1690_v33, %v1689_v32  ;;  %v2659_v36 = vpop.f32.mrb[92].mxu0 }
 0x2dc   : > { %v1531_v37 = vadd.f32 %v2659_v36, %v3195_v1  ;;  %v1522_v38 = vpop.f32.mrb[93].mxu0 }
 0x2dd   : > { %v1523_v39 = vadd.f32 %v3195_v1, %v1522_v38  ;;  %v2660_v40 = vpop.f32.mrb[94].mxu0  ;;  %2733 = vmatprep.mubr.bf16.mxu1 %v1741_v35 }
 0x2de   : > { %v1534_v41 = vadd.f32 %v2660_v40, %v3195_v1  ;;  %v1525_v42 = vpop.f32.mrb[95].mxu0  ;;  %2734 = vmatmul.mubr.bf16.gmra.mrb[84].mxu1 %v1742_v34  ;;  %v1695_v45 = vmax.f32 %v1531_v37, 0.0 }
 0x2df   : > { %v1526_v44 = vadd.f32 %v3195_v1, %v1525_v42  ;;  %v1693_v47 = vmax.f32 %v1523_v39, 0.0 }
 0x2e0   : > { %v1696_v46 = vmax.f32 %v1534_v41, 0.0 }
 0x2e1   : > { %v1694_v48 = vmax.f32 %v1526_v44, 0.0 }
 0x2e2   : > { %v1744_v49 = vpack.c.bf16 %v1696_v46, %v1695_v45 }
 0x2e3   : > { %v1743_v50 = vpack.c.bf16 %v1694_v48, %v1693_v47  ;;  %v2663_v51 = vpop.f32.mrb[96].mxu0 }
 0x2e4   : > { %v1547_v52 = vadd.f32 %v2663_v51, %v3195_v1  ;;  %v1538_v53 = vpop.f32.mrb[97].mxu0 }
 0x2e5   : > { %v1539_v54 = vadd.f32 %v3195_v1, %v1538_v53  ;;  %v2664_v55 = vpop.f32.mrb[98].mxu0  ;;  %2737 = vmatprep.mubr.bf16.mxu1 %v1743_v50 }
 0x2e6   : > { %v1550_v56 = vadd.f32 %v2664_v55, %v3195_v1  ;;  %v1541_v57 = vpop.f32.mrb[99].mxu0  ;;  %2738 = vmatmul.mubr.bf16.gmra.mrb[88].mxu1 %v1744_v49  ;;  %v1699_v59 = vmax.f32 %v1547_v52, 0.0 }
 0x2e7   : > { %v1542_v58 = vadd.f32 %v3195_v1, %v1541_v57  ;;  %v1697_v61 = vmax.f32 %v1539_v54, 0.0 }
 0x2e8   : > { %v1700_v60 = vmax.f32 %v1550_v56, 0.0 }
 0x2e9   : > { %v1698_v62 = vmax.f32 %v1542_v58, 0.0 }
 0x2ea   : > { %v1746_v63 = vpack.c.bf16 %v1700_v60, %v1699_v59 }
 0x2eb   : > { %v1745_v0 = vpack.c.bf16 %v1698_v62, %v1697_v61  ;;  %v2667_v2 = vpop.f32.mrb[100].mxu0 }
 0x2ec   : > { %v1563_v3 = vadd.f32 %v2667_v2, %v3195_v1  ;;  %v1554_v4 = vpop.f32.mrb[101].mxu0 }
 0x2ed   : > { %v1555_v5 = vadd.f32 %v3195_v1, %v1554_v4  ;;  %v2668_v22 = vpop.f32.mrb[102].mxu0  ;;  %2741 = vmatprep.mubr.bf16.mxu1 %v1745_v0 }
 0x2ee   : > { %v1566_v6 = vadd.f32 %v2668_v22, %v3195_v1  ;;  %v1557_v7 = vpop.f32.mrb[103].mxu0  ;;  %2742 = vmatmul.mubr.bf16.gmra.mrb[92].mxu1 %v1746_v63  ;;  %v1703_v9 = vmax.f32 %v1563_v3, 0.0 }
 0x2ef   : > { %v1558_v8 = vadd.f32 %v3195_v1, %v1557_v7  ;;  %v1701_v11 = vmax.f32 %v1555_v5, 0.0 }
 0x2f0   : > { %v1704_v10 = vmax.f32 %v1566_v6, 0.0 }
 0x2f1   : > { %v1702_v12 = vmax.f32 %v1558_v8, 0.0 }
 0x2f2   : > { %v1748_v13 = vpack.c.bf16 %v1704_v10, %v1703_v9 }
 0x2f3   : > { %v1747_v14 = vpack.c.bf16 %v1702_v12, %v1701_v11  ;;  %v2671_v15 = vpop.f32.mrb[104].mxu0 }
 0x2f4   : > { %v1579_v16 = vadd.f32 %v2671_v15, %v3195_v1  ;;  %v1570_v17 = vpop.f32.mrb[105].mxu0 }
 0x2f5   : > { %v1571_v18 = vadd.f32 %v3195_v1, %v1570_v17  ;;  %v2672_v19 = vpop.f32.mrb[106].mxu0  ;;  %2745 = vmatprep.mubr.bf16.mxu1 %v1747_v14 }
 0x2f6   : > { %v1582_v20 = vadd.f32 %v2672_v19, %v3195_v1  ;;  %v1573_v21 = vpop.f32.mrb[107].mxu0  ;;  %2746 = vmatmul.mubr.bf16.gmra.mrb[96].mxu1 %v1748_v13  ;;  %v1707_v23 = vmax.f32 %v1579_v16, 0.0 }
 0x2f7   : > { %v1574_v43 = vadd.f32 %v3195_v1, %v1573_v21  ;;  %v1705_v25 = vmax.f32 %v1571_v18, 0.0 }
 0x2f8   : > { %v1708_v24 = vmax.f32 %v1582_v20, 0.0 }
 0x2f9   : > { %v1706_v26 = vmax.f32 %v1574_v43, 0.0 }
 0x2fa   : > { %v1750_v27 = vpack.c.bf16 %v1708_v24, %v1707_v23 }
 0x2fb   : > { %v1749_v28 = vpack.c.bf16 %v1706_v26, %v1705_v25  ;;  %v2675_v29 = vpop.f32.mrb[108].mxu0 }
 0x2fc   : > { %v1595_v30 = vadd.f32 %v2675_v29, %v3195_v1  ;;  %v1586_v31 = vpop.f32.mrb[109].mxu0 }
 0x2fd   : > { %v1587_v32 = vadd.f32 %v3195_v1, %v1586_v31  ;;  %v2676_v33 = vpop.f32.mrb[110].mxu0  ;;  %2749 = vmatprep.mubr.bf16.mxu1 %v1749_v28 }
 0x2fe   : > { %v1598_v34 = vadd.f32 %v2676_v33, %v3195_v1  ;;  %v1589_v35 = vpop.f32.mrb[111].mxu0  ;;  %2750 = vmatmul.mubr.bf16.gmra.mrb[100].mxu1 %v1750_v27  ;;  %v1711_v37 = vmax.f32 %v1595_v30, 0.0 }
 0x2ff   : > { %v1590_v36 = vadd.f32 %v3195_v1, %v1589_v35  ;;  %v1709_v39 = vmax.f32 %v1587_v32, 0.0 }
 0x300   : > { %v1712_v38 = vmax.f32 %v1598_v34, 0.0 }
 0x301   : > { %v1710_v40 = vmax.f32 %v1590_v36, 0.0  ;;  %v3264_v36 = vld [vmem:[%s3473_s5 + $0x3] ss:$0 sm:$0xff] }
 0x302   : > { %v1752_v41 = vpack.c.bf16 %v1712_v38, %v1711_v37 }
 0x303   : > { %v1751_v42 = vpack.c.bf16 %v1710_v40, %v1709_v39  ;;  %v2679_v44 = vpop.f32.mrb[112].mxu0 }
 0x304   : > { %v1611_v45 = vadd.f32 %v2679_v44, %v3195_v1  ;;  %v1602_v46 = vpop.f32.mrb[113].mxu0 }
 0x305   : > { %v1603_v47 = vadd.f32 %v3195_v1, %v1602_v46  ;;  %v2680_v48 = vpop.f32.mrb[114].mxu0  ;;  %2753 = vmatprep.mubr.bf16.mxu1 %v1751_v42 }
 0x306   : > { %v1614_v49 = vadd.f32 %v2680_v48, %v3195_v1  ;;  %v1605_v50 = vpop.f32.mrb[115].mxu0  ;;  %2754 = vmatmul.mubr.bf16.gmra.mrb[104].mxu1 %v1752_v41  ;;  %v1715_v52 = vmax.f32 %v1611_v45, 0.0 }
 0x307   : > { %v1606_v51 = vadd.f32 %v3195_v1, %v1605_v50  ;;  %v1713_v54 = vmax.f32 %v1603_v47, 0.0 }
 0x308   : > { %v1716_v53 = vmax.f32 %v1614_v49, 0.0 }
 0x309   : > { %v1714_v55 = vmax.f32 %v1606_v51, 0.0 }
 0x30a   : > { %v1754_v56 = vpack.c.bf16 %v1716_v53, %v1715_v52 }
 0x30b   : > { %v1753_v57 = vpack.c.bf16 %v1714_v55, %v1713_v54  ;;  %v2683_v58 = vpop.f32.mrb[116].mxu0 }
 0x30c   : > { %v1627_v59 = vadd.f32 %v2683_v58, %v3195_v1  ;;  %v1618_v60 = vpop.f32.mrb[117].mxu0 }
 0x30d   : > { %v1619_v61 = vadd.f32 %v3195_v1, %v1618_v60  ;;  %v2684_v62 = vpop.f32.mrb[118].mxu0  ;;  %2757 = vmatprep.mubr.bf16.mxu1 %v1753_v57 }
 0x30e   : > { %v1630_v63 = vadd.f32 %v2684_v62, %v3195_v1  ;;  %v1621_v0 = vpop.f32.mrb[119].mxu0  ;;  %2758 = vmatmul.mubr.bf16.gmra.mrb[108].mxu1 %v1754_v56  ;;  %v1719_v3 = vmax.f32 %v1627_v59, 0.0 }
 0x30f   : > { %v1622_v2 = vadd.f32 %v3195_v1, %v1621_v0  ;;  %v1717_v5 = vmax.f32 %v1619_v61, 0.0 }
 0x310   : > { %v1720_v4 = vmax.f32 %v1630_v63, 0.0 }
 0x311   : > { %v1718_v22 = vmax.f32 %v1622_v2, 0.0 }
 0x312   : > { %v1756_v6 = vpack.c.bf16 %v1720_v4, %v1719_v3 }
 0x313   : > { %v1755_v7 = vpack.c.bf16 %v1718_v22, %v1717_v5  ;;  %v2687_v8 = vpop.f32.mrb[120].mxu0 }
 0x314   : > { %v1643_v9 = vadd.f32 %v2687_v8, %v3195_v1  ;;  %v1634_v10 = vpop.f32.mrb[121].mxu0 }
 0x315   : > { %v1635_v11 = vadd.f32 %v3195_v1, %v1634_v10  ;;  %v2688_v12 = vpop.f32.mrb[122].mxu0  ;;  %2761 = vmatprep.mubr.bf16.mxu1 %v1755_v7 }
 0x316   : > { %v1646_v13 = vadd.f32 %v2688_v12, %v3195_v1  ;;  %v1637_v14 = vpop.f32.mrb[123].mxu0  ;;  %2762 = vmatmul.mubr.bf16.gmra.mrb[112].mxu1 %v1756_v6  ;;  %v1723_v16 = vmax.f32 %v1643_v9, 0.0 }
 0x317   : > { %v1638_v15 = vadd.f32 %v3195_v1, %v1637_v14  ;;  %v1721_v18 = vmax.f32 %v1635_v11, 0.0 }
 0x318   : > { %v1724_v17 = vmax.f32 %v1646_v13, 0.0 }
 0x319   : > { %v1722_v19 = vmax.f32 %v1638_v15, 0.0 }
 0x31a   : > { %v1758_v20 = vpack.c.bf16 %v1724_v17, %v1723_v16 }
 0x31b   : > { %v1757_v21 = vpack.c.bf16 %v1722_v19, %v1721_v18  ;;  %v2691_v43 = vpop.f32.mrb[124].mxu0 }
 0x31c   : > { %v1659_v23 = vadd.f32 %v2691_v43, %v3195_v1  ;;  %v1650_v24 = vpop.f32.mrb[125].mxu0 }
 0x31d   : > { %v1651_v25 = vadd.f32 %v3195_v1, %v1650_v24  ;;  %v2692_v26 = vpop.f32.mrb[126].mxu0  ;;  %2765 = vmatprep.mubr.bf16.mxu1 %v1757_v21 }
 0x31e   : > { %v1662_v27 = vadd.f32 %v2692_v26, %v3195_v1  ;;  %v1653_v28 = vpop.f32.mrb[127].mxu0  ;;  %2766 = vmatmul.mubr.bf16.gmra.mrb[116].mxu1 %v1758_v20  ;;  %v1727_v30 = vmax.f32 %v1659_v23, 0.0 }
 0x31f   : > { %v1654_v29 = vadd.f32 %v3195_v1, %v1653_v28  ;;  %v1725_v32 = vmax.f32 %v1651_v25, 0.0 }
 0x320   : > { %v1728_v31 = vmax.f32 %v1662_v27, 0.0 }
 0x321   : > { %v1726_v33 = vmax.f32 %v1654_v29, 0.0 }
 0x322   : > { %v1760_v34 = vpack.c.bf16 %v1728_v31, %v1727_v30 }
 0x323   : > { %v1759_v35 = vpack.c.bf16 %v1726_v33, %v1725_v32 }
 0x325   : > { %2769 = vmatprep.mubr.bf16.mxu1 %v1759_v35 }
 0x326   : > { %2770 = vmatmul.mubr.bf16.gmra.mrb[120].mxu1 %v1760_v34 }
 0x381   : > { %v2711_v1 = vpop.f32.mrb[128].mxu0 }
 0x382   : > { %v1875_v37 = vadd.f32 %v2711_v1, %v3264_v36  ;;  %v1866_v38 = vpop.f32.mrb[129].mxu0 }
 0x383   : > { %v1867_v39 = vadd.f32 %v3264_v36, %v1866_v38  ;;  %v2712_v40 = vpop.f32.mrb[130].mxu0 }
 0x384   : > { %2124 = vst.msk [vmem:[%s3271_s23 + $0x10] sm:$0xff] %vm2121_vm1, %v1875_v37  ;;  %v1878_v41 = vadd.f32 %v2712_v40, %v3264_v36  ;;  %v1869_v42 = vpop.f32.mrb[131].mxu0 }
 0x385   : > { %2122 = vst.msk [vmem:[%s3271_s23] sm:$0xff] %vm2121_vm1, %v1867_v39  ;;  %v1870_v44 = vadd.f32 %v3264_v36, %v1869_v42 }
 0x386   : > { %2125 = vst.msk [vmem:[%s3271_s23 + $0x18] sm:$0xff] %vm2121_vm1, %v1878_v41 }
 0x387   : > { %2123 = vst.msk [vmem:[%s3271_s23 + $0x8] sm:$0xff] %vm2121_vm1, %v1870_v44 }
 0x389   : > { %v2715_v45 = vpop.f32.mrb[64].mxu1 }
 0x38a   : > { %v1891_v46 = vadd.f32 %v2715_v45, %v3264_v36  ;;  %v1882_v47 = vpop.f32.mrb[65].mxu1 }
 0x38b   : > { %v1883_v48 = vadd.f32 %v3264_v36, %v1882_v47  ;;  %v2716_v49 = vpop.f32.mrb[66].mxu1 }
 0x38c   : > { %2128 = vst.msk [vmem:[%s3271_s23 + $0x30] sm:$0xff] %vm2121_vm1, %v1891_v46  ;;  %v1894_v50 = vadd.f32 %v2716_v49, %v3264_v36  ;;  %v1885_v51 = vpop.f32.mrb[67].mxu1 }
 0x38d   : > { %2126 = vst.msk [vmem:[%s3271_s23 + $0x20] sm:$0xff] %vm2121_vm1, %v1883_v48  ;;  %v1886_v52 = vadd.f32 %v3264_v36, %v1885_v51 }
 0x38e   : > { %2129 = vst.msk [vmem:[%s3271_s23 + $0x38] sm:$0xff] %vm2121_vm1, %v1894_v50 }
 0x38f   : > { %2127 = vst.msk [vmem:[%s3271_s23 + $0x28] sm:$0xff] %vm2121_vm1, %v1886_v52 }
 0x391   : > { %v2719_v53 = vpop.f32.mrb[68].mxu1 }
 0x392   : > { %v1907_v54 = vadd.f32 %v2719_v53, %v3264_v36  ;;  %v1898_v55 = vpop.f32.mrb[69].mxu1 }
 0x393   : > { %v1899_v56 = vadd.f32 %v3264_v36, %v1898_v55  ;;  %v2720_v57 = vpop.f32.mrb[70].mxu1 }
 0x394   : > { %2132 = vst.msk [vmem:[%s3271_s23 + $0x50] sm:$0xff] %vm2121_vm1, %v1907_v54  ;;  %v1910_v58 = vadd.f32 %v2720_v57, %v3264_v36  ;;  %v1901_v59 = vpop.f32.mrb[71].mxu1 }
 0x395   : > { %2130 = vst.msk [vmem:[%s3271_s23 + $0x40] sm:$0xff] %vm2121_vm1, %v1899_v56  ;;  %v1902_v60 = vadd.f32 %v3264_v36, %v1901_v59 }
 0x396   : > { %2133 = vst.msk [vmem:[%s3271_s23 + $0x58] sm:$0xff] %vm2121_vm1, %v1910_v58 }
 0x397   : > { %2131 = vst.msk [vmem:[%s3271_s23 + $0x48] sm:$0xff] %vm2121_vm1, %v1902_v60 }
 0x399   : > { %v2723_v61 = vpop.f32.mrb[72].mxu1 }
 0x39a   : > { %v1923_v62 = vadd.f32 %v2723_v61, %v3264_v36  ;;  %v1914_v63 = vpop.f32.mrb[73].mxu1 }
 0x39b   : > { %v1915_v0 = vadd.f32 %v3264_v36, %v1914_v63  ;;  %v2724_v2 = vpop.f32.mrb[74].mxu1 }
 0x39c   : > { %2136 = vst.msk [vmem:[%s3271_s23 + $0x70] sm:$0xff] %vm2121_vm1, %v1923_v62  ;;  %v1926_v3 = vadd.f32 %v2724_v2, %v3264_v36  ;;  %v1917_v4 = vpop.f32.mrb[75].mxu1 }
 0x39d   : > { %2134 = vst.msk [vmem:[%s3271_s23 + $0x60] sm:$0xff] %vm2121_vm1, %v1915_v0  ;;  %v1918_v5 = vadd.f32 %v3264_v36, %v1917_v4 }
 0x39e   : > { %2137 = vst.msk [vmem:[%s3271_s23 + $0x78] sm:$0xff] %vm2121_vm1, %v1926_v3 }
 0x39f   : > { %2135 = vst.msk [vmem:[%s3271_s23 + $0x68] sm:$0xff] %vm2121_vm1, %v1918_v5 }
 0x3a1   : > { %v2727_v22 = vpop.f32.mrb[76].mxu1 }
 0x3a2   : > { %v1939_v6 = vadd.f32 %v2727_v22, %v3264_v36  ;;  %v1930_v7 = vpop.f32.mrb[77].mxu1 }
 0x3a3   : > { %v1931_v8 = vadd.f32 %v3264_v36, %v1930_v7  ;;  %v2728_v9 = vpop.f32.mrb[78].mxu1 }
 0x3a4   : > { %2140 = vst.msk [vmem:[%s3271_s23 + $0x90] sm:$0xff] %vm2121_vm1, %v1939_v6  ;;  %v1942_v10 = vadd.f32 %v2728_v9, %v3264_v36  ;;  %v1933_v11 = vpop.f32.mrb[79].mxu1 }
 0x3a5   : > { %2138 = vst.msk [vmem:[%s3271_s23 + $0x80] sm:$0xff] %vm2121_vm1, %v1931_v8  ;;  %v1934_v12 = vadd.f32 %v3264_v36, %v1933_v11 }
 0x3a6   : > { %2141 = vst.msk [vmem:[%s3271_s23 + $0x98] sm:$0xff] %vm2121_vm1, %v1942_v10 }
 0x3a7   : > { %2139 = vst.msk [vmem:[%s3271_s23 + $0x88] sm:$0xff] %vm2121_vm1, %v1934_v12 }
 0x3a9   : > { %v2731_v13 = vpop.f32.mrb[80].mxu1 }
 0x3aa   : > { %v1955_v14 = vadd.f32 %v2731_v13, %v3264_v36  ;;  %v1946_v15 = vpop.f32.mrb[81].mxu1 }
 0x3ab   : > { %v1947_v16 = vadd.f32 %v3264_v36, %v1946_v15  ;;  %v2732_v17 = vpop.f32.mrb[82].mxu1 }
 0x3ac   : > { %2144 = vst.msk [vmem:[%s3271_s23 + $0xb0] sm:$0xff] %vm2121_vm1, %v1955_v14  ;;  %v1958_v18 = vadd.f32 %v2732_v17, %v3264_v36  ;;  %v1949_v19 = vpop.f32.mrb[83].mxu1 }
 0x3ad   : > { %2142 = vst.msk [vmem:[%s3271_s23 + $0xa0] sm:$0xff] %vm2121_vm1, %v1947_v16  ;;  %v1950_v20 = vadd.f32 %v3264_v36, %v1949_v19 }
 0x3ae   : > { %2145 = vst.msk [vmem:[%s3271_s23 + $0xb8] sm:$0xff] %vm2121_vm1, %v1958_v18 }
 0x3af   : > { %2143 = vst.msk [vmem:[%s3271_s23 + $0xa8] sm:$0xff] %vm2121_vm1, %v1950_v20 }
 0x3b1   : > { %v2735_v21 = vpop.f32.mrb[84].mxu1 }
 0x3b2   : > { %v1971_v43 = vadd.f32 %v2735_v21, %v3264_v36  ;;  %v1962_v23 = vpop.f32.mrb[85].mxu1 }
 0x3b3   : > { %v1963_v24 = vadd.f32 %v3264_v36, %v1962_v23  ;;  %v2736_v25 = vpop.f32.mrb[86].mxu1 }
 0x3b4   : > { %2148 = vst.msk [vmem:[%s3271_s23 + $0xd0] sm:$0xff] %vm2121_vm1, %v1971_v43  ;;  %v1974_v26 = vadd.f32 %v2736_v25, %v3264_v36  ;;  %v1965_v27 = vpop.f32.mrb[87].mxu1 }
 0x3b5   : > { %2146 = vst.msk [vmem:[%s3271_s23 + $0xc0] sm:$0xff] %vm2121_vm1, %v1963_v24  ;;  %v1966_v28 = vadd.f32 %v3264_v36, %v1965_v27 }
 0x3b6   : > { %2149 = vst.msk [vmem:[%s3271_s23 + $0xd8] sm:$0xff] %vm2121_vm1, %v1974_v26 }
 0x3b7   : > { %2147 = vst.msk [vmem:[%s3271_s23 + $0xc8] sm:$0xff] %vm2121_vm1, %v1966_v28 }
 0x3b9   : > { %v2739_v29 = vpop.f32.mrb[88].mxu1 }
 0x3ba   : > { %v1987_v30 = vadd.f32 %v2739_v29, %v3264_v36  ;;  %v1978_v31 = vpop.f32.mrb[89].mxu1 }
 0x3bb   : > { %v1979_v32 = vadd.f32 %v3264_v36, %v1978_v31  ;;  %v2740_v33 = vpop.f32.mrb[90].mxu1 }
 0x3bc   : > { %2152 = vst.msk [vmem:[%s3271_s23 + $0xf0] sm:$0xff] %vm2121_vm1, %v1987_v30  ;;  %v1990_v34 = vadd.f32 %v2740_v33, %v3264_v36  ;;  %v1981_v35 = vpop.f32.mrb[91].mxu1 }
 0x3bd   : > { %2150 = vst.msk [vmem:[%s3271_s23 + $0xe0] sm:$0xff] %vm2121_vm1, %v1979_v32  ;;  %v1982_v1 = vadd.f32 %v3264_v36, %v1981_v35 }
 0x3be   : > { %2153 = vst.msk [vmem:[%s3271_s23 + $0xf8] sm:$0xff] %vm2121_vm1, %v1990_v34 }
 0x3bf   : > { %2151 = vst.msk [vmem:[%s3271_s23 + $0xe8] sm:$0xff] %vm2121_vm1, %v1982_v1 }
 0x3c1   : > { %v2743_v37 = vpop.f32.mrb[92].mxu1 }
 0x3c2   : > { %v2003_v38 = vadd.f32 %v2743_v37, %v3264_v36  ;;  %v1994_v39 = vpop.f32.mrb[93].mxu1 }
 0x3c3   : > { %v1995_v40 = vadd.f32 %v3264_v36, %v1994_v39  ;;  %v2744_v41 = vpop.f32.mrb[94].mxu1 }
 0x3c4   : > { %2156 = vst.msk [vmem:[%s3271_s23 + $0x110] sm:$0xff] %vm2121_vm1, %v2003_v38  ;;  %v2006_v42 = vadd.f32 %v2744_v41, %v3264_v36  ;;  %v1997_v44 = vpop.f32.mrb[95].mxu1 }
 0x3c5   : > { %2154 = vst.msk [vmem:[%s3271_s23 + $0x100] sm:$0xff] %vm2121_vm1, %v1995_v40  ;;  %v1998_v45 = vadd.f32 %v3264_v36, %v1997_v44 }
 0x3c6   : > { %2157 = vst.msk [vmem:[%s3271_s23 + $0x118] sm:$0xff] %vm2121_vm1, %v2006_v42 }
 0x3c7   : > { %2155 = vst.msk [vmem:[%s3271_s23 + $0x108] sm:$0xff] %vm2121_vm1, %v1998_v45 }
 0x3c9   : > { %v2747_v46 = vpop.f32.mrb[96].mxu1 }
 0x3ca   : > { %v2019_v47 = vadd.f32 %v2747_v46, %v3264_v36  ;;  %v2010_v48 = vpop.f32.mrb[97].mxu1 }
 0x3cb   : > { %v2011_v49 = vadd.f32 %v3264_v36, %v2010_v48  ;;  %v2748_v50 = vpop.f32.mrb[98].mxu1 }
 0x3cc   : > { %2160 = vst.msk [vmem:[%s3271_s23 + $0x130] sm:$0xff] %vm2121_vm1, %v2019_v47  ;;  %v2022_v51 = vadd.f32 %v2748_v50, %v3264_v36  ;;  %v2013_v52 = vpop.f32.mrb[99].mxu1 }
 0x3cd   : > { %2158 = vst.msk [vmem:[%s3271_s23 + $0x120] sm:$0xff] %vm2121_vm1, %v2011_v49  ;;  %v2014_v53 = vadd.f32 %v3264_v36, %v2013_v52 }
 0x3ce   : > { %2161 = vst.msk [vmem:[%s3271_s23 + $0x138] sm:$0xff] %vm2121_vm1, %v2022_v51 }
 0x3cf   : > { %2159 = vst.msk [vmem:[%s3271_s23 + $0x128] sm:$0xff] %vm2121_vm1, %v2014_v53 }
 0x3d1   : > { %v2751_v54 = vpop.f32.mrb[100].mxu1 }
 0x3d2   : > { %v2035_v55 = vadd.f32 %v2751_v54, %v3264_v36  ;;  %v2026_v56 = vpop.f32.mrb[101].mxu1 }
 0x3d3   : > { %v2027_v57 = vadd.f32 %v3264_v36, %v2026_v56  ;;  %v2752_v58 = vpop.f32.mrb[102].mxu1 }
 0x3d4   : > { %2164 = vst.msk [vmem:[%s3271_s23 + $0x150] sm:$0xff] %vm2121_vm1, %v2035_v55  ;;  %v2038_v59 = vadd.f32 %v2752_v58, %v3264_v36  ;;  %v2029_v60 = vpop.f32.mrb[103].mxu1 }
 0x3d5   : > { %2162 = vst.msk [vmem:[%s3271_s23 + $0x140] sm:$0xff] %vm2121_vm1, %v2027_v57  ;;  %v2030_v61 = vadd.f32 %v3264_v36, %v2029_v60 }
 0x3d6   : > { %2165 = vst.msk [vmem:[%s3271_s23 + $0x158] sm:$0xff] %vm2121_vm1, %v2038_v59 }
 0x3d7   : > { %2163 = vst.msk [vmem:[%s3271_s23 + $0x148] sm:$0xff] %vm2121_vm1, %v2030_v61 }
 0x3d9   : > { %v2755_v62 = vpop.f32.mrb[104].mxu1 }
 0x3da   : > { %v2051_v63 = vadd.f32 %v2755_v62, %v3264_v36  ;;  %v2042_v0 = vpop.f32.mrb[105].mxu1 }
 0x3db   : > { %v2043_v2 = vadd.f32 %v3264_v36, %v2042_v0  ;;  %v2756_v3 = vpop.f32.mrb[106].mxu1 }
 0x3dc   : > { %2168 = vst.msk [vmem:[%s3271_s23 + $0x170] sm:$0xff] %vm2121_vm1, %v2051_v63  ;;  %v2054_v4 = vadd.f32 %v2756_v3, %v3264_v36  ;;  %v2045_v5 = vpop.f32.mrb[107].mxu1 }
 0x3dd   : > { %2166 = vst.msk [vmem:[%s3271_s23 + $0x160] sm:$0xff] %vm2121_vm1, %v2043_v2  ;;  %v2046_v22 = vadd.f32 %v3264_v36, %v2045_v5 }
 0x3de   : > { %2169 = vst.msk [vmem:[%s3271_s23 + $0x178] sm:$0xff] %vm2121_vm1, %v2054_v4 }
 0x3df   : > { %2167 = vst.msk [vmem:[%s3271_s23 + $0x168] sm:$0xff] %vm2121_vm1, %v2046_v22 }
 0x3e1   : > { %v2759_v6 = vpop.f32.mrb[108].mxu1 }
 0x3e2   : > { %v2067_v7 = vadd.f32 %v2759_v6, %v3264_v36  ;;  %v2058_v8 = vpop.f32.mrb[109].mxu1 }
 0x3e3   : > { %v2059_v9 = vadd.f32 %v3264_v36, %v2058_v8  ;;  %v2760_v10 = vpop.f32.mrb[110].mxu1 }
 0x3e4   : > { %2172 = vst.msk [vmem:[%s3271_s23 + $0x190] sm:$0xff] %vm2121_vm1, %v2067_v7  ;;  %v2070_v11 = vadd.f32 %v2760_v10, %v3264_v36  ;;  %v2061_v12 = vpop.f32.mrb[111].mxu1 }
 0x3e5   : > { %2170 = vst.msk [vmem:[%s3271_s23 + $0x180] sm:$0xff] %vm2121_vm1, %v2059_v9  ;;  %v2062_v13 = vadd.f32 %v3264_v36, %v2061_v12 }
 0x3e6   : > { %2173 = vst.msk [vmem:[%s3271_s23 + $0x198] sm:$0xff] %vm2121_vm1, %v2070_v11 }
 0x3e7   : > { %2171 = vst.msk [vmem:[%s3271_s23 + $0x188] sm:$0xff] %vm2121_vm1, %v2062_v13 }
 0x3e9   : > { %v2763_v14 = vpop.f32.mrb[112].mxu1 }
 0x3ea   : > { %v2083_v15 = vadd.f32 %v2763_v14, %v3264_v36  ;;  %v2074_v16 = vpop.f32.mrb[113].mxu1 }
 0x3eb   : > { %v2075_v17 = vadd.f32 %v3264_v36, %v2074_v16  ;;  %v2764_v18 = vpop.f32.mrb[114].mxu1 }
 0x3ec   : > { %2176 = vst.msk [vmem:[%s3271_s23 + $0x1b0] sm:$0xff] %vm2121_vm1, %v2083_v15  ;;  %v2086_v19 = vadd.f32 %v2764_v18, %v3264_v36  ;;  %v2077_v20 = vpop.f32.mrb[115].mxu1 }
 0x3ed   : > { %2174 = vst.msk [vmem:[%s3271_s23 + $0x1a0] sm:$0xff] %vm2121_vm1, %v2075_v17  ;;  %v2078_v21 = vadd.f32 %v3264_v36, %v2077_v20 }
 0x3ee   : > { %2177 = vst.msk [vmem:[%s3271_s23 + $0x1b8] sm:$0xff] %vm2121_vm1, %v2086_v19 }
 0x3ef   : > { %2175 = vst.msk [vmem:[%s3271_s23 + $0x1a8] sm:$0xff] %vm2121_vm1, %v2078_v21 }
 0x3f1   : > { %v2767_v43 = vpop.f32.mrb[116].mxu1 }
 0x3f2   : > { %v2099_v23 = vadd.f32 %v2767_v43, %v3264_v36  ;;  %v2090_v24 = vpop.f32.mrb[117].mxu1 }
 0x3f3   : > { %v2091_v25 = vadd.f32 %v3264_v36, %v2090_v24  ;;  %v2768_v26 = vpop.f32.mrb[118].mxu1 }
 0x3f4   : > { %2180 = vst.msk [vmem:[%s3271_s23 + $0x1d0] sm:$0xff] %vm2121_vm1, %v2099_v23  ;;  %v2102_v27 = vadd.f32 %v2768_v26, %v3264_v36  ;;  %v2093_v28 = vpop.f32.mrb[119].mxu1 }
 0x3f5   : > { %2178 = vst.msk [vmem:[%s3271_s23 + $0x1c0] sm:$0xff] %vm2121_vm1, %v2091_v25  ;;  %v2094_v29 = vadd.f32 %v3264_v36, %v2093_v28 }
 0x3f6   : > { %2181 = vst.msk [vmem:[%s3271_s23 + $0x1d8] sm:$0xff] %vm2121_vm1, %v2102_v27 }
 0x3f7   : > { %2179 = vst.msk [vmem:[%s3271_s23 + $0x1c8] sm:$0xff] %vm2121_vm1, %v2094_v29 }
 0x3f9   : > { %v2771_v30 = vpop.f32.mrb[120].mxu1 }
 0x3fa   : > { %v2115_v31 = vadd.f32 %v2771_v30, %v3264_v36  ;;  %v2106_v32 = vpop.f32.mrb[121].mxu1 }
 0x3fb   : > { %v2107_v33 = vadd.f32 %v3264_v36, %v2106_v32  ;;  %v2772_v34 = vpop.f32.mrb[122].mxu1 }
 0x3fc   : > { %2184 = vst.msk [vmem:[%s3271_s23 + $0x1f0] sm:$0xff] %vm2121_vm1, %v2115_v31  ;;  %v2118_v35 = vadd.f32 %v2772_v34, %v3264_v36  ;;  %v2109_v1 = vpop.f32.mrb[123].mxu1 }
 0x3fd   : > { %2182 = vst.msk [vmem:[%s3271_s23 + $0x1e0] sm:$0xff] %vm2121_vm1, %v2107_v33  ;;  %v2110_v37 = vadd.f32 %v3264_v36, %v2109_v1 }
 0x3fe   : > { %2185 = vst.msk [vmem:[%s3271_s23 + $0x1f8] sm:$0xff] %vm2121_vm1, %v2118_v35 }
 0x3ff   : > { %2183 = vst.msk [vmem:[%s3271_s23 + $0x1e8] sm:$0xff] %vm2121_vm1, %v2110_v37 }
 0x400 PF: > { %s16_s21 = sadd.s32 1, %s2828_s21  }
 0x401   : > { %p13_p4 = scmp.ge.s32.totalorder %s16_s21, 4  }
 0x403   :  { %15 = sbr.rel (!%p13_p4) target bundleno = 1 (0x1), region = 74 }

// kernel: tpu_custom_call.1
= control target key start
LH: loop header
LB: loop body
LE: loop exit
PB: predicated region body
PF: predicated region fallthrough
CT: control target
= control target key end

     0   :  { %s2865_s21 = smov 0   ;;  %s3468_s0 = inlined_call_operand.vmem [shape: f32[1024,16], index: 0, kind: input, shape index: {}]   ;;  %s3469_s1 = inlined_call_operand.vmem [shape: bf16[16,128], index: 1, kind: input, shape index: {}]   ;;  %s3470_s2 = inlined_call_operand.vmem [shape: bf16[128,128], index: 2, kind: input, shape index: {}]   ;;  %s3471_s3 = inlined_call_operand.vmem [shape: bf16[128,128], index: 3, kind: input, shape index: {}]   ;;  %s3472_s4 = inlined_call_operand.vmem [shape: bf16[128,8], index: 4, kind: input, shape index: {}]   ;;  %s3473_s5 = inlined_call_operand.vmem [shape: f32[1,392], index: 5, kind: input, shape index: {}]   ;;  %s3474_s6 = inlined_call_operand.vmem [shape: f32[1024,8], index: 6, kind: output, shape index: {}]  }
   0x1 LB: > { %s2242_s22 = sadd.s32 4294967295, %s2828_s21   ;;  %p2246_p0 = scmp.ge.s32.totalorder %s2828_s21, 1  ;;  %s2828_s21 = sphi %s2865_s21, %s16_s21  }
   0x2   : > { %p213_p1 = scmp.lt.s32.totalorder %s2828_s21, 3 }
   0x4   : > { %p214_p2 = pnand %p2246_p0, %p213_p1 }
   0x5   : > { %v2797_v0 = vld [vmem:[%s3469_s1] sm:$0xff] (!%p214_p2)   ;;  %s2247_s25 = sshll.u32 (!%p214_p2), %s2242_s22, 6  ;;  %v2799_v2 = vld [vmem:[%s3470_s2 + $0x8] sm:$0xff] (!%p214_p2)   ;;  %v2800_v3 = vld [vmem:[%s3470_s2 + $0x10] sm:$0xff] (!%p214_p2)   ;;  %vm367_vm0 = vcmask (!%p214_p2), 130048   ;;  %vm2121_vm1 = vcmask (!%p214_p2), 64512  }
   0x6   : > { %217 = sbr.rel (%p214_p2) target bundleno = 1024 (0x400), region = 44  ;;  %p244_p3 = scmp.lt.s32.totalorder (!%p214_p2), %s2247_s25, 127  ;;  %2467 = vmatprep.subr.bf16.mxu0 (!%p214_p2), %v2797_v0  ;;  %v2798_v1 = vld [vmem:[%s3470_s2] sm:$0xff] (!%p214_p2)   ;;  %v2801_v13 = vld [vmem:[%s3470_s2 + $0x18] sm:$0xff] (!%p214_p2)   ;;  %v2803_v31 = vld [vmem:[%s3470_s2 + $0x28] sm:$0xff] (!%p214_p2)  }
   0x7   : > { %2468 = vmatpush3.bf16.msra.mxu0 (!%p214_p2), %v2797_v0  ;;  %2533 = vmatprep.subr.bf16.mxu1 (!%p214_p2), %v2798_v1  ;;  %v2802_v19 = vld [vmem:[%s3470_s2 + $0x20] sm:$0xff] (!%p214_p2)  }
   0x8   : > { %2534 = vmatpush3.bf16.msra.mxu1 (!%p214_p2), %v2798_v1 }
   0x9   : > { %2535 = vmatprep.subr.bf16.mxu1 (!%p214_p2), %v2799_v2 }
   0xc   : > { %2536 = vmatpush3.bf16.msra.mxu1 (!%p214_p2), %v2799_v2 }
   0xd   : > { %s3476_s25 = smov (!%p244_p3, %s2247_s25), 127  ;;  %2537 = vmatprep.subr.bf16.mxu1 %v2800_v3 }
   0xe   : > { %s2248_s30 = sshll.u32 %s3476_s25, 3 }
   0xf   : > { %s2890_s9 = scalar_lea.vmem %s3468_s0, %s2248_s30  ;;  %s3271_s23 = scalar_lea.vmem %s3474_s6, %s2248_s30 }
  0x10   : > { %v256_v4 = vld [vmem:[%s2890_s9] sm:$0xff]  ;;  %v257_v5 = vld [vmem:[%s2890_s9 + $0x8] sm:$0xff]  ;;  %v258_v6 = vld [vmem:[%s2890_s9 + $0x10] sm:$0xff]  ;;  %2538 = vmatpush3.bf16.msra.mxu1 %v2800_v3 }
  0x11   : > { %v320_v7 = vpack.c.bf16 %v257_v5, %v256_v4  ;;  %v259_v8 = vld [vmem:[%s2890_s9 + $0x18] sm:$0xff]  ;;  %v260_v9 = vld [vmem:[%s2890_s9 + $0x20] sm:$0xff]  ;;  %v261_v10 = vld [vmem:[%s2890_s9 + $0x28] sm:$0xff]  ;;  %2539 = vmatprep.subr.bf16.mxu1 %v2801_v13 }
  0x12   : > { %v321_v11 = vpack.c.bf16 %v259_v8, %v258_v6  ;;  %v322_v12 = vpack.c.bf16 %v261_v10, %v260_v9  ;;  %v262_v14 = vld [vmem:[%s2890_s9 + $0x30] sm:$0xff]  ;;  %v263_v15 = vld [vmem:[%s2890_s9 + $0x38] sm:$0xff]  ;;  %v264_v16 = vld [vmem:[%s2890_s9 + $0x40] sm:$0xff] }
  0x13   : > { %2469 = vmatprep.mubr.msk.bf16.mxu0 %vm367_vm0, %v320_v7  ;;  %v265_v17 = vld [vmem:[%s2890_s9 + $0x48] sm:$0xff]  ;;  %v323_v18 = vpack.c.bf16 %v263_v15, %v262_v14  ;;  %v266_v21 = vld [vmem:[%s2890_s9 + $0x50] sm:$0xff]  ;;  %v267_v22 = vld [vmem:[%s2890_s9 + $0x58] sm:$0xff] }
  0x14   : > { %2470 = vmatmul.mubr.msk.bf16.vlgmr.msra.gmra.mrb[0].mxu0 %vm367_vm0, %v321_v11  ;;  %v324_v20 = vpack.c.bf16 %v265_v17, %v264_v16  ;;  %2540 = vmatpush3.bf16.msra.mxu1 %v2801_v13  ;;  %v268_v23 = vld [vmem:[%s2890_s9 + $0x60] sm:$0xff]  ;;  %v269_v24 = vld [vmem:[%s2890_s9 + $0x68] sm:$0xff]  ;;  %v325_v25 = vpack.c.bf16 %v267_v22, %v266_v21  ;;  %v270_v27 = vld [vmem:[%s2890_s9 + $0x70] sm:$0xff] }
  0x15   : > { %2473 = vmatprep.mubr.msk.bf16.mxu0 %vm367_vm0, %v322_v12  ;;  %2541 = vmatprep.subr.bf16.mxu1 %v2802_v19  ;;  %v326_v26 = vpack.c.bf16 %v269_v24, %v268_v23  ;;  %v271_v28 = vld [vmem:[%s2890_s9 + $0x78] sm:$0xff]  ;;  %v272_v29 = vld [vmem:[%s2890_s9 + $0x80] sm:$0xff]  ;;  %v273_v30 = vld [vmem:[%s2890_s9 + $0x88] sm:$0xff] }
  0x16   : > { %v327_v32 = vpack.c.bf16 %v271_v28, %v270_v27  ;;  %v328_v33 = vpack.c.bf16 %v273_v30, %v272_v29  ;;  %v274_v34 = vld [vmem:[%s2890_s9 + $0x90] sm:$0xff]  ;;  %v275_v35 = vld [vmem:[%s2890_s9 + $0x98] sm:$0xff]  ;;  %v276_v36 = vld [vmem:[%s2890_s9 + $0xa0] sm:$0xff] }
  0x17   : > { %v277_v37 = vld [vmem:[%s2890_s9 + $0xa8] sm:$0xff]  ;;  %v329_v38 = vpack.c.bf16 %v275_v35, %v274_v34  ;;  %v278_v40 = vld [vmem:[%s2890_s9 + $0xb0] sm:$0xff]  ;;  %v279_v41 = vld [vmem:[%s2890_s9 + $0xb8] sm:$0xff] }
  0x18   : > { %2542 = vmatpush3.bf16.msra.mxu1 %v2802_v19  ;;  %v330_v39 = vpack.c.bf16 %v277_v37, %v276_v36  ;;  %v280_v42 = vld [vmem:[%s2890_s9 + $0xc0] sm:$0xff]  ;;  %v281_v43 = vld [vmem:[%s2890_s9 + $0xc8] sm:$0xff]  ;;  %v331_v44 = vpack.c.bf16 %v279_v41, %v278_v40  ;;  %v282_v46 = vld [vmem:[%s2890_s9 + $0xd0] sm:$0xff] }
  0x19   : > { %2543 = vmatprep.subr.bf16.mxu1 %v2803_v31  ;;  %v332_v45 = vpack.c.bf16 %v281_v43, %v280_v42  ;;  %v283_v47 = vld [vmem:[%s2890_s9 + $0xd8] sm:$0xff]  ;;  %v284_v48 = vld [vmem:[%s2890_s9 + $0xe0] sm:$0xff]  ;;  %v285_v49 = vld [vmem:[%s2890_s9 + $0xe8] sm:$0xff] }
  0x1a   : > { %v333_v50 = vpack.c.bf16 %v283_v47, %v282_v46  ;;  %v334_v51 = vpack.c.bf16 %v285_v49, %v284_v48  ;;  %v286_v52 = vld [vmem:[%s2890_s9 + $0xf0] sm:$0xff]  ;;  %v287_v53 = vld [vmem:[%s2890_s9 + $0xf8] sm:$0xff]  ;;  %v288_v54 = vld [vmem:[%s2890_s9 + $0x100] sm:$0xff] }
  0x1b   : > { %v289_v55 = vld [vmem:[%s2890_s9 + $0x108] sm:$0xff]  ;;  %v335_v56 = vpack.c.bf16 %v287_v53, %v286_v52  ;;  %v290_v58 = vld [vmem:[%s2890_s9 + $0x110] sm:$0xff]  ;;  %v291_v59 = vld [vmem:[%s2890_s9 + $0x118] sm:$0xff] }
  0x1c   : > { %2474 = vmatmul.mubr.msk.bf16.gmra.mrb[4].mxu0 %vm367_vm0, %v323_v18  ;;  %2544 = vmatpush3.bf16.msra.mxu1 %v2803_v31  ;;  %v336_v57 = vpack.c.bf16 %v289_v55, %v288_v54  ;;  %v292_v60 = vld [vmem:[%s2890_s9 + $0x120] sm:$0xff]  ;;  %v293_v61 = vld [vmem:[%s2890_s9 + $0x128] sm:$0xff]  ;;  %v337_v62 = vpack.c.bf16 %v291_v59, %v290_v58  ;;  %v294_v0 = vld [vmem:[%s2890_s9 + $0x130] sm:$0xff] }
  0x1d   : > { %2477 = vmatprep.mubr.msk.bf16.mxu0 %vm367_vm0, %v324_v20  ;;  %v338_v63 = vpack.c.bf16 %v293_v61, %v292_v60  ;;  %v295_v1 = vld [vmem:[%s2890_s9 + $0x138] sm:$0xff]  ;;  %v296_v2 = vld [vmem:[%s2890_s9 + $0x140] sm:$0xff]  ;;  %v297_v3 = vld [vmem:[%s2890_s9 + $0x148] sm:$0xff] }
  0x1e   : > { %v339_v4 = vpack.c.bf16 %v295_v1, %v294_v0  ;;  %v340_v5 = vpack.c.bf16 %v297_v3, %v296_v2  ;;  %v298_v6 = vld [vmem:[%s2890_s9 + $0x150] sm:$0xff]  ;;  %v299_v7 = vld [vmem:[%s2890_s9 + $0x158] sm:$0xff]  ;;  %v300_v8 = vld [vmem:[%s2890_s9 + $0x160] sm:$0xff] }
  0x1f   : > { %v301_v9 = vld [vmem:[%s2890_s9 + $0x168] sm:$0xff]  ;;  %v341_v10 = vpack.c.bf16 %v299_v7, %v298_v6  ;;  %v302_v12 = vld [vmem:[%s2890_s9 + $0x170] sm:$0xff]  ;;  %v303_v13 = vld [vmem:[%s2890_s9 + $0x178] sm:$0xff] }
  0x20   : > { %v342_v11 = vpack.c.bf16 %v301_v9, %v300_v8  ;;  %v304_v14 = vld [vmem:[%s2890_s9 + $0x180] sm:$0xff]  ;;  %v305_v15 = vld [vmem:[%s2890_s9 + $0x188] sm:$0xff]  ;;  %v343_v16 = vpack.c.bf16 %v303_v13, %v302_v12  ;;  %v2804_v17 = vld [vmem:[%s3470_s2 + $0x30] sm:$0xff]  }
  0x21   : > { %v344_v18 = vpack.c.bf16 %v305_v15, %v304_v14  ;;  %2545 = vmatprep.subr.bf16.mxu1 %v2804_v17  ;;  %v2805_v19 = vld [vmem:[%s3470_s2 + $0x38] sm:$0xff]   ;;  %v306_v20 = vld [vmem:[%s2890_s9 + $0x190] sm:$0xff]  ;;  %v308_v22 = vld [vmem:[%s2890_s9 + $0x1a0] sm:$0xff] }
  0x22   : > { %2546 = vmatpush3.bf16.msra.mxu1 %v2804_v17  ;;  %v307_v21 = vld [vmem:[%s2890_s9 + $0x198] sm:$0xff]  ;;  %v309_v23 = vld [vmem:[%s2890_s9 + $0x1a8] sm:$0xff]  ;;  %v312_v28 = vld [vmem:[%s2890_s9 + $0x1c0] sm:$0xff] }
  0x23   : > { %2547 = vmatprep.subr.bf16.mxu1 %v2805_v19  ;;  %v345_v24 = vpack.c.bf16 %v307_v21, %v306_v20  ;;  %v311_v27 = vld [vmem:[%s2890_s9 + $0x1b8] sm:$0xff]  ;;  %v313_v29 = vld [vmem:[%s2890_s9 + $0x1c8] sm:$0xff]  ;;  %v316_v34 = vld [vmem:[%s2890_s9 + $0x1e0] sm:$0xff] }
  0x24   : > { %2478 = vmatmul.mubr.msk.bf16.gmra.mrb[8].mxu0 %vm367_vm0, %v325_v25  ;;  %v346_v25 = vpack.c.bf16 %v309_v23, %v308_v22  ;;  %v348_v31 = vpack.c.bf16 %v313_v29, %v312_v28  ;;  %v317_v35 = vld [vmem:[%s2890_s9 + $0x1e8] sm:$0xff]  ;;  %v2806_v41 = vld [vmem:[%s3471_s3] sm:$0xff]   ;;  %v2809_v52 = vld [vmem:[%s3471_s3 + $0x18] sm:$0xff]  }
  0x25   : > { %2481 = vmatprep.mubr.msk.bf16.mxu0 %vm367_vm0, %v326_v26  ;;  %v310_v26 = vld [vmem:[%s2890_s9 + $0x1b0] sm:$0xff]  ;;  %v350_v37 = vpack.c.bf16 %v317_v35, %v316_v34  ;;  %2613 = vmatprep.subr.bf16.mxu0 %v2806_v41  ;;  %v2807_v42 = vld [vmem:[%s3471_s3 + $0x8] sm:$0xff]   ;;  %v3015_v43 = vld [vmem:[%s3473_s5] ss:$0 sm:$0xff] }
  0x26   : > { %2548 = vmatpush3.bf16.msra.mxu1 %v2805_v19  ;;  %v347_v30 = vpack.c.bf16 %v311_v27, %v310_v26  ;;  %2614 = vmatpush3.bf16.msra.mxu0 %v2806_v41  ;;  %v2810_v59 = vld [vmem:[%s3471_s3 + $0x20] sm:$0xff]   ;;  %v2813_v20 = vld [vmem:[%s3471_s3 + $0x38] sm:$0xff]  }
  0x27   : > { %2615 = vmatprep.subr.bf16.mxu0 %v2807_v42 }
  0x2a   : > { %2616 = vmatpush3.bf16.msra.mxu0 %v2807_v42 }
  0x2c   : > { %2482 = vmatmul.mubr.msk.bf16.gmra.mrb[12].mxu0 %vm367_vm0, %v327_v32  ;;  %v314_v32 = vld [vmem:[%s2890_s9 + $0x1d0] sm:$0xff] }
  0x2d   : > { %2485 = vmatprep.mubr.msk.bf16.mxu0 %vm367_vm0, %v328_v33  ;;  %v315_v33 = vld [vmem:[%s2890_s9 + $0x1d8] sm:$0xff] }
  0x2e   : > { %v349_v36 = vpack.c.bf16 %v315_v33, %v314_v32 }
  0x34   : > { %2486 = vmatmul.mubr.msk.bf16.gmra.mrb[16].mxu0 %vm367_vm0, %v329_v38  ;;  %v318_v38 = vld [vmem:[%s2890_s9 + $0x1f0] sm:$0xff] }
  0x35   : > { %2489 = vmatprep.mubr.msk.bf16.mxu0 %vm367_vm0, %v330_v39  ;;  %v319_v39 = vld [vmem:[%s2890_s9 + $0x1f8] sm:$0xff] }
  0x36   : > { %v351_v40 = vpack.c.bf16 %v319_v39, %v318_v38 }
  0x3c   : > { %2490 = vmatmul.mubr.msk.bf16.gmra.mrb[20].mxu0 %vm367_vm0, %v331_v44 }
  0x3d   : > { %2493 = vmatprep.mubr.msk.bf16.mxu0 %vm367_vm0, %v332_v45 }
  0x44   : > { %2494 = vmatmul.mubr.msk.bf16.gmra.mrb[24].mxu0 %vm367_vm0, %v333_v50 }
  0x45   : > { %2497 = vmatprep.mubr.msk.bf16.mxu0 %vm367_vm0, %v334_v51  ;;  %v2808_v51 = vld [vmem:[%s3471_s3 + $0x10] sm:$0xff]  }
  0x46   : > { %2617 = vmatprep.subr.bf16.mxu0 %v2808_v51 }
  0x47   : > { %2618 = vmatpush3.bf16.msra.mxu0 %v2808_v51 }
  0x48   : > { %2619 = vmatprep.subr.bf16.mxu0 %v2809_v52 }
  0x4b   : > { %2620 = vmatpush3.bf16.msra.mxu0 %v2809_v52 }
  0x4c   : > { %2498 = vmatmul.mubr.msk.bf16.gmra.mrb[28].mxu0 %vm367_vm0, %v335_v56  ;;  %2621 = vmatprep.subr.bf16.mxu0 %v2810_v59 }
  0x4d   : > { %2501 = vmatprep.mubr.msk.bf16.mxu0 %vm367_vm0, %v336_v57 }
  0x4f   : > { %2622 = vmatpush3.bf16.msra.mxu0 %v2810_v59 }
  0x54   : > { %2502 = vmatmul.mubr.msk.bf16.gmra.mrb[32].mxu0 %vm367_vm0, %v337_v62 }
  0x55   : > { %2505 = vmatprep.mubr.msk.bf16.mxu0 %vm367_vm0, %v338_v63 }
  0x5c   : > { %2506 = vmatmul.mubr.msk.bf16.gmra.mrb[36].mxu0 %vm367_vm0, %v339_v4  ;;  %v2811_v4 = vld [vmem:[%s3471_s3 + $0x28] sm:$0xff]  }
  0x5d   : > { %2509 = vmatprep.mubr.msk.bf16.mxu0 %vm367_vm0, %v340_v5  ;;  %2623 = vmatprep.subr.bf16.mxu0 %v2811_v4 }
  0x5e   : > { %2624 = vmatpush3.bf16.msra.mxu0 %v2811_v4 }
  0x64   : > { %2510 = vmatmul.mubr.msk.bf16.gmra.mrb[40].mxu0 %vm367_vm0, %v341_v10 }
  0x65   : > { %2513 = vmatprep.mubr.msk.bf16.mxu0 %vm367_vm0, %v342_v11  ;;  %v2812_v11 = vld [vmem:[%s3471_s3 + $0x30] sm:$0xff]  }
  0x66   : > { %2625 = vmatprep.subr.bf16.mxu0 %v2812_v11 }
  0x67   : > { %2626 = vmatpush3.bf16.msra.mxu0 %v2812_v11 }
  0x68   : > { %2627 = vmatprep.subr.bf16.mxu0 %v2813_v20 }
  0x6b   : > { %2628 = vmatpush3.bf16.msra.mxu0 %v2813_v20 }
  0x6c   : > { %2514 = vmatmul.mubr.msk.bf16.gmra.mrb[44].mxu0 %vm367_vm0, %v343_v16 }
  0x6d   : > { %2517 = vmatprep.mubr.msk.bf16.mxu0 %vm367_vm0, %v344_v18 }
  0x74   : > { %2518 = vmatmul.mubr.msk.bf16.gmra.mrb[48].mxu0 %vm367_vm0, %v345_v24 }
  0x75   : > { %2521 = vmatprep.mubr.msk.bf16.mxu0 %vm367_vm0, %v346_v25 }
  0x7c   : > { %2522 = vmatmul.mubr.msk.bf16.gmra.mrb[52].mxu0 %vm367_vm0, %v347_v30 }
  0x7d   : > { %2525 = vmatprep.mubr.msk.bf16.mxu0 %vm367_vm0, %v348_v31 }
  0x84   : > { %2526 = vmatmul.mubr.msk.bf16.gmra.mrb[56].mxu0 %vm367_vm0, %v349_v36 }
  0x85   : > { %2529 = vmatprep.mubr.msk.bf16.mxu0 %vm367_vm0, %v350_v37 }
  0x8c   : > { %2530 = vmatmul.mubr.msk.bf16.gmra.mrb[60].mxu0 %vm367_vm0, %v351_v40 }
  0xe7   : > { %v2471_v44 = vpop.f32.mrb[0].mxu0 }
  0xe8   : > { %v507_v45 = vadd.f32 %v2471_v44, %v3015_v43  ;;  %v498_v46 = vpop.f32.mrb[1].mxu0 }
  0xe9   : > { %v499_v47 = vadd.f32 %v3015_v43, %v498_v46  ;;  %v2472_v48 = vpop.f32.mrb[2].mxu0 }
  0xea   : > { %v510_v49 = vadd.f32 %v2472_v48, %v3015_v43  ;;  %v501_v50 = vpop.f32.mrb[3].mxu0  ;;  %v755_v54 = vmax.f32 %v507_v45, 0.0 }
  0xeb   : > { %v502_v53 = vadd.f32 %v3015_v43, %v501_v50  ;;  %v753_v56 = vmax.f32 %v499_v47, 0.0 }
  0xec   : > { %v756_v55 = vmax.f32 %v510_v49, 0.0 }
  0xed   : > { %v754_v57 = vmax.f32 %v502_v53, 0.0 }
  0xee   : > { %v818_v58 = vpack.c.bf16 %v756_v55, %v755_v54 }
  0xef   : > { %v2475_v60 = vpop.f32.mrb[4].mxu0  ;;  %v817_v61 = vpack.c.bf16 %v754_v57, %v753_v56 }
  0xf0   : > { %v523_v62 = vadd.f32 %v2475_v60, %v3015_v43  ;;  %v514_v63 = vpop.f32.mrb[5].mxu0 }
  0xf1   : > { %v515_v0 = vadd.f32 %v3015_v43, %v514_v63  ;;  %v2476_v1 = vpop.f32.mrb[6].mxu0  ;;  %2549 = vmatprep.mubr.bf16.mxu1 %v817_v61 }
  0xf2   : > { %v526_v2 = vadd.f32 %v2476_v1, %v3015_v43  ;;  %v517_v3 = vpop.f32.mrb[7].mxu0  ;;  %2550 = vmatmul.mubr.bf16.vlgmr.msra.gmra.mrb[0].mxu1 %v818_v58  ;;  %v759_v6 = vmax.f32 %v523_v62, 0.0 }
  0xf3   : > { %v518_v5 = vadd.f32 %v3015_v43, %v517_v3  ;;  %v757_v8 = vmax.f32 %v515_v0, 0.0 }
  0xf4   : > { %v760_v7 = vmax.f32 %v526_v2, 0.0 }
  0xf5   : > { %v758_v9 = vmax.f32 %v518_v5, 0.0 }
  0xf6   : > { %v820_v10 = vpack.c.bf16 %v760_v7, %v759_v6 }
  0xf7   : > { %v819_v12 = vpack.c.bf16 %v758_v9, %v757_v8  ;;  %v2479_v13 = vpop.f32.mrb[8].mxu0 }
  0xf8   : > { %v539_v14 = vadd.f32 %v2479_v13, %v3015_v43  ;;  %v530_v15 = vpop.f32.mrb[9].mxu0 }
  0xf9   : > { %v531_v16 = vadd.f32 %v3015_v43, %v530_v15  ;;  %v2480_v17 = vpop.f32.mrb[10].mxu0  ;;  %2553 = vmatprep.mubr.bf16.mxu1 %v819_v12 }
  0xfa   : > { %v542_v18 = vadd.f32 %v2480_v17, %v3015_v43  ;;  %v533_v19 = vpop.f32.mrb[11].mxu0  ;;  %2554 = vmatmul.mubr.bf16.gmra.mrb[4].mxu1 %v820_v10  ;;  %v763_v22 = vmax.f32 %v539_v14, 0.0 }
  0xfb   : > { %v534_v21 = vadd.f32 %v3015_v43, %v533_v19  ;;  %v761_v24 = vmax.f32 %v531_v16, 0.0 }
  0xfc   : > { %v764_v23 = vmax.f32 %v542_v18, 0.0 }
  0xfd   : > { %v762_v25 = vmax.f32 %v534_v21, 0.0 }
  0xfe   : > { %v822_v26 = vpack.c.bf16 %v764_v23, %v763_v22 }
  0xff   : > { %v821_v27 = vpack.c.bf16 %v762_v25, %v761_v24  ;;  %v2483_v28 = vpop.f32.mrb[12].mxu0 }
 0x100   : > { %v555_v29 = vadd.f32 %v2483_v28, %v3015_v43  ;;  %v546_v30 = vpop.f32.mrb[13].mxu0 }
 0x101   : > { %v547_v31 = vadd.f32 %v3015_v43, %v546_v30  ;;  %v2484_v32 = vpop.f32.mrb[14].mxu0  ;;  %2557 = vmatprep.mubr.bf16.mxu1 %v821_v27 }
 0x102   : > { %v558_v33 = vadd.f32 %v2484_v32, %v3015_v43  ;;  %v549_v34 = vpop.f32.mrb[15].mxu0  ;;  %2558 = vmatmul.mubr.bf16.gmra.mrb[8].mxu1 %v822_v26  ;;  %v767_v36 = vmax.f32 %v555_v29, 0.0 }
 0x103   : > { %v550_v35 = vadd.f32 %v3015_v43, %v549_v34  ;;  %v765_v38 = vmax.f32 %v547_v31, 0.0 }
 0x104   : > { %v768_v37 = vmax.f32 %v558_v33, 0.0 }
 0x105   : > { %v766_v39 = vmax.f32 %v550_v35, 0.0 }
 0x106   : > { %v824_v40 = vpack.c.bf16 %v768_v37, %v767_v36 }
 0x107   : > { %v823_v41 = vpack.c.bf16 %v766_v39, %v765_v38  ;;  %v2487_v42 = vpop.f32.mrb[16].mxu0 }
 0x108   : > { %v571_v44 = vadd.f32 %v2487_v42, %v3015_v43  ;;  %v562_v45 = vpop.f32.mrb[17].mxu0 }
 0x109   : > { %v563_v46 = vadd.f32 %v3015_v43, %v562_v45  ;;  %v2488_v47 = vpop.f32.mrb[18].mxu0  ;;  %2561 = vmatprep.mubr.bf16.mxu1 %v823_v41 }
 0x10a   : > { %v574_v48 = vadd.f32 %v2488_v47, %v3015_v43  ;;  %v565_v49 = vpop.f32.mrb[19].mxu0  ;;  %2562 = vmatmul.mubr.bf16.gmra.mrb[12].mxu1 %v824_v40  ;;  %v771_v51 = vmax.f32 %v571_v44, 0.0 }
 0x10b   : > { %v566_v50 = vadd.f32 %v3015_v43, %v565_v49  ;;  %v769_v53 = vmax.f32 %v563_v46, 0.0 }
 0x10c   : > { %v772_v52 = vmax.f32 %v574_v48, 0.0 }
 0x10d   : > { %v770_v54 = vmax.f32 %v566_v50, 0.0 }
 0x10e   : > { %v826_v55 = vpack.c.bf16 %v772_v52, %v771_v51 }
 0x10f   : > { %v825_v56 = vpack.c.bf16 %v770_v54, %v769_v53  ;;  %v2491_v57 = vpop.f32.mrb[20].mxu0 }
 0x110   : > { %v587_v58 = vadd.f32 %v2491_v57, %v3015_v43  ;;  %v578_v59 = vpop.f32.mrb[21].mxu0 }
 0x111   : > { %v579_v60 = vadd.f32 %v3015_v43, %v578_v59  ;;  %v2492_v61 = vpop.f32.mrb[22].mxu0  ;;  %2565 = vmatprep.mubr.bf16.mxu1 %v825_v56 }
 0x112   : > { %v590_v62 = vadd.f32 %v2492_v61, %v3015_v43  ;;  %v581_v63 = vpop.f32.mrb[23].mxu0  ;;  %2566 = vmatmul.mubr.bf16.gmra.mrb[16].mxu1 %v826_v55  ;;  %v775_v1 = vmax.f32 %v587_v58, 0.0 }
 0x113   : > { %v582_v0 = vadd.f32 %v3015_v43, %v581_v63  ;;  %v773_v3 = vmax.f32 %v579_v60, 0.0 }
 0x114   : > { %v776_v2 = vmax.f32 %v590_v62, 0.0 }
 0x115   : > { %v774_v4 = vmax.f32 %v582_v0, 0.0 }
 0x116   : > { %v828_v5 = vpack.c.bf16 %v776_v2, %v775_v1 }
 0x117   : > { %v827_v6 = vpack.c.bf16 %v774_v4, %v773_v3  ;;  %v2495_v7 = vpop.f32.mrb[24].mxu0 }
 0x118   : > { %v603_v8 = vadd.f32 %v2495_v7, %v3015_v43  ;;  %v594_v9 = vpop.f32.mrb[25].mxu0 }
 0x119   : > { %v595_v10 = vadd.f32 %v3015_v43, %v594_v9  ;;  %v2496_v11 = vpop.f32.mrb[26].mxu0  ;;  %2569 = vmatprep.mubr.bf16.mxu1 %v827_v6 }
 0x11a   : > { %v606_v12 = vadd.f32 %v2496_v11, %v3015_v43  ;;  %v597_v13 = vpop.f32.mrb[27].mxu0  ;;  %2570 = vmatmul.mubr.bf16.gmra.mrb[20].mxu1 %v828_v5  ;;  %v779_v15 = vmax.f32 %v603_v8, 0.0 }
 0x11b   : > { %v598_v14 = vadd.f32 %v3015_v43, %v597_v13  ;;  %v777_v17 = vmax.f32 %v595_v10, 0.0 }
 0x11c   : > { %v780_v16 = vmax.f32 %v606_v12, 0.0 }
 0x11d   : > { %v778_v18 = vmax.f32 %v598_v14, 0.0 }
 0x11e   : > { %v830_v19 = vpack.c.bf16 %v780_v16, %v779_v15 }
 0x11f   : > { %v829_v20 = vpack.c.bf16 %v778_v18, %v777_v17  ;;  %v2499_v21 = vpop.f32.mrb[28].mxu0 }
 0x120   : > { %v619_v22 = vadd.f32 %v2499_v21, %v3015_v43  ;;  %v610_v23 = vpop.f32.mrb[29].mxu0 }
 0x121   : > { %v611_v24 = vadd.f32 %v3015_v43, %v610_v23  ;;  %v2500_v25 = vpop.f32.mrb[30].mxu0  ;;  %2573 = vmatprep.mubr.bf16.mxu1 %v829_v20 }
 0x122   : > { %v622_v26 = vadd.f32 %v2500_v25, %v3015_v43  ;;  %v613_v27 = vpop.f32.mrb[31].mxu0  ;;  %2574 = vmatmul.mubr.bf16.gmra.mrb[24].mxu1 %v830_v19  ;;  %v783_v29 = vmax.f32 %v619_v22, 0.0 }
 0x123   : > { %v614_v28 = vadd.f32 %v3015_v43, %v613_v27  ;;  %v781_v31 = vmax.f32 %v611_v24, 0.0 }
 0x124   : > { %v784_v30 = vmax.f32 %v622_v26, 0.0 }
 0x125   : > { %v782_v32 = vmax.f32 %v614_v28, 0.0 }
 0x126   : > { %v832_v33 = vpack.c.bf16 %v784_v30, %v783_v29 }
 0x127   : > { %v831_v34 = vpack.c.bf16 %v782_v32, %v781_v31  ;;  %v2503_v35 = vpop.f32.mrb[32].mxu0 }
 0x128   : > { %v635_v36 = vadd.f32 %v2503_v35, %v3015_v43  ;;  %v626_v37 = vpop.f32.mrb[33].mxu0 }
 0x129   : > { %v627_v38 = vadd.f32 %v3015_v43, %v626_v37  ;;  %v2504_v39 = vpop.f32.mrb[34].mxu0  ;;  %2577 = vmatprep.mubr.bf16.mxu1 %v831_v34 }
 0x12a   : > { %v638_v40 = vadd.f32 %v2504_v39, %v3015_v43  ;;  %v629_v41 = vpop.f32.mrb[35].mxu0  ;;  %2578 = vmatmul.mubr.bf16.gmra.mrb[28].mxu1 %v832_v33  ;;  %v787_v44 = vmax.f32 %v635_v36, 0.0 }
 0x12b   : > { %v630_v42 = vadd.f32 %v3015_v43, %v629_v41  ;;  %v785_v46 = vmax.f32 %v627_v38, 0.0 }
 0x12c   : > { %v788_v45 = vmax.f32 %v638_v40, 0.0 }
 0x12d   : > { %v786_v47 = vmax.f32 %v630_v42, 0.0 }
 0x12e   : > { %v834_v48 = vpack.c.bf16 %v788_v45, %v787_v44 }
 0x12f   : > { %v833_v49 = vpack.c.bf16 %v786_v47, %v785_v46  ;;  %v2507_v50 = vpop.f32.mrb[36].mxu0 }
 0x130   : > { %v651_v51 = vadd.f32 %v2507_v50, %v3015_v43  ;;  %v642_v52 = vpop.f32.mrb[37].mxu0 }
 0x131   : > { %v643_v53 = vadd.f32 %v3015_v43, %v642_v52  ;;  %v2508_v54 = vpop.f32.mrb[38].mxu0  ;;  %2581 = vmatprep.mubr.bf16.mxu1 %v833_v49 }
 0x132   : > { %v654_v55 = vadd.f32 %v2508_v54, %v3015_v43  ;;  %v645_v56 = vpop.f32.mrb[39].mxu0  ;;  %2582 = vmatmul.mubr.bf16.gmra.mrb[32].mxu1 %v834_v48  ;;  %v791_v58 = vmax.f32 %v651_v51, 0.0 }
 0x133   : > { %v646_v57 = vadd.f32 %v3015_v43, %v645_v56  ;;  %v789_v60 = vmax.f32 %v643_v53, 0.0 }
 0x134   : > { %v792_v59 = vmax.f32 %v654_v55, 0.0 }
 0x135   : > { %v790_v61 = vmax.f32 %v646_v57, 0.0 }
 0x136   : > { %v836_v62 = vpack.c.bf16 %v792_v59, %v791_v58 }
 0x137   : > { %v835_v63 = vpack.c.bf16 %v790_v61, %v789_v60  ;;  %v2511_v0 = vpop.f32.mrb[40].mxu0 }
 0x138   : > { %v667_v1 = vadd.f32 %v2511_v0, %v3015_v43  ;;  %v658_v2 = vpop.f32.mrb[41].mxu0 }
 0x139   : > { %v659_v3 = vadd.f32 %v3015_v43, %v658_v2  ;;  %v2512_v4 = vpop.f32.mrb[42].mxu0  ;;  %2585 = vmatprep.mubr.bf16.mxu1 %v835_v63 }
 0x13a   : > { %v670_v5 = vadd.f32 %v2512_v4, %v3015_v43  ;;  %v661_v6 = vpop.f32.mrb[43].mxu0  ;;  %2586 = vmatmul.mubr.bf16.gmra.mrb[36].mxu1 %v836_v62  ;;  %v795_v8 = vmax.f32 %v667_v1, 0.0 }
 0x13b   : > { %v662_v7 = vadd.f32 %v3015_v43, %v661_v6  ;;  %v793_v10 = vmax.f32 %v659_v3, 0.0 }
 0x13c   : > { %v796_v9 = vmax.f32 %v670_v5, 0.0 }
 0x13d   : > { %v794_v11 = vmax.f32 %v662_v7, 0.0 }
 0x13e   : > { %v838_v12 = vpack.c.bf16 %v796_v9, %v795_v8 }
 0x13f   : > { %v837_v13 = vpack.c.bf16 %v794_v11, %v793_v10  ;;  %v2515_v14 = vpop.f32.mrb[44].mxu0 }
 0x140   : > { %v683_v15 = vadd.f32 %v2515_v14, %v3015_v43  ;;  %v674_v16 = vpop.f32.mrb[45].mxu0 }
 0x141   : > { %v675_v17 = vadd.f32 %v3015_v43, %v674_v16  ;;  %v2516_v18 = vpop.f32.mrb[46].mxu0  ;;  %2589 = vmatprep.mubr.bf16.mxu1 %v837_v13 }
 0x142   : > { %v686_v19 = vadd.f32 %v2516_v18, %v3015_v43  ;;  %v677_v20 = vpop.f32.mrb[47].mxu0  ;;  %2590 = vmatmul.mubr.bf16.gmra.mrb[40].mxu1 %v838_v12  ;;  %v799_v22 = vmax.f32 %v683_v15, 0.0 }
 0x143   : > { %v678_v21 = vadd.f32 %v3015_v43, %v677_v20  ;;  %v797_v24 = vmax.f32 %v675_v17, 0.0 }
 0x144   : > { %v800_v23 = vmax.f32 %v686_v19, 0.0 }
 0x145   : > { %v798_v25 = vmax.f32 %v678_v21, 0.0  ;;  %v2814_v21 = vld [vmem:[%s3472_s4] sm:$0xff]  }
 0x146   : > { %v840_v26 = vpack.c.bf16 %v800_v23, %v799_v22  ;;  %2773 = vmatprep.subr.bf16.mxu1 %v2814_v21  ;;  %2693 = vmatprep.subr.bf16.mxu0 %v2814_v21  ;;  %v3105_v22 = vld [vmem:[%s3473_s5 + $0x1] ss:$0 sm:$0xff]  ;;  %v2815_v23 = vld [vmem:[%s3472_s4 + $0x8] sm:$0xff]  }
 0x147   : > { %v839_v27 = vpack.c.bf16 %v798_v25, %v797_v24  ;;  %v2519_v28 = vpop.f32.mrb[48].mxu0  ;;  %2781 = vmatpush3.bf16.msra.mxu1 %v2814_v21 }
 0x148   : > { %v699_v29 = vadd.f32 %v2519_v28, %v3015_v43  ;;  %v690_v30 = vpop.f32.mrb[49].mxu0  ;;  %2774 = vmatprep.subr.bf16.mxu1 %v2815_v23 }
 0x149   : > { %v691_v31 = vadd.f32 %v3015_v43, %v690_v30  ;;  %v2520_v32 = vpop.f32.mrb[50].mxu0  ;;  %2593 = vmatprep.mubr.bf16.mxu1 %v839_v27  ;;  %v2816_v30 = vld [vmem:[%s3472_s4 + $0x10] sm:$0xff]  }
 0x14a   : > { %v702_v33 = vadd.f32 %v2520_v32, %v3015_v43  ;;  %v693_v34 = vpop.f32.mrb[51].mxu0  ;;  %2594 = vmatmul.mubr.bf16.gmra.mrb[44].mxu1 %v840_v26  ;;  %v803_v36 = vmax.f32 %v699_v29, 0.0 }
 0x14b   : > { %v694_v35 = vadd.f32 %v3015_v43, %v693_v34  ;;  %v801_v38 = vmax.f32 %v691_v31, 0.0  ;;  %2782 = vmatpush3.bf16.msra.mxu1 %v2815_v23 }
 0x14c   : > { %v804_v37 = vmax.f32 %v702_v33, 0.0  ;;  %2775 = vmatprep.subr.bf16.mxu1 %v2816_v30 }
 0x14d   : > { %v802_v39 = vmax.f32 %v694_v35, 0.0 }
 0x14e   : > { %v842_v40 = vpack.c.bf16 %v804_v37, %v803_v36  ;;  %v2817_v36 = vld [vmem:[%s3472_s4 + $0x18] sm:$0xff]  }
 0x14f   : > { %v841_v41 = vpack.c.bf16 %v802_v39, %v801_v38  ;;  %v2523_v42 = vpop.f32.mrb[52].mxu0  ;;  %2783 = vmatpush3.bf16.msra.mxu1 %v2816_v30 }
 0x150   : > { %v715_v44 = vadd.f32 %v2523_v42, %v3015_v43  ;;  %v706_v45 = vpop.f32.mrb[53].mxu0  ;;  %2776 = vmatprep.subr.bf16.mxu1 %v2817_v36 }
 0x151   : > { %v707_v46 = vadd.f32 %v3015_v43, %v706_v45  ;;  %v2524_v47 = vpop.f32.mrb[54].mxu0  ;;  %2597 = vmatprep.mubr.bf16.mxu1 %v841_v41  ;;  %v2818_v45 = vld [vmem:[%s3472_s4 + $0x20] sm:$0xff]  }
 0x152   : > { %v718_v48 = vadd.f32 %v2524_v47, %v3015_v43  ;;  %v709_v49 = vpop.f32.mrb[55].mxu0  ;;  %2598 = vmatmul.mubr.bf16.gmra.mrb[48].mxu1 %v842_v40  ;;  %v807_v51 = vmax.f32 %v715_v44, 0.0 }
 0x153   : > { %v710_v50 = vadd.f32 %v3015_v43, %v709_v49  ;;  %v805_v53 = vmax.f32 %v707_v46, 0.0  ;;  %2784 = vmatpush3.bf16.msra.mxu1 %v2817_v36 }
 0x154   : > { %v808_v52 = vmax.f32 %v718_v48, 0.0  ;;  %2777 = vmatprep.subr.bf16.mxu1 %v2818_v45 }
 0x155   : > { %v806_v54 = vmax.f32 %v710_v50, 0.0 }
 0x156   : > { %v844_v55 = vpack.c.bf16 %v808_v52, %v807_v51 }
 0x157   : > { %v843_v56 = vpack.c.bf16 %v806_v54, %v805_v53  ;;  %v2527_v57 = vpop.f32.mrb[56].mxu0  ;;  %v2819_v53 = vld [vmem:[%s3472_s4 + $0x28] sm:$0xff]   ;;  %2785 = vmatpush3.bf16.msra.mxu1 %v2818_v45 }
 0x158   : > { %v731_v58 = vadd.f32 %v2527_v57, %v3015_v43  ;;  %v722_v59 = vpop.f32.mrb[57].mxu0  ;;  %2778 = vmatprep.subr.bf16.mxu1 %v2819_v53 }
 0x159   : > { %v723_v60 = vadd.f32 %v3015_v43, %v722_v59  ;;  %v2528_v61 = vpop.f32.mrb[58].mxu0  ;;  %2601 = vmatprep.mubr.bf16.mxu1 %v843_v56 }
 0x15a   : > { %v734_v62 = vadd.f32 %v2528_v61, %v3015_v43  ;;  %v725_v63 = vpop.f32.mrb[59].mxu0  ;;  %2602 = vmatmul.mubr.bf16.gmra.mrb[52].mxu1 %v844_v55  ;;  %v811_v1 = vmax.f32 %v731_v58, 0.0  ;;  %v2820_v61 = vld [vmem:[%s3472_s4 + $0x30] sm:$0xff]  }
 0x15b   : > { %v726_v0 = vadd.f32 %v3015_v43, %v725_v63  ;;  %v809_v3 = vmax.f32 %v723_v60, 0.0  ;;  %2786 = vmatpush3.bf16.msra.mxu1 %v2819_v53 }
 0x15c   : > { %v812_v2 = vmax.f32 %v734_v62, 0.0  ;;  %2779 = vmatprep.subr.bf16.mxu1 %v2820_v61 }
 0x15d   : > { %v810_v4 = vmax.f32 %v726_v0, 0.0 }
 0x15e   : > { %v846_v5 = vpack.c.bf16 %v812_v2, %v811_v1 }
 0x15f   : > { %v845_v6 = vpack.c.bf16 %v810_v4, %v809_v3  ;;  %v2531_v7 = vpop.f32.mrb[60].mxu0  ;;  %2787 = vmatpush3.bf16.msra.mxu1 %v2820_v61 }
 0x160   : > { %v747_v8 = vadd.f32 %v2531_v7, %v3015_v43  ;;  %v738_v9 = vpop.f32.mrb[61].mxu0 }
 0x161   : > { %v739_v10 = vadd.f32 %v3015_v43, %v738_v9  ;;  %v2532_v11 = vpop.f32.mrb[62].mxu0  ;;  %2605 = vmatprep.mubr.bf16.mxu1 %v845_v6 }
 0x162   : > { %v750_v12 = vadd.f32 %v2532_v11, %v3015_v43  ;;  %v741_v13 = vpop.f32.mrb[63].mxu0  ;;  %2606 = vmatmul.mubr.bf16.gmra.mrb[56].mxu1 %v846_v5  ;;  %v815_v15 = vmax.f32 %v747_v8, 0.0 }
 0x163   : > { %v742_v14 = vadd.f32 %v3015_v43, %v741_v13  ;;  %v813_v17 = vmax.f32 %v739_v10, 0.0 }
 0x164   : > { %v816_v16 = vmax.f32 %v750_v12, 0.0 }
 0x165   : > { %v814_v18 = vmax.f32 %v742_v14, 0.0 }
 0x166   : > { %v848_v19 = vpack.c.bf16 %v816_v16, %v815_v15 }
 0x167   : > { %v847_v20 = vpack.c.bf16 %v814_v18, %v813_v17 }
 0x169   : > { %2609 = vmatprep.mubr.bf16.mxu1 %v847_v20 }
 0x16a   : > { %2610 = vmatmul.mubr.bf16.gmra.mrb[60].mxu1 %v848_v19 }
 0x1c5   : > { %v2551_v43 = vpop.f32.mrb[0].mxu1 }
 0x1c6   : > { %v963_v24 = vadd.f32 %v2551_v43, %v3105_v22  ;;  %v954_v25 = vpop.f32.mrb[1].mxu1 }
 0x1c7   : > { %v955_v26 = vadd.f32 %v3105_v22, %v954_v25  ;;  %v2552_v27 = vpop.f32.mrb[2].mxu1 }
 0x1c8   : > { %v966_v28 = vadd.f32 %v2552_v27, %v3105_v22  ;;  %v957_v29 = vpop.f32.mrb[3].mxu1  ;;  %v1211_v32 = vmax.f32 %v963_v24, 0.0 }
 0x1c9   : > { %v958_v31 = vadd.f32 %v3105_v22, %v957_v29  ;;  %v1209_v34 = vmax.f32 %v955_v26, 0.0 }
 0x1ca   : > { %v1212_v33 = vmax.f32 %v966_v28, 0.0 }
 0x1cb   : > { %v1210_v35 = vmax.f32 %v958_v31, 0.0 }
 0x1cc   : > { %v1274_v37 = vpack.c.bf16 %v1212_v33, %v1211_v32 }
 0x1cd   : > { %v1273_v38 = vpack.c.bf16 %v1210_v35, %v1209_v34  ;;  %v2555_v39 = vpop.f32.mrb[4].mxu1 }
 0x1ce   : > { %v979_v40 = vadd.f32 %v2555_v39, %v3105_v22  ;;  %v970_v41 = vpop.f32.mrb[5].mxu1 }
 0x1cf   : > { %v971_v42 = vadd.f32 %v3105_v22, %v970_v41  ;;  %v2556_v44 = vpop.f32.mrb[6].mxu1  ;;  %2629 = vmatprep.mubr.bf16.mxu0 %v1273_v38 }
 0x1d0   : > { %v982_v46 = vadd.f32 %v2556_v44, %v3105_v22  ;;  %v973_v47 = vpop.f32.mrb[7].mxu1  ;;  %2630 = vmatmul.mubr.bf16.vlgmr.msra.gmra.mrb[64].mxu0 %v1274_v37  ;;  %v1215_v49 = vmax.f32 %v979_v40, 0.0 }
 0x1d1   : > { %v974_v48 = vadd.f32 %v3105_v22, %v973_v47  ;;  %2694 = vmatpush3.bf16.msra.mxu0 %v2814_v21  ;;  %v1213_v51 = vmax.f32 %v971_v42, 0.0 }
 0x1d2   : > { %v1216_v50 = vmax.f32 %v982_v46, 0.0  ;;  %2695 = vmatprep.subr.bf16.mxu0 %v2815_v23 }
 0x1d3   : > { %v1214_v52 = vmax.f32 %v974_v48, 0.0 }
 0x1d4   : > { %v1276_v54 = vpack.c.bf16 %v1216_v50, %v1215_v49 }
 0x1d5   : > { %v1275_v55 = vpack.c.bf16 %v1214_v52, %v1213_v51  ;;  %v2559_v56 = vpop.f32.mrb[8].mxu1  ;;  %2696 = vmatpush3.bf16.msra.mxu0 %v2815_v23 }
 0x1d6   : > { %v995_v57 = vadd.f32 %v2559_v56, %v3105_v22  ;;  %v986_v58 = vpop.f32.mrb[9].mxu1  ;;  %2697 = vmatprep.subr.bf16.mxu0 %v2816_v30 }
 0x1d7   : > { %v987_v59 = vadd.f32 %v3105_v22, %v986_v58  ;;  %v2560_v60 = vpop.f32.mrb[10].mxu1  ;;  %2633 = vmatprep.mubr.bf16.mxu0 %v1275_v55 }
 0x1d8   : > { %v998_v62 = vadd.f32 %v2560_v60, %v3105_v22  ;;  %v989_v63 = vpop.f32.mrb[11].mxu1  ;;  %2634 = vmatmul.mubr.bf16.gmra.mrb[68].mxu0 %v1276_v54  ;;  %v1219_v1 = vmax.f32 %v995_v57, 0.0 }
 0x1d9   : > { %v990_v0 = vadd.f32 %v3105_v22, %v989_v63  ;;  %2698 = vmatpush3.bf16.msra.mxu0 %v2816_v30  ;;  %v1217_v3 = vmax.f32 %v987_v59, 0.0 }
 0x1da   : > { %v1220_v2 = vmax.f32 %v998_v62, 0.0  ;;  %2699 = vmatprep.subr.bf16.mxu0 %v2817_v36 }
 0x1db   : > { %v1218_v4 = vmax.f32 %v990_v0, 0.0 }
 0x1dc   : > { %v1278_v5 = vpack.c.bf16 %v1220_v2, %v1219_v1 }
 0x1dd   : > { %v1277_v6 = vpack.c.bf16 %v1218_v4, %v1217_v3  ;;  %v2563_v7 = vpop.f32.mrb[12].mxu1  ;;  %2700 = vmatpush3.bf16.msra.mxu0 %v2817_v36 }
 0x1de   : > { %v1011_v8 = vadd.f32 %v2563_v7, %v3105_v22  ;;  %v1002_v9 = vpop.f32.mrb[13].mxu1  ;;  %2701 = vmatprep.subr.bf16.mxu0 %v2818_v45 }
 0x1df   : > { %v1003_v10 = vadd.f32 %v3105_v22, %v1002_v9  ;;  %v2564_v11 = vpop.f32.mrb[14].mxu1  ;;  %2637 = vmatprep.mubr.bf16.mxu0 %v1277_v6 }
 0x1e0   : > { %v1014_v12 = vadd.f32 %v2564_v11, %v3105_v22  ;;  %v1005_v13 = vpop.f32.mrb[15].mxu1  ;;  %2638 = vmatmul.mubr.bf16.gmra.mrb[72].mxu0 %v1278_v5  ;;  %v1223_v15 = vmax.f32 %v1011_v8, 0.0 }
 0x1e1   : > { %v1006_v14 = vadd.f32 %v3105_v22, %v1005_v13  ;;  %2702 = vmatpush3.bf16.msra.mxu0 %v2818_v45  ;;  %v1221_v17 = vmax.f32 %v1003_v10, 0.0 }
 0x1e2   : > { %v1224_v16 = vmax.f32 %v1014_v12, 0.0  ;;  %2703 = vmatprep.subr.bf16.mxu0 %v2819_v53 }
 0x1e3   : > { %v1222_v18 = vmax.f32 %v1006_v14, 0.0 }
 0x1e4   : > { %v1280_v19 = vpack.c.bf16 %v1224_v16, %v1223_v15 }
 0x1e5   : > { %v1279_v20 = vpack.c.bf16 %v1222_v18, %v1221_v17  ;;  %v2567_v21 = vpop.f32.mrb[16].mxu1  ;;  %2704 = vmatpush3.bf16.msra.mxu0 %v2819_v53 }
 0x1e6   : > { %v1027_v43 = vadd.f32 %v2567_v21, %v3105_v22  ;;  %v1018_v23 = vpop.f32.mrb[17].mxu1  ;;  %2705 = vmatprep.subr.bf16.mxu0 %v2820_v61 }
 0x1e7   : > { %v1019_v24 = vadd.f32 %v3105_v22, %v1018_v23  ;;  %v2568_v25 = vpop.f32.mrb[18].mxu1  ;;  %2641 = vmatprep.mubr.bf16.mxu0 %v1279_v20 }
 0x1e8   : > { %v1030_v26 = vadd.f32 %v2568_v25, %v3105_v22  ;;  %v1021_v27 = vpop.f32.mrb[19].mxu1  ;;  %2642 = vmatmul.mubr.bf16.gmra.mrb[76].mxu0 %v1280_v19  ;;  %v1227_v29 = vmax.f32 %v1027_v43, 0.0 }
 0x1e9   : > { %v1022_v28 = vadd.f32 %v3105_v22, %v1021_v27  ;;  %2706 = vmatpush3.bf16.msra.mxu0 %v2820_v61  ;;  %v1225_v31 = vmax.f32 %v1019_v24, 0.0 }
 0x1ea   : > { %v1228_v30 = vmax.f32 %v1030_v26, 0.0 }
 0x1eb   : > { %v1226_v32 = vmax.f32 %v1022_v28, 0.0 }
 0x1ec   : > { %v1282_v33 = vpack.c.bf16 %v1228_v30, %v1227_v29 }
 0x1ed   : > { %v1281_v34 = vpack.c.bf16 %v1226_v32, %v1225_v31  ;;  %v2571_v35 = vpop.f32.mrb[20].mxu1 }
 0x1ee   : > { %v1043_v36 = vadd.f32 %v2571_v35, %v3105_v22  ;;  %v1034_v37 = vpop.f32.mrb[21].mxu1 }
 0x1ef   : > { %v1035_v38 = vadd.f32 %v3105_v22, %v1034_v37  ;;  %v2572_v39 = vpop.f32.mrb[22].mxu1  ;;  %2645 = vmatprep.mubr.bf16.mxu0 %v1281_v34 }
 0x1f0   : > { %v1046_v40 = vadd.f32 %v2572_v39, %v3105_v22  ;;  %v1037_v41 = vpop.f32.mrb[23].mxu1  ;;  %2646 = vmatmul.mubr.bf16.gmra.mrb[80].mxu0 %v1282_v33  ;;  %v1231_v44 = vmax.f32 %v1043_v36, 0.0 }
 0x1f1   : > { %v1038_v42 = vadd.f32 %v3105_v22, %v1037_v41  ;;  %v1229_v46 = vmax.f32 %v1035_v38, 0.0 }
 0x1f2   : > { %v1232_v45 = vmax.f32 %v1046_v40, 0.0 }
 0x1f3   : > { %v1230_v47 = vmax.f32 %v1038_v42, 0.0 }
 0x1f4   : > { %v1284_v48 = vpack.c.bf16 %v1232_v45, %v1231_v44 }
 0x1f5   : > { %v1283_v49 = vpack.c.bf16 %v1230_v47, %v1229_v46  ;;  %v2575_v50 = vpop.f32.mrb[24].mxu1 }
 0x1f6   : > { %v1059_v51 = vadd.f32 %v2575_v50, %v3105_v22  ;;  %v1050_v52 = vpop.f32.mrb[25].mxu1 }
 0x1f7   : > { %v1051_v53 = vadd.f32 %v3105_v22, %v1050_v52  ;;  %v2576_v54 = vpop.f32.mrb[26].mxu1  ;;  %2649 = vmatprep.mubr.bf16.mxu0 %v1283_v49 }
 0x1f8   : > { %v1062_v55 = vadd.f32 %v2576_v54, %v3105_v22  ;;  %v1053_v56 = vpop.f32.mrb[27].mxu1  ;;  %2650 = vmatmul.mubr.bf16.gmra.mrb[84].mxu0 %v1284_v48  ;;  %v1235_v58 = vmax.f32 %v1059_v51, 0.0 }
 0x1f9   : > { %v1054_v57 = vadd.f32 %v3105_v22, %v1053_v56  ;;  %v1233_v60 = vmax.f32 %v1051_v53, 0.0 }
 0x1fa   : > { %v1236_v59 = vmax.f32 %v1062_v55, 0.0 }
 0x1fb   : > { %v1234_v61 = vmax.f32 %v1054_v57, 0.0 }
 0x1fc   : > { %v1286_v62 = vpack.c.bf16 %v1236_v59, %v1235_v58 }
 0x1fd   : > { %v1285_v63 = vpack.c.bf16 %v1234_v61, %v1233_v60  ;;  %v2579_v0 = vpop.f32.mrb[28].mxu1 }
 0x1fe   : > { %v1075_v1 = vadd.f32 %v2579_v0, %v3105_v22  ;;  %v1066_v2 = vpop.f32.mrb[29].mxu1 }
 0x1ff   : > { %v1067_v3 = vadd.f32 %v3105_v22, %v1066_v2  ;;  %v2580_v4 = vpop.f32.mrb[30].mxu1  ;;  %2653 = vmatprep.mubr.bf16.mxu0 %v1285_v63 }
 0x200   : > { %v1078_v5 = vadd.f32 %v2580_v4, %v3105_v22  ;;  %v1069_v6 = vpop.f32.mrb[31].mxu1  ;;  %2654 = vmatmul.mubr.bf16.gmra.mrb[88].mxu0 %v1286_v62  ;;  %v1239_v8 = vmax.f32 %v1075_v1, 0.0 }
 0x201   : > { %v1070_v7 = vadd.f32 %v3105_v22, %v1069_v6  ;;  %v1237_v10 = vmax.f32 %v1067_v3, 0.0 }
 0x202   : > { %v1240_v9 = vmax.f32 %v1078_v5, 0.0 }
 0x203   : > { %v1238_v11 = vmax.f32 %v1070_v7, 0.0 }
 0x204   : > { %v1288_v12 = vpack.c.bf16 %v1240_v9, %v1239_v8 }
 0x205   : > { %v1287_v13 = vpack.c.bf16 %v1238_v11, %v1237_v10  ;;  %v2583_v14 = vpop.f32.mrb[32].mxu1 }
 0x206   : > { %v1091_v15 = vadd.f32 %v2583_v14, %v3105_v22  ;;  %v1082_v16 = vpop.f32.mrb[33].mxu1  ;;  %v2821_v14 = vld [vmem:[%s3472_s4 + $0x38] sm:$0xff]  }
 0x207   : > { %v1083_v17 = vadd.f32 %v3105_v22, %v1082_v16  ;;  %v2584_v18 = vpop.f32.mrb[34].mxu1  ;;  %2657 = vmatprep.mubr.bf16.mxu0 %v1287_v13  ;;  %2780 = vmatprep.subr.bf16.mxu1 %v2821_v14 }
 0x208   : > { %v1094_v19 = vadd.f32 %v2584_v18, %v3105_v22  ;;  %v1085_v20 = vpop.f32.mrb[35].mxu1  ;;  %2658 = vmatmul.mubr.bf16.gmra.mrb[92].mxu0 %v1288_v12  ;;  %v1243_v43 = vmax.f32 %v1091_v15, 0.0  ;;  %2707 = vmatprep.subr.bf16.mxu0 %v2821_v14 }
 0x209   : > { %v1086_v21 = vadd.f32 %v3105_v22, %v1085_v20  ;;  %v1241_v24 = vmax.f32 %v1083_v17, 0.0  ;;  %2788 = vmatpush3.bf16.msra.mxu1 %v2821_v14  ;;  %2708 = vmatpush3.bf16.msra.mxu0 %v2821_v14 }
 0x20a   : > { %v1244_v23 = vmax.f32 %v1094_v19, 0.0 }
 0x20b   : > { %v1242_v25 = vmax.f32 %v1086_v21, 0.0 }
 0x20c   : > { %v1290_v26 = vpack.c.bf16 %v1244_v23, %v1243_v43 }
 0x20d   : > { %v1289_v27 = vpack.c.bf16 %v1242_v25, %v1241_v24  ;;  %v2587_v28 = vpop.f32.mrb[36].mxu1 }
 0x20e   : > { %v1107_v29 = vadd.f32 %v2587_v28, %v3105_v22  ;;  %v1098_v30 = vpop.f32.mrb[37].mxu1 }
 0x20f   : > { %v1099_v31 = vadd.f32 %v3105_v22, %v1098_v30  ;;  %v2588_v32 = vpop.f32.mrb[38].mxu1  ;;  %2661 = vmatprep.mubr.bf16.mxu0 %v1289_v27 }
 0x210   : > { %v1110_v33 = vadd.f32 %v2588_v32, %v3105_v22  ;;  %v1101_v34 = vpop.f32.mrb[39].mxu1  ;;  %2662 = vmatmul.mubr.bf16.gmra.mrb[96].mxu0 %v1290_v26  ;;  %v1247_v36 = vmax.f32 %v1107_v29, 0.0 }
 0x211   : > { %v1102_v35 = vadd.f32 %v3105_v22, %v1101_v34  ;;  %v1245_v38 = vmax.f32 %v1099_v31, 0.0 }
 0x212   : > { %v1248_v37 = vmax.f32 %v1110_v33, 0.0 }
 0x213   : > { %v1246_v39 = vmax.f32 %v1102_v35, 0.0 }
 0x214   : > { %v1292_v40 = vpack.c.bf16 %v1248_v37, %v1247_v36 }
 0x215   : > { %v1291_v41 = vpack.c.bf16 %v1246_v39, %v1245_v38  ;;  %v2591_v42 = vpop.f32.mrb[40].mxu1 }
 0x216   : > { %v1123_v44 = vadd.f32 %v2591_v42, %v3105_v22  ;;  %v1114_v45 = vpop.f32.mrb[41].mxu1 }
 0x217   : > { %v1115_v46 = vadd.f32 %v3105_v22, %v1114_v45  ;;  %v2592_v47 = vpop.f32.mrb[42].mxu1  ;;  %2665 = vmatprep.mubr.bf16.mxu0 %v1291_v41 }
 0x218   : > { %v1126_v48 = vadd.f32 %v2592_v47, %v3105_v22  ;;  %v1117_v49 = vpop.f32.mrb[43].mxu1  ;;  %2666 = vmatmul.mubr.bf16.gmra.mrb[100].mxu0 %v1292_v40  ;;  %v1251_v51 = vmax.f32 %v1123_v44, 0.0 }
 0x219   : > { %v1118_v50 = vadd.f32 %v3105_v22, %v1117_v49  ;;  %v1249_v53 = vmax.f32 %v1115_v46, 0.0 }
 0x21a   : > { %v1252_v52 = vmax.f32 %v1126_v48, 0.0 }
 0x21b   : > { %v1250_v54 = vmax.f32 %v1118_v50, 0.0 }
 0x21c   : > { %v1294_v55 = vpack.c.bf16 %v1252_v52, %v1251_v51 }
 0x21d   : > { %v1293_v56 = vpack.c.bf16 %v1250_v54, %v1249_v53  ;;  %v2595_v57 = vpop.f32.mrb[44].mxu1 }
 0x21e   : > { %v1139_v58 = vadd.f32 %v2595_v57, %v3105_v22  ;;  %v1130_v59 = vpop.f32.mrb[45].mxu1 }
 0x21f   : > { %v1131_v60 = vadd.f32 %v3105_v22, %v1130_v59  ;;  %v2596_v61 = vpop.f32.mrb[46].mxu1  ;;  %2669 = vmatprep.mubr.bf16.mxu0 %v1293_v56 }
 0x220   : > { %v1142_v62 = vadd.f32 %v2596_v61, %v3105_v22  ;;  %v1133_v63 = vpop.f32.mrb[47].mxu1  ;;  %2670 = vmatmul.mubr.bf16.gmra.mrb[104].mxu0 %v1294_v55  ;;  %v1255_v1 = vmax.f32 %v1139_v58, 0.0 }
 0x221   : > { %v1134_v0 = vadd.f32 %v3105_v22, %v1133_v63  ;;  %v1253_v3 = vmax.f32 %v1131_v60, 0.0 }
 0x222   : > { %v1256_v2 = vmax.f32 %v1142_v62, 0.0 }
 0x223   : > { %v1254_v4 = vmax.f32 %v1134_v0, 0.0 }
 0x224   : > { %v1296_v5 = vpack.c.bf16 %v1256_v2, %v1255_v1  ;;  %v3195_v1 = vld [vmem:[%s3473_s5 + $0x2] ss:$0 sm:$0xff] }
 0x225   : > { %v1295_v6 = vpack.c.bf16 %v1254_v4, %v1253_v3  ;;  %v2599_v7 = vpop.f32.mrb[48].mxu1 }
 0x226   : > { %v1155_v8 = vadd.f32 %v2599_v7, %v3105_v22  ;;  %v1146_v9 = vpop.f32.mrb[49].mxu1 }
 0x227   : > { %v1147_v10 = vadd.f32 %v3105_v22, %v1146_v9  ;;  %v2600_v11 = vpop.f32.mrb[50].mxu1  ;;  %2673 = vmatprep.mubr.bf16.mxu0 %v1295_v6 }
 0x228   : > { %v1158_v12 = vadd.f32 %v2600_v11, %v3105_v22  ;;  %v1149_v13 = vpop.f32.mrb[51].mxu1  ;;  %2674 = vmatmul.mubr.bf16.gmra.mrb[108].mxu0 %v1296_v5  ;;  %v1259_v16 = vmax.f32 %v1155_v8, 0.0 }
 0x229   : > { %v1150_v15 = vadd.f32 %v3105_v22, %v1149_v13  ;;  %v1257_v18 = vmax.f32 %v1147_v10, 0.0 }
 0x22a   : > { %v1260_v17 = vmax.f32 %v1158_v12, 0.0 }
 0x22b   : > { %v1258_v19 = vmax.f32 %v1150_v15, 0.0 }
 0x22c   : > { %v1298_v20 = vpack.c.bf16 %v1260_v17, %v1259_v16 }
 0x22d   : > { %v1297_v21 = vpack.c.bf16 %v1258_v19, %v1257_v18  ;;  %v2603_v43 = vpop.f32.mrb[52].mxu1 }
 0x22e   : > { %v1171_v23 = vadd.f32 %v2603_v43, %v3105_v22  ;;  %v1162_v24 = vpop.f32.mrb[53].mxu1 }
 0x22f   : > { %v1163_v25 = vadd.f32 %v3105_v22, %v1162_v24  ;;  %v2604_v26 = vpop.f32.mrb[54].mxu1  ;;  %2677 = vmatprep.mubr.bf16.mxu0 %v1297_v21 }
 0x230   : > { %v1174_v27 = vadd.f32 %v2604_v26, %v3105_v22  ;;  %v1165_v28 = vpop.f32.mrb[55].mxu1  ;;  %2678 = vmatmul.mubr.bf16.gmra.mrb[112].mxu0 %v1298_v20  ;;  %v1263_v30 = vmax.f32 %v1171_v23, 0.0 }
 0x231   : > { %v1166_v29 = vadd.f32 %v3105_v22, %v1165_v28  ;;  %v1261_v32 = vmax.f32 %v1163_v25, 0.0 }
 0x232   : > { %v1264_v31 = vmax.f32 %v1174_v27, 0.0 }
 0x233   : > { %v1262_v33 = vmax.f32 %v1166_v29, 0.0 }
 0x234   : > { %v1300_v34 = vpack.c.bf16 %v1264_v31, %v1263_v30 }
 0x235   : > { %v1299_v35 = vpack.c.bf16 %v1262_v33, %v1261_v32  ;;  %v2607_v36 = vpop.f32.mrb[56].mxu1 }
 0x236   : > { %v1187_v37 = vadd.f32 %v2607_v36, %v3105_v22  ;;  %v1178_v38 = vpop.f32.mrb[57].mxu1 }
 0x237   : > { %v1179_v39 = vadd.f32 %v3105_v22, %v1178_v38  ;;  %v2608_v40 = vpop.f32.mrb[58].mxu1  ;;  %2681 = vmatprep.mubr.bf16.mxu0 %v1299_v35 }
 0x238   : > { %v1190_v41 = vadd.f32 %v2608_v40, %v3105_v22  ;;  %v1181_v42 = vpop.f32.mrb[59].mxu1  ;;  %2682 = vmatmul.mubr.bf16.gmra.mrb[116].mxu0 %v1300_v34  ;;  %v1267_v45 = vmax.f32 %v1187_v37, 0.0 }
 0x239   : > { %v1182_v44 = vadd.f32 %v3105_v22, %v1181_v42  ;;  %v1265_v47 = vmax.f32 %v1179_v39, 0.0 }
 0x23a   : > { %v1268_v46 = vmax.f32 %v1190_v41, 0.0 }
 0x23b   : > { %v1266_v48 = vmax.f32 %v1182_v44, 0.0 }
 0x23c   : > { %v1302_v49 = vpack.c.bf16 %v1268_v46, %v1267_v45 }
 0x23d   : > { %v1301_v50 = vpack.c.bf16 %v1266_v48, %v1265_v47  ;;  %v2611_v51 = vpop.f32.mrb[60].mxu1 }
 0x23e   : > { %v1203_v52 = vadd.f32 %v2611_v51, %v3105_v22  ;;  %v1194_v53 = vpop.f32.mrb[61].mxu1 }
 0x23f   : > { %v1195_v54 = vadd.f32 %v3105_v22, %v1194_v53  ;;  %v2612_v55 = vpop.f32.mrb[62].mxu1  ;;  %2685 = vmatprep.mubr.bf16.mxu0 %v1301_v50 }
 0x240   : > { %v1206_v56 = vadd.f32 %v2612_v55, %v3105_v22  ;;  %v1197_v57 = vpop.f32.mrb[63].mxu1  ;;  %2686 = vmatmul.mubr.bf16.gmra.mrb[120].mxu0 %v1302_v49  ;;  %v1271_v59 = vmax.f32 %v1203_v52, 0.0 }
 0x241   : > { %v1198_v58 = vadd.f32 %v3105_v22, %v1197_v57  ;;  %v1269_v61 = vmax.f32 %v1195_v54, 0.0 }
 0x242   : > { %v1272_v60 = vmax.f32 %v1206_v56, 0.0 }
 0x243   : > { %v1270_v62 = vmax.f32 %v1198_v58, 0.0 }
 0x244   : > { %v1304_v63 = vpack.c.bf16 %v1272_v60, %v1271_v59 }
 0x245   : > { %v1303_v0 = vpack.c.bf16 %v1270_v62, %v1269_v61 }
 0x247   : > { %2689 = vmatprep.mubr.bf16.mxu0 %v1303_v0 }
 0x248   : > { %2690 = vmatmul.mubr.bf16.gmra.mrb[124].mxu0 %v1304_v63 }
 0x2a3   : > { %v2631_v2 = vpop.f32.mrb[64].mxu0 }
 0x2a4   : > { %v1419_v3 = vadd.f32 %v2631_v2, %v3195_v1  ;;  %v1410_v4 = vpop.f32.mrb[65].mxu0 }
 0x2a5   : > { %v1411_v5 = vadd.f32 %v3195_v1, %v1410_v4  ;;  %v2632_v22 = vpop.f32.mrb[66].mxu0 }
 0x2a6   : > { %v1422_v6 = vadd.f32 %v2632_v22, %v3195_v1  ;;  %v1413_v7 = vpop.f32.mrb[67].mxu0  ;;  %v1667_v9 = vmax.f32 %v1419_v3, 0.0 }
 0x2a7   : > { %v1414_v8 = vadd.f32 %v3195_v1, %v1413_v7  ;;  %v1665_v11 = vmax.f32 %v1411_v5, 0.0 }
 0x2a8   : > { %v1668_v10 = vmax.f32 %v1422_v6, 0.0 }
 0x2a9   : > { %v1666_v12 = vmax.f32 %v1414_v8, 0.0 }
 0x2aa   : > { %v1730_v13 = vpack.c.bf16 %v1668_v10, %v1667_v9 }
 0x2ab   : > { %v1729_v14 = vpack.c.bf16 %v1666_v12, %v1665_v11  ;;  %v2635_v15 = vpop.f32.mrb[68].mxu0 }
 0x2ac   : > { %v1435_v16 = vadd.f32 %v2635_v15, %v3195_v1  ;;  %v1426_v17 = vpop.f32.mrb[69].mxu0 }
 0x2ad   : > { %v1427_v18 = vadd.f32 %v3195_v1, %v1426_v17  ;;  %v2636_v19 = vpop.f32.mrb[70].mxu0  ;;  %2709 = vmatprep.mubr.bf16.mxu0 %v1729_v14 }
 0x2ae   : > { %v1438_v20 = vadd.f32 %v2636_v19, %v3195_v1  ;;  %v1429_v21 = vpop.f32.mrb[71].mxu0  ;;  %2710 = vmatmul.mubr.bf16.vlgmr.msra.gmra.mrb[128].mxu0 %v1730_v13  ;;  %v1671_v23 = vmax.f32 %v1435_v16, 0.0 }
 0x2af   : > { %v1430_v43 = vadd.f32 %v3195_v1, %v1429_v21  ;;  %v1669_v25 = vmax.f32 %v1427_v18, 0.0 }
 0x2b0   : > { %v1672_v24 = vmax.f32 %v1438_v20, 0.0 }
 0x2b1   : > { %v1670_v26 = vmax.f32 %v1430_v43, 0.0 }
 0x2b2   : > { %v1732_v27 = vpack.c.bf16 %v1672_v24, %v1671_v23 }
 0x2b3   : > { %v1731_v28 = vpack.c.bf16 %v1670_v26, %v1669_v25  ;;  %v2639_v29 = vpop.f32.mrb[72].mxu0 }
 0x2b4   : > { %v1451_v30 = vadd.f32 %v2639_v29, %v3195_v1  ;;  %v1442_v31 = vpop.f32.mrb[73].mxu0 }
 0x2b5   : > { %v1443_v32 = vadd.f32 %v3195_v1, %v1442_v31  ;;  %v2640_v33 = vpop.f32.mrb[74].mxu0  ;;  %2713 = vmatprep.mubr.bf16.mxu1 %v1731_v28 }
 0x2b6   : > { %v1454_v34 = vadd.f32 %v2640_v33, %v3195_v1  ;;  %v1445_v35 = vpop.f32.mrb[75].mxu0  ;;  %2714 = vmatmul.mubr.bf16.vlgmr.msra.gmra.mrb[64].mxu1 %v1732_v27  ;;  %v1675_v37 = vmax.f32 %v1451_v30, 0.0 }
 0x2b7   : > { %v1446_v36 = vadd.f32 %v3195_v1, %v1445_v35  ;;  %v1673_v39 = vmax.f32 %v1443_v32, 0.0 }
 0x2b8   : > { %v1676_v38 = vmax.f32 %v1454_v34, 0.0 }
 0x2b9   : > { %v1674_v40 = vmax.f32 %v1446_v36, 0.0 }
 0x2ba   : > { %v1734_v41 = vpack.c.bf16 %v1676_v38, %v1675_v37 }
 0x2bb   : > { %v1733_v42 = vpack.c.bf16 %v1674_v40, %v1673_v39  ;;  %v2643_v44 = vpop.f32.mrb[76].mxu0 }
 0x2bc   : > { %v1467_v45 = vadd.f32 %v2643_v44, %v3195_v1  ;;  %v1458_v46 = vpop.f32.mrb[77].mxu0 }
 0x2bd   : > { %v1459_v47 = vadd.f32 %v3195_v1, %v1458_v46  ;;  %v2644_v48 = vpop.f32.mrb[78].mxu0  ;;  %2717 = vmatprep.mubr.bf16.mxu1 %v1733_v42 }
 0x2be   : > { %v1470_v49 = vadd.f32 %v2644_v48, %v3195_v1  ;;  %v1461_v50 = vpop.f32.mrb[79].mxu0  ;;  %2718 = vmatmul.mubr.bf16.gmra.mrb[68].mxu1 %v1734_v41  ;;  %v1679_v52 = vmax.f32 %v1467_v45, 0.0 }
 0x2bf   : > { %v1462_v51 = vadd.f32 %v3195_v1, %v1461_v50  ;;  %v1677_v54 = vmax.f32 %v1459_v47, 0.0 }
 0x2c0   : > { %v1680_v53 = vmax.f32 %v1470_v49, 0.0 }
 0x2c1   : > { %v1678_v55 = vmax.f32 %v1462_v51, 0.0 }
 0x2c2   : > { %v1736_v56 = vpack.c.bf16 %v1680_v53, %v1679_v52 }
 0x2c3   : > { %v1735_v57 = vpack.c.bf16 %v1678_v55, %v1677_v54  ;;  %v2647_v58 = vpop.f32.mrb[80].mxu0 }
 0x2c4   : > { %v1483_v59 = vadd.f32 %v2647_v58, %v3195_v1  ;;  %v1474_v60 = vpop.f32.mrb[81].mxu0 }
 0x2c5   : > { %v1475_v61 = vadd.f32 %v3195_v1, %v1474_v60  ;;  %v2648_v62 = vpop.f32.mrb[82].mxu0  ;;  %2721 = vmatprep.mubr.bf16.mxu1 %v1735_v57 }
 0x2c6   : > { %v1486_v63 = vadd.f32 %v2648_v62, %v3195_v1  ;;  %v1477_v0 = vpop.f32.mrb[83].mxu0  ;;  %2722 = vmatmul.mubr.bf16.gmra.mrb[72].mxu1 %v1736_v56  ;;  %v1683_v3 = vmax.f32 %v1483_v59, 0.0 }
 0x2c7   : > { %v1478_v2 = vadd.f32 %v3195_v1, %v1477_v0  ;;  %v1681_v5 = vmax.f32 %v1475_v61, 0.0 }
 0x2c8   : > { %v1684_v4 = vmax.f32 %v1486_v63, 0.0 }
 0x2c9   : > { %v1682_v22 = vmax.f32 %v1478_v2, 0.0 }
 0x2ca   : > { %v1738_v6 = vpack.c.bf16 %v1684_v4, %v1683_v3 }
 0x2cb   : > { %v1737_v7 = vpack.c.bf16 %v1682_v22, %v1681_v5  ;;  %v2651_v8 = vpop.f32.mrb[84].mxu0 }
 0x2cc   : > { %v1499_v9 = vadd.f32 %v2651_v8, %v3195_v1  ;;  %v1490_v10 = vpop.f32.mrb[85].mxu0 }
 0x2cd   : > { %v1491_v11 = vadd.f32 %v3195_v1, %v1490_v10  ;;  %v2652_v12 = vpop.f32.mrb[86].mxu0  ;;  %2725 = vmatprep.mubr.bf16.mxu1 %v1737_v7 }
 0x2ce   : > { %v1502_v13 = vadd.f32 %v2652_v12, %v3195_v1  ;;  %v1493_v14 = vpop.f32.mrb[87].mxu0  ;;  %2726 = vmatmul.mubr.bf16.gmra.mrb[76].mxu1 %v1738_v6  ;;  %v1687_v16 = vmax.f32 %v1499_v9, 0.0 }
 0x2cf   : > { %v1494_v15 = vadd.f32 %v3195_v1, %v1493_v14  ;;  %v1685_v18 = vmax.f32 %v1491_v11, 0.0 }
 0x2d0   : > { %v1688_v17 = vmax.f32 %v1502_v13, 0.0 }
 0x2d1   : > { %v1686_v19 = vmax.f32 %v1494_v15, 0.0 }
 0x2d2   : > { %v1740_v20 = vpack.c.bf16 %v1688_v17, %v1687_v16 }
 0x2d3   : > { %v1739_v21 = vpack.c.bf16 %v1686_v19, %v1685_v18  ;;  %v2655_v43 = vpop.f32.mrb[88].mxu0 }
 0x2d4   : > { %v1515_v23 = vadd.f32 %v2655_v43, %v3195_v1  ;;  %v1506_v24 = vpop.f32.mrb[89].mxu0 }
 0x2d5   : > { %v1507_v25 = vadd.f32 %v3195_v1, %v1506_v24  ;;  %v2656_v26 = vpop.f32.mrb[90].mxu0  ;;  %2729 = vmatprep.mubr.bf16.mxu1 %v1739_v21 }
 0x2d6   : > { %v1518_v27 = vadd.f32 %v2656_v26, %v3195_v1  ;;  %v1509_v28 = vpop.f32.mrb[91].mxu0  ;;  %2730 = vmatmul.mubr.bf16.gmra.mrb[80].mxu1 %v1740_v20  ;;  %v1691_v30 = vmax.f32 %v1515_v23, 0.0 }
 0x2d7   : > { %v1510_v29 = vadd.f32 %v3195_v1, %v1509_v28  ;;  %v1689_v32 = vmax.f32 %v1507_v25, 0.0 }
 0x2d8   : > { %v1692_v31 = vmax.f32 %v1518_v27, 0.0 }
 0x2d9   : > { %v1690_v33 = vmax.f32 %v1510_v29, 0.0 }
 0x2da   : > { %v1742_v34 = vpack.c.bf16 %v1692_v31, %v1691_v30 }
 0x2db   : > { %v1741_v35 = vpack.c.bf16 %v1690_v33, %v1689_v32  ;;  %v2659_v36 = vpop.f32.mrb[92].mxu0 }
 0x2dc   : > { %v1531_v37 = vadd.f32 %v2659_v36, %v3195_v1  ;;  %v1522_v38 = vpop.f32.mrb[93].mxu0 }
 0x2dd   : > { %v1523_v39 = vadd.f32 %v3195_v1, %v1522_v38  ;;  %v2660_v40 = vpop.f32.mrb[94].mxu0  ;;  %2733 = vmatprep.mubr.bf16.mxu1 %v1741_v35 }
 0x2de   : > { %v1534_v41 = vadd.f32 %v2660_v40, %v3195_v1  ;;  %v1525_v42 = vpop.f32.mrb[95].mxu0  ;;  %2734 = vmatmul.mubr.bf16.gmra.mrb[84].mxu1 %v1742_v34  ;;  %v1695_v45 = vmax.f32 %v1531_v37, 0.0 }
 0x2df   : > { %v1526_v44 = vadd.f32 %v3195_v1, %v1525_v42  ;;  %v1693_v47 = vmax.f32 %v1523_v39, 0.0 }
 0x2e0   : > { %v1696_v46 = vmax.f32 %v1534_v41, 0.0 }
 0x2e1   : > { %v1694_v48 = vmax.f32 %v1526_v44, 0.0 }
 0x2e2   : > { %v1744_v49 = vpack.c.bf16 %v1696_v46, %v1695_v45 }
 0x2e3   : > { %v1743_v50 = vpack.c.bf16 %v1694_v48, %v1693_v47  ;;  %v2663_v51 = vpop.f32.mrb[96].mxu0 }
 0x2e4   : > { %v1547_v52 = vadd.f32 %v2663_v51, %v3195_v1  ;;  %v1538_v53 = vpop.f32.mrb[97].mxu0 }
 0x2e5   : > { %v1539_v54 = vadd.f32 %v3195_v1, %v1538_v53  ;;  %v2664_v55 = vpop.f32.mrb[98].mxu0  ;;  %2737 = vmatprep.mubr.bf16.mxu1 %v1743_v50 }
 0x2e6   : > { %v1550_v56 = vadd.f32 %v2664_v55, %v3195_v1  ;;  %v1541_v57 = vpop.f32.mrb[99].mxu0  ;;  %2738 = vmatmul.mubr.bf16.gmra.mrb[88].mxu1 %v1744_v49  ;;  %v1699_v59 = vmax.f32 %v1547_v52, 0.0 }
 0x2e7   : > { %v1542_v58 = vadd.f32 %v3195_v1, %v1541_v57  ;;  %v1697_v61 = vmax.f32 %v1539_v54, 0.0 }
 0x2e8   : > { %v1700_v60 = vmax.f32 %v1550_v56, 0.0 }
 0x2e9   : > { %v1698_v62 = vmax.f32 %v1542_v58, 0.0 }
 0x2ea   : > { %v1746_v63 = vpack.c.bf16 %v1700_v60, %v1699_v59 }
 0x2eb   : > { %v1745_v0 = vpack.c.bf16 %v1698_v62, %v1697_v61  ;;  %v2667_v2 = vpop.f32.mrb[100].mxu0 }
 0x2ec   : > { %v1563_v3 = vadd.f32 %v2667_v2, %v3195_v1  ;;  %v1554_v4 = vpop.f32.mrb[101].mxu0 }
 0x2ed   : > { %v1555_v5 = vadd.f32 %v3195_v1, %v1554_v4  ;;  %v2668_v22 = vpop.f32.mrb[102].mxu0  ;;  %2741 = vmatprep.mubr.bf16.mxu1 %v1745_v0 }
 0x2ee   : > { %v1566_v6 = vadd.f32 %v2668_v22, %v3195_v1  ;;  %v1557_v7 = vpop.f32.mrb[103].mxu0  ;;  %2742 = vmatmul.mubr.bf16.gmra.mrb[92].mxu1 %v1746_v63  ;;  %v1703_v9 = vmax.f32 %v1563_v3, 0.0 }
 0x2ef   : > { %v1558_v8 = vadd.f32 %v3195_v1, %v1557_v7  ;;  %v1701_v11 = vmax.f32 %v1555_v5, 0.0 }
 0x2f0   : > { %v1704_v10 = vmax.f32 %v1566_v6, 0.0 }
 0x2f1   : > { %v1702_v12 = vmax.f32 %v1558_v8, 0.0 }
 0x2f2   : > { %v1748_v13 = vpack.c.bf16 %v1704_v10, %v1703_v9 }
 0x2f3   : > { %v1747_v14 = vpack.c.bf16 %v1702_v12, %v1701_v11  ;;  %v2671_v15 = vpop.f32.mrb[104].mxu0 }
 0x2f4   : > { %v1579_v16 = vadd.f32 %v2671_v15, %v3195_v1  ;;  %v1570_v17 = vpop.f32.mrb[105].mxu0 }
 0x2f5   : > { %v1571_v18 = vadd.f32 %v3195_v1, %v1570_v17  ;;  %v2672_v19 = vpop.f32.mrb[106].mxu0  ;;  %2745 = vmatprep.mubr.bf16.mxu1 %v1747_v14 }
 0x2f6   : > { %v1582_v20 = vadd.f32 %v2672_v19, %v3195_v1  ;;  %v1573_v21 = vpop.f32.mrb[107].mxu0  ;;  %2746 = vmatmul.mubr.bf16.gmra.mrb[96].mxu1 %v1748_v13  ;;  %v1707_v23 = vmax.f32 %v1579_v16, 0.0 }
 0x2f7   : > { %v1574_v43 = vadd.f32 %v3195_v1, %v1573_v21  ;;  %v1705_v25 = vmax.f32 %v1571_v18, 0.0 }
 0x2f8   : > { %v1708_v24 = vmax.f32 %v1582_v20, 0.0 }
 0x2f9   : > { %v1706_v26 = vmax.f32 %v1574_v43, 0.0 }
 0x2fa   : > { %v1750_v27 = vpack.c.bf16 %v1708_v24, %v1707_v23 }
 0x2fb   : > { %v1749_v28 = vpack.c.bf16 %v1706_v26, %v1705_v25  ;;  %v2675_v29 = vpop.f32.mrb[108].mxu0 }
 0x2fc   : > { %v1595_v30 = vadd.f32 %v2675_v29, %v3195_v1  ;;  %v1586_v31 = vpop.f32.mrb[109].mxu0 }
 0x2fd   : > { %v1587_v32 = vadd.f32 %v3195_v1, %v1586_v31  ;;  %v2676_v33 = vpop.f32.mrb[110].mxu0  ;;  %2749 = vmatprep.mubr.bf16.mxu1 %v1749_v28 }
 0x2fe   : > { %v1598_v34 = vadd.f32 %v2676_v33, %v3195_v1  ;;  %v1589_v35 = vpop.f32.mrb[111].mxu0  ;;  %2750 = vmatmul.mubr.bf16.gmra.mrb[100].mxu1 %v1750_v27  ;;  %v1711_v37 = vmax.f32 %v1595_v30, 0.0 }
 0x2ff   : > { %v1590_v36 = vadd.f32 %v3195_v1, %v1589_v35  ;;  %v1709_v39 = vmax.f32 %v1587_v32, 0.0 }
 0x300   : > { %v1712_v38 = vmax.f32 %v1598_v34, 0.0 }
 0x301   : > { %v1710_v40 = vmax.f32 %v1590_v36, 0.0  ;;  %v3264_v36 = vld [vmem:[%s3473_s5 + $0x3] ss:$0 sm:$0xff] }
 0x302   : > { %v1752_v41 = vpack.c.bf16 %v1712_v38, %v1711_v37 }
 0x303   : > { %v1751_v42 = vpack.c.bf16 %v1710_v40, %v1709_v39  ;;  %v2679_v44 = vpop.f32.mrb[112].mxu0 }
 0x304   : > { %v1611_v45 = vadd.f32 %v2679_v44, %v3195_v1  ;;  %v1602_v46 = vpop.f32.mrb[113].mxu0 }
 0x305   : > { %v1603_v47 = vadd.f32 %v3195_v1, %v1602_v46  ;;  %v2680_v48 = vpop.f32.mrb[114].mxu0  ;;  %2753 = vmatprep.mubr.bf16.mxu1 %v1751_v42 }
 0x306   : > { %v1614_v49 = vadd.f32 %v2680_v48, %v3195_v1  ;;  %v1605_v50 = vpop.f32.mrb[115].mxu0  ;;  %2754 = vmatmul.mubr.bf16.gmra.mrb[104].mxu1 %v1752_v41  ;;  %v1715_v52 = vmax.f32 %v1611_v45, 0.0 }
 0x307   : > { %v1606_v51 = vadd.f32 %v3195_v1, %v1605_v50  ;;  %v1713_v54 = vmax.f32 %v1603_v47, 0.0 }
 0x308   : > { %v1716_v53 = vmax.f32 %v1614_v49, 0.0 }
 0x309   : > { %v1714_v55 = vmax.f32 %v1606_v51, 0.0 }
 0x30a   : > { %v1754_v56 = vpack.c.bf16 %v1716_v53, %v1715_v52 }
 0x30b   : > { %v1753_v57 = vpack.c.bf16 %v1714_v55, %v1713_v54  ;;  %v2683_v58 = vpop.f32.mrb[116].mxu0 }
 0x30c   : > { %v1627_v59 = vadd.f32 %v2683_v58, %v3195_v1  ;;  %v1618_v60 = vpop.f32.mrb[117].mxu0 }
 0x30d   : > { %v1619_v61 = vadd.f32 %v3195_v1, %v1618_v60  ;;  %v2684_v62 = vpop.f32.mrb[118].mxu0  ;;  %2757 = vmatprep.mubr.bf16.mxu1 %v1753_v57 }
 0x30e   : > { %v1630_v63 = vadd.f32 %v2684_v62, %v3195_v1  ;;  %v1621_v0 = vpop.f32.mrb[119].mxu0  ;;  %2758 = vmatmul.mubr.bf16.gmra.mrb[108].mxu1 %v1754_v56  ;;  %v1719_v3 = vmax.f32 %v1627_v59, 0.0 }
 0x30f   : > { %v1622_v2 = vadd.f32 %v3195_v1, %v1621_v0  ;;  %v1717_v5 = vmax.f32 %v1619_v61, 0.0 }
 0x310   : > { %v1720_v4 = vmax.f32 %v1630_v63, 0.0 }
 0x311   : > { %v1718_v22 = vmax.f32 %v1622_v2, 0.0 }
 0x312   : > { %v1756_v6 = vpack.c.bf16 %v1720_v4, %v1719_v3 }
 0x313   : > { %v1755_v7 = vpack.c.bf16 %v1718_v22, %v1717_v5  ;;  %v2687_v8 = vpop.f32.mrb[120].mxu0 }
 0x314   : > { %v1643_v9 = vadd.f32 %v2687_v8, %v3195_v1  ;;  %v1634_v10 = vpop.f32.mrb[121].mxu0 }
 0x315   : > { %v1635_v11 = vadd.f32 %v3195_v1, %v1634_v10  ;;  %v2688_v12 = vpop.f32.mrb[122].mxu0  ;;  %2761 = vmatprep.mubr.bf16.mxu1 %v1755_v7 }
 0x316   : > { %v1646_v13 = vadd.f32 %v2688_v12, %v3195_v1  ;;  %v1637_v14 = vpop.f32.mrb[123].mxu0  ;;  %2762 = vmatmul.mubr.bf16.gmra.mrb[112].mxu1 %v1756_v6  ;;  %v1723_v16 = vmax.f32 %v1643_v9, 0.0 }
 0x317   : > { %v1638_v15 = vadd.f32 %v3195_v1, %v1637_v14  ;;  %v1721_v18 = vmax.f32 %v1635_v11, 0.0 }
 0x318   : > { %v1724_v17 = vmax.f32 %v1646_v13, 0.0 }
 0x319   : > { %v1722_v19 = vmax.f32 %v1638_v15, 0.0 }
 0x31a   : > { %v1758_v20 = vpack.c.bf16 %v1724_v17, %v1723_v16 }
 0x31b   : > { %v1757_v21 = vpack.c.bf16 %v1722_v19, %v1721_v18  ;;  %v2691_v43 = vpop.f32.mrb[124].mxu0 }
 0x31c   : > { %v1659_v23 = vadd.f32 %v2691_v43, %v3195_v1  ;;  %v1650_v24 = vpop.f32.mrb[125].mxu0 }
 0x31d   : > { %v1651_v25 = vadd.f32 %v3195_v1, %v1650_v24  ;;  %v2692_v26 = vpop.f32.mrb[126].mxu0  ;;  %2765 = vmatprep.mubr.bf16.mxu1 %v1757_v21 }
 0x31e   : > { %v1662_v27 = vadd.f32 %v2692_v26, %v3195_v1  ;;  %v1653_v28 = vpop.f32.mrb[127].mxu0  ;;  %2766 = vmatmul.mubr.bf16.gmra.mrb[116].mxu1 %v1758_v20  ;;  %v1727_v30 = vmax.f32 %v1659_v23, 0.0 }
 0x31f   : > { %v1654_v29 = vadd.f32 %v3195_v1, %v1653_v28  ;;  %v1725_v32 = vmax.f32 %v1651_v25, 0.0 }
 0x320   : > { %v1728_v31 = vmax.f32 %v1662_v27, 0.0 }
 0x321   : > { %v1726_v33 = vmax.f32 %v1654_v29, 0.0 }
 0x322   : > { %v1760_v34 = vpack.c.bf16 %v1728_v31, %v1727_v30 }
 0x323   : > { %v1759_v35 = vpack.c.bf16 %v1726_v33, %v1725_v32 }
 0x325   : > { %2769 = vmatprep.mubr.bf16.mxu1 %v1759_v35 }
 0x326   : > { %2770 = vmatmul.mubr.bf16.gmra.mrb[120].mxu1 %v1760_v34 }
 0x381   : > { %v2711_v1 = vpop.f32.mrb[128].mxu0 }
 0x382   : > { %v1875_v37 = vadd.f32 %v2711_v1, %v3264_v36  ;;  %v1866_v38 = vpop.f32.mrb[129].mxu0 }
 0x383   : > { %v1867_v39 = vadd.f32 %v3264_v36, %v1866_v38  ;;  %v2712_v40 = vpop.f32.mrb[130].mxu0 }
 0x384   : > { %2124 = vst.msk [vmem:[%s3271_s23 + $0x10] sm:$0xff] %vm2121_vm1, %v1875_v37  ;;  %v1878_v41 = vadd.f32 %v2712_v40, %v3264_v36  ;;  %v1869_v42 = vpop.f32.mrb[131].mxu0 }
 0x385   : > { %2122 = vst.msk [vmem:[%s3271_s23] sm:$0xff] %vm2121_vm1, %v1867_v39  ;;  %v1870_v44 = vadd.f32 %v3264_v36, %v1869_v42 }
 0x386   : > { %2125 = vst.msk [vmem:[%s3271_s23 + $0x18] sm:$0xff] %vm2121_vm1, %v1878_v41 }
 0x387   : > { %2123 = vst.msk [vmem:[%s3271_s23 + $0x8] sm:$0xff] %vm2121_vm1, %v1870_v44 }
 0x389   : > { %v2715_v45 = vpop.f32.mrb[64].mxu1 }
 0x38a   : > { %v1891_v46 = vadd.f32 %v2715_v45, %v3264_v36  ;;  %v1882_v47 = vpop.f32.mrb[65].mxu1 }
 0x38b   : > { %v1883_v48 = vadd.f32 %v3264_v36, %v1882_v47  ;;  %v2716_v49 = vpop.f32.mrb[66].mxu1 }
 0x38c   : > { %2128 = vst.msk [vmem:[%s3271_s23 + $0x30] sm:$0xff] %vm2121_vm1, %v1891_v46  ;;  %v1894_v50 = vadd.f32 %v2716_v49, %v3264_v36  ;;  %v1885_v51 = vpop.f32.mrb[67].mxu1 }
 0x38d   : > { %2126 = vst.msk [vmem:[%s3271_s23 + $0x20] sm:$0xff] %vm2121_vm1, %v1883_v48  ;;  %v1886_v52 = vadd.f32 %v3264_v36, %v1885_v51 }
 0x38e   : > { %2129 = vst.msk [vmem:[%s3271_s23 + $0x38] sm:$0xff] %vm2121_vm1, %v1894_v50 }
 0x38f   : > { %2127 = vst.msk [vmem:[%s3271_s23 + $0x28] sm:$0xff] %vm2121_vm1, %v1886_v52 }
 0x391   : > { %v2719_v53 = vpop.f32.mrb[68].mxu1 }
 0x392   : > { %v1907_v54 = vadd.f32 %v2719_v53, %v3264_v36  ;;  %v1898_v55 = vpop.f32.mrb[69].mxu1 }
 0x393   : > { %v1899_v56 = vadd.f32 %v3264_v36, %v1898_v55  ;;  %v2720_v57 = vpop.f32.mrb[70].mxu1 }
 0x394   : > { %2132 = vst.msk [vmem:[%s3271_s23 + $0x50] sm:$0xff] %vm2121_vm1, %v1907_v54  ;;  %v1910_v58 = vadd.f32 %v2720_v57, %v3264_v36  ;;  %v1901_v59 = vpop.f32.mrb[71].mxu1 }
 0x395   : > { %2130 = vst.msk [vmem:[%s3271_s23 + $0x40] sm:$0xff] %vm2121_vm1, %v1899_v56  ;;  %v1902_v60 = vadd.f32 %v3264_v36, %v1901_v59 }
 0x396   : > { %2133 = vst.msk [vmem:[%s3271_s23 + $0x58] sm:$0xff] %vm2121_vm1, %v1910_v58 }
 0x397   : > { %2131 = vst.msk [vmem:[%s3271_s23 + $0x48] sm:$0xff] %vm2121_vm1, %v1902_v60 }
 0x399   : > { %v2723_v61 = vpop.f32.mrb[72].mxu1 }
 0x39a   : > { %v1923_v62 = vadd.f32 %v2723_v61, %v3264_v36  ;;  %v1914_v63 = vpop.f32.mrb[73].mxu1 }
 0x39b   : > { %v1915_v0 = vadd.f32 %v3264_v36, %v1914_v63  ;;  %v2724_v2 = vpop.f32.mrb[74].mxu1 }
 0x39c   : > { %2136 = vst.msk [vmem:[%s3271_s23 + $0x70] sm:$0xff] %vm2121_vm1, %v1923_v62  ;;  %v1926_v3 = vadd.f32 %v2724_v2, %v3264_v36  ;;  %v1917_v4 = vpop.f32.mrb[75].mxu1 }
 0x39d   : > { %2134 = vst.msk [vmem:[%s3271_s23 + $0x60] sm:$0xff] %vm2121_vm1, %v1915_v0  ;;  %v1918_v5 = vadd.f32 %v3264_v36, %v1917_v4 }
 0x39e   : > { %2137 = vst.msk [vmem:[%s3271_s23 + $0x78] sm:$0xff] %vm2121_vm1, %v1926_v3 }
 0x39f   : > { %2135 = vst.msk [vmem:[%s3271_s23 + $0x68] sm:$0xff] %vm2121_vm1, %v1918_v5 }
 0x3a1   : > { %v2727_v22 = vpop.f32.mrb[76].mxu1 }
 0x3a2   : > { %v1939_v6 = vadd.f32 %v2727_v22, %v3264_v36  ;;  %v1930_v7 = vpop.f32.mrb[77].mxu1 }
 0x3a3   : > { %v1931_v8 = vadd.f32 %v3264_v36, %v1930_v7  ;;  %v2728_v9 = vpop.f32.mrb[78].mxu1 }
 0x3a4   : > { %2140 = vst.msk [vmem:[%s3271_s23 + $0x90] sm:$0xff] %vm2121_vm1, %v1939_v6  ;;  %v1942_v10 = vadd.f32 %v2728_v9, %v3264_v36  ;;  %v1933_v11 = vpop.f32.mrb[79].mxu1 }
 0x3a5   : > { %2138 = vst.msk [vmem:[%s3271_s23 + $0x80] sm:$0xff] %vm2121_vm1, %v1931_v8  ;;  %v1934_v12 = vadd.f32 %v3264_v36, %v1933_v11 }
 0x3a6   : > { %2141 = vst.msk [vmem:[%s3271_s23 + $0x98] sm:$0xff] %vm2121_vm1, %v1942_v10 }
 0x3a7   : > { %2139 = vst.msk [vmem:[%s3271_s23 + $0x88] sm:$0xff] %vm2121_vm1, %v1934_v12 }
 0x3a9   : > { %v2731_v13 = vpop.f32.mrb[80].mxu1 }
 0x3aa   : > { %v1955_v14 = vadd.f32 %v2731_v13, %v3264_v36  ;;  %v1946_v15 = vpop.f32.mrb[81].mxu1 }
 0x3ab   : > { %v1947_v16 = vadd.f32 %v3264_v36, %v1946_v15  ;;  %v2732_v17 = vpop.f32.mrb[82].mxu1 }
 0x3ac   : > { %2144 = vst.msk [vmem:[%s3271_s23 + $0xb0] sm:$0xff] %vm2121_vm1, %v1955_v14  ;;  %v1958_v18 = vadd.f32 %v2732_v17, %v3264_v36  ;;  %v1949_v19 = vpop.f32.mrb[83].mxu1 }
 0x3ad   : > { %2142 = vst.msk [vmem:[%s3271_s23 + $0xa0] sm:$0xff] %vm2121_vm1, %v1947_v16  ;;  %v1950_v20 = vadd.f32 %v3264_v36, %v1949_v19 }
 0x3ae   : > { %2145 = vst.msk [vmem:[%s3271_s23 + $0xb8] sm:$0xff] %vm2121_vm1, %v1958_v18 }
 0x3af   : > { %2143 = vst.msk [vmem:[%s3271_s23 + $0xa8] sm:$0xff] %vm2121_vm1, %v1950_v20 }
 0x3b1   : > { %v2735_v21 = vpop.f32.mrb[84].mxu1 }
 0x3b2   : > { %v1971_v43 = vadd.f32 %v2735_v21, %v3264_v36  ;;  %v1962_v23 = vpop.f32.mrb[85].mxu1 }
 0x3b3   : > { %v1963_v24 = vadd.f32 %v3264_v36, %v1962_v23  ;;  %v2736_v25 = vpop.f32.mrb[86].mxu1 }
 0x3b4   : > { %2148 = vst.msk [vmem:[%s3271_s23 + $0xd0] sm:$0xff] %vm2121_vm1, %v1971_v43  ;;  %v1974_v26 = vadd.f32 %v2736_v25, %v3264_v36  ;;  %v1965_v27 = vpop.f32.mrb[87].mxu1 }
 0x3b5   : > { %2146 = vst.msk [vmem:[%s3271_s23 + $0xc0] sm:$0xff] %vm2121_vm1, %v1963_v24  ;;  %v1966_v28 = vadd.f32 %v3264_v36, %v1965_v27 }
 0x3b6   : > { %2149 = vst.msk [vmem:[%s3271_s23 + $0xd8] sm:$0xff] %vm2121_vm1, %v1974_v26 }
 0x3b7   : > { %2147 = vst.msk [vmem:[%s3271_s23 + $0xc8] sm:$0xff] %vm2121_vm1, %v1966_v28 }
 0x3b9   : > { %v2739_v29 = vpop.f32.mrb[88].mxu1 }
 0x3ba   : > { %v1987_v30 = vadd.f32 %v2739_v29, %v3264_v36  ;;  %v1978_v31 = vpop.f32.mrb[89].mxu1 }
 0x3bb   : > { %v1979_v32 = vadd.f32 %v3264_v36, %v1978_v31  ;;  %v2740_v33 = vpop.f32.mrb[90].mxu1 }
 0x3bc   : > { %2152 = vst.msk [vmem:[%s3271_s23 + $0xf0] sm:$0xff] %vm2121_vm1, %v1987_v30  ;;  %v1990_v34 = vadd.f32 %v2740_v33, %v3264_v36  ;;  %v1981_v35 = vpop.f32.mrb[91].mxu1 }
 0x3bd   : > { %2150 = vst.msk [vmem:[%s3271_s23 + $0xe0] sm:$0xff] %vm2121_vm1, %v1979_v32  ;;  %v1982_v1 = vadd.f32 %v3264_v36, %v1981_v35 }
 0x3be   : > { %2153 = vst.msk [vmem:[%s3271_s23 + $0xf8] sm:$0xff] %vm2121_vm1, %v1990_v34 }
 0x3bf   : > { %2151 = vst.msk [vmem:[%s3271_s23 + $0xe8] sm:$0xff] %vm2121_vm1, %v1982_v1 }
 0x3c1   : > { %v2743_v37 = vpop.f32.mrb[92].mxu1 }
 0x3c2   : > { %v2003_v38 = vadd.f32 %v2743_v37, %v3264_v36  ;;  %v1994_v39 = vpop.f32.mrb[93].mxu1 }
 0x3c3   : > { %v1995_v40 = vadd.f32 %v3264_v36, %v1994_v39  ;;  %v2744_v41 = vpop.f32.mrb[94].mxu1 }
 0x3c4   : > { %2156 = vst.msk [vmem:[%s3271_s23 + $0x110] sm:$0xff] %vm2121_vm1, %v2003_v38  ;;  %v2006_v42 = vadd.f32 %v2744_v41, %v3264_v36  ;;  %v1997_v44 = vpop.f32.mrb[95].mxu1 }
 0x3c5   : > { %2154 = vst.msk [vmem:[%s3271_s23 + $0x100] sm:$0xff] %vm2121_vm1, %v1995_v40  ;;  %v1998_v45 = vadd.f32 %v3264_v36, %v1997_v44 }
 0x3c6   : > { %2157 = vst.msk [vmem:[%s3271_s23 + $0x118] sm:$0xff] %vm2121_vm1, %v2006_v42 }
 0x3c7   : > { %2155 = vst.msk [vmem:[%s3271_s23 + $0x108] sm:$0xff] %vm2121_vm1, %v1998_v45 }
 0x3c9   : > { %v2747_v46 = vpop.f32.mrb[96].mxu1 }
 0x3ca   : > { %v2019_v47 = vadd.f32 %v2747_v46, %v3264_v36  ;;  %v2010_v48 = vpop.f32.mrb[97].mxu1 }
 0x3cb   : > { %v2011_v49 = vadd.f32 %v3264_v36, %v2010_v48  ;;  %v2748_v50 = vpop.f32.mrb[98].mxu1 }
 0x3cc   : > { %2160 = vst.msk [vmem:[%s3271_s23 + $0x130] sm:$0xff] %vm2121_vm1, %v2019_v47  ;;  %v2022_v51 = vadd.f32 %v2748_v50, %v3264_v36  ;;  %v2013_v52 = vpop.f32.mrb[99].mxu1 }
 0x3cd   : > { %2158 = vst.msk [vmem:[%s3271_s23 + $0x120] sm:$0xff] %vm2121_vm1, %v2011_v49  ;;  %v2014_v53 = vadd.f32 %v3264_v36, %v2013_v52 }
 0x3ce   : > { %2161 = vst.msk [vmem:[%s3271_s23 + $0x138] sm:$0xff] %vm2121_vm1, %v2022_v51 }
 0x3cf   : > { %2159 = vst.msk [vmem:[%s3271_s23 + $0x128] sm:$0xff] %vm2121_vm1, %v2014_v53 }
 0x3d1   : > { %v2751_v54 = vpop.f32.mrb[100].mxu1 }
 0x3d2   : > { %v2035_v55 = vadd.f32 %v2751_v54, %v3264_v36  ;;  %v2026_v56 = vpop.f32.mrb[101].mxu1 }
 0x3d3   : > { %v2027_v57 = vadd.f32 %v3264_v36, %v2026_v56  ;;  %v2752_v58 = vpop.f32.mrb[102].mxu1 }
 0x3d4   : > { %2164 = vst.msk [vmem:[%s3271_s23 + $0x150] sm:$0xff] %vm2121_vm1, %v2035_v55  ;;  %v2038_v59 = vadd.f32 %v2752_v58, %v3264_v36  ;;  %v2029_v60 = vpop.f32.mrb[103].mxu1 }
 0x3d5   : > { %2162 = vst.msk [vmem:[%s3271_s23 + $0x140] sm:$0xff] %vm2121_vm1, %v2027_v57  ;;  %v2030_v61 = vadd.f32 %v3264_v36, %v2029_v60 }
 0x3d6   : > { %2165 = vst.msk [vmem:[%s3271_s23 + $0x158] sm:$0xff] %vm2121_vm1, %v2038_v59 }
 0x3d7   : > { %2163 = vst.msk [vmem:[%s3271_s23 + $0x148] sm:$0xff] %vm2121_vm1, %v2030_v61 }
 0x3d9   : > { %v2755_v62 = vpop.f32.mrb[104].mxu1 }
 0x3da   : > { %v2051_v63 = vadd.f32 %v2755_v62, %v3264_v36  ;;  %v2042_v0 = vpop.f32.mrb[105].mxu1 }
 0x3db   : > { %v2043_v2 = vadd.f32 %v3264_v36, %v2042_v0  ;;  %v2756_v3 = vpop.f32.mrb[106].mxu1 }
 0x3dc   : > { %2168 = vst.msk [vmem:[%s3271_s23 + $0x170] sm:$0xff] %vm2121_vm1, %v2051_v63  ;;  %v2054_v4 = vadd.f32 %v2756_v3, %v3264_v36  ;;  %v2045_v5 = vpop.f32.mrb[107].mxu1 }
 0x3dd   : > { %2166 = vst.msk [vmem:[%s3271_s23 + $0x160] sm:$0xff] %vm2121_vm1, %v2043_v2  ;;  %v2046_v22 = vadd.f32 %v3264_v36, %v2045_v5 }
 0x3de   : > { %2169 = vst.msk [vmem:[%s3271_s23 + $0x178] sm:$0xff] %vm2121_vm1, %v2054_v4 }
 0x3df   : > { %2167 = vst.msk [vmem:[%s3271_s23 + $0x168] sm:$0xff] %vm2121_vm1, %v2046_v22 }
 0x3e1   : > { %v2759_v6 = vpop.f32.mrb[108].mxu1 }
 0x3e2   : > { %v2067_v7 = vadd.f32 %v2759_v6, %v3264_v36  ;;  %v2058_v8 = vpop.f32.mrb[109].mxu1 }
 0x3e3   : > { %v2059_v9 = vadd.f32 %v3264_v36, %v2058_v8  ;;  %v2760_v10 = vpop.f32.mrb[110].mxu1 }
 0x3e4   : > { %2172 = vst.msk [vmem:[%s3271_s23 + $0x190] sm:$0xff] %vm2121_vm1, %v2067_v7  ;;  %v2070_v11 = vadd.f32 %v2760_v10, %v3264_v36  ;;  %v2061_v12 = vpop.f32.mrb[111].mxu1 }
 0x3e5   : > { %2170 = vst.msk [vmem:[%s3271_s23 + $0x180] sm:$0xff] %vm2121_vm1, %v2059_v9  ;;  %v2062_v13 = vadd.f32 %v3264_v36, %v2061_v12 }
 0x3e6   : > { %2173 = vst.msk [vmem:[%s3271_s23 + $0x198] sm:$0xff] %vm2121_vm1, %v2070_v11 }
 0x3e7   : > { %2171 = vst.msk [vmem:[%s3271_s23 + $0x188] sm:$0xff] %vm2121_vm1, %v2062_v13 }
 0x3e9   : > { %v2763_v14 = vpop.f32.mrb[112].mxu1 }
 0x3ea   : > { %v2083_v15 = vadd.f32 %v2763_v14, %v3264_v36  ;;  %v2074_v16 = vpop.f32.mrb[113].mxu1 }
 0x3eb   : > { %v2075_v17 = vadd.f32 %v3264_v36, %v2074_v16  ;;  %v2764_v18 = vpop.f32.mrb[114].mxu1 }
 0x3ec   : > { %2176 = vst.msk [vmem:[%s3271_s23 + $0x1b0] sm:$0xff] %vm2121_vm1, %v2083_v15  ;;  %v2086_v19 = vadd.f32 %v2764_v18, %v3264_v36  ;;  %v2077_v20 = vpop.f32.mrb[115].mxu1 }
 0x3ed   : > { %2174 = vst.msk [vmem:[%s3271_s23 + $0x1a0] sm:$0xff] %vm2121_vm1, %v2075_v17  ;;  %v2078_v21 = vadd.f32 %v3264_v36, %v2077_v20 }
 0x3ee   : > { %2177 = vst.msk [vmem:[%s3271_s23 + $0x1b8] sm:$0xff] %vm2121_vm1, %v2086_v19 }
 0x3ef   : > { %2175 = vst.msk [vmem:[%s3271_s23 + $0x1a8] sm:$0xff] %vm2121_vm1, %v2078_v21 }
 0x3f1   : > { %v2767_v43 = vpop.f32.mrb[116].mxu1 }
 0x3f2   : > { %v2099_v23 = vadd.f32 %v2767_v43, %v3264_v36  ;;  %v2090_v24 = vpop.f32.mrb[117].mxu1 }
 0x3f3   : > { %v2091_v25 = vadd.f32 %v3264_v36, %v2090_v24  ;;  %v2768_v26 = vpop.f32.mrb[118].mxu1 }
 0x3f4   : > { %2180 = vst.msk [vmem:[%s3271_s23 + $0x1d0] sm:$0xff] %vm2121_vm1, %v2099_v23  ;;  %v2102_v27 = vadd.f32 %v2768_v26, %v3264_v36  ;;  %v2093_v28 = vpop.f32.mrb[119].mxu1 }
 0x3f5   : > { %2178 = vst.msk [vmem:[%s3271_s23 + $0x1c0] sm:$0xff] %vm2121_vm1, %v2091_v25  ;;  %v2094_v29 = vadd.f32 %v3264_v36, %v2093_v28 }
 0x3f6   : > { %2181 = vst.msk [vmem:[%s3271_s23 + $0x1d8] sm:$0xff] %vm2121_vm1, %v2102_v27 }
 0x3f7   : > { %2179 = vst.msk [vmem:[%s3271_s23 + $0x1c8] sm:$0xff] %vm2121_vm1, %v2094_v29 }
 0x3f9   : > { %v2771_v30 = vpop.f32.mrb[120].mxu1 }
 0x3fa   : > { %v2115_v31 = vadd.f32 %v2771_v30, %v3264_v36  ;;  %v2106_v32 = vpop.f32.mrb[121].mxu1 }
 0x3fb   : > { %v2107_v33 = vadd.f32 %v3264_v36, %v2106_v32  ;;  %v2772_v34 = vpop.f32.mrb[122].mxu1 }
 0x3fc   : > { %2184 = vst.msk [vmem:[%s3271_s23 + $0x1f0] sm:$0xff] %vm2121_vm1, %v2115_v31  ;;  %v2118_v35 = vadd.f32 %v2772_v34, %v3264_v36  ;;  %v2109_v1 = vpop.f32.mrb[123].mxu1 }
 0x3fd   : > { %2182 = vst.msk [vmem:[%s3271_s23 + $0x1e0] sm:$0xff] %vm2121_vm1, %v2107_v33  ;;  %v2110_v37 = vadd.f32 %v3264_v36, %v2109_v1 }
 0x3fe   : > { %2185 = vst.msk [vmem:[%s3271_s23 + $0x1f8] sm:$0xff] %vm2121_vm1, %v2118_v35 }
 0x3ff   : > { %2183 = vst.msk [vmem:[%s3271_s23 + $0x1e8] sm:$0xff] %vm2121_vm1, %v2110_v37 }
 0x400 PF: > { %s16_s21 = sadd.s32 1, %s2828_s21  }
 0x401   : > { %p13_p4 = scmp.ge.s32.totalorder %s16_s21, 4  }
 0x403   :  { %15 = sbr.rel (!%p13_p4) target bundleno = 1 (0x1), region = 74 }

</bundles_post_ra>
